<compile_context>
chip_gen: v7x
topology: tpu7x:2x2x1
jax: 0.10.0
libtpu: 0.0.40
codegen_flags: <defaults>
</compile_context>

<pallas_src>
import math
import numpy as np
import jax
import jax.numpy as jnp
from jax.experimental import pallas as pl
from jax.experimental.pallas import tpu as pltpu

PREC = jax.lax.Precision.HIGHEST   # call-site only; see TODO above for scaling


# ----------------------------------------------------------------------------
# synthetic electrode graph (replaces EEGElectrodeGraph CSV loading, knn rule)
# ----------------------------------------------------------------------------
def build_adjacency(E, k):
    rng = np.random.RandomState(0)
    coords = rng.rand(E, 2).astype(np.float32)          # deterministic coords
    diff = coords[:, None, :] - coords[None, :, :]
    dist = np.sqrt((diff ** 2).sum(-1))
    order = np.argsort(dist, axis=1, kind="stable")      # self (dist 0) first
    adj = np.zeros((E, E), dtype=bool)                   # adj[target, source]
    for i in range(E):
        for j in order[i, 1:k + 1]:                      # edge i -> j (src=i)
            adj[j, i] = True
    np.fill_diagonal(adj, True)                          # GATConv add_self_loops
    return adj


# ----------------------------------------------------------------------------
# deterministic parameter init (shapes follow the nn.Module __init__)
# ----------------------------------------------------------------------------
def init_params(key, hp):
    F1, F2, H, dh = hp["F1"], hp["F2"], hp["H"], hp["dh"]
    K1, Ks = hp["K1"], hp["Ks"]
    ks = jax.random.split(key, 18)
    n = lambda i, shape, s=1.0: s * jax.random.normal(ks[i], shape, jnp.float32)
    return {
        # block1: Conv2d(1, F1, (1, K1), bias=False) + BatchNorm2d(F1)
        "w1": n(0, (F1, K1), 0.3),
        "g1": 1.0 + n(1, (F1,), 0.1), "b1": n(2, (F1,), 0.1),
        "m1": n(3, (F1,), 0.1), "v1": 1.0 + 0.2 * jnp.abs(n(4, (F1,))),
        # GATConv(F1, F2//H, heads=H, concat=True)
        "wg": n(5, (F2, F1), 1.0 / math.sqrt(F1)),
        "att_src": n(6, (H, dh), 0.5), "att_dst": n(7, (H, dh), 0.5),
        "gbias": n(8, (F2,), 0.1),
        # BatchNorm1d(F2) after GNN
        "gg": 1.0 + n(9, (F2,), 0.1), "bg": n(10, (F2,), 0.1),
        "mg": n(11, (F2,), 0.1), "vg": 1.0 + 0.2 * jnp.abs(n(12, (F2,))),
        # block3: Conv2d(F2, F2, (1, Ks), bias=False) + BatchNorm2d(F2)
        "w3": n(13, (F2, F2, Ks), 1.0 / math.sqrt(F2 * Ks)),
        "g3": 1.0 + n(14, (F2,), 0.1), "b3": n(15, (F2,), 0.1),
        "m3": n(16, (F2,), 0.1), "v3": 1.0 + 0.2 * jnp.abs(n(17, (F2,))),
    }


# ----------------------------------------------------------------------------
# host-side (numpy, float64) parameter folding
# ----------------------------------------------------------------------------
def fold_params(rp, adj, hp):
    E = adj.shape[0]
    F2, H, dh = hp["F2"], hp["H"], hp["dh"]
    K1, Ks = hp["K1"], hp["Ks"]
    eps = 1e-5
    g = lambda k: np.asarray(rp[k], np.float64)

    # adjacency needs self-loops so every softmax row has >=1 unmasked source
    assert bool(adj.diagonal().all()), "adjacency must contain self-loops"

    # block1 conv + BN1 (eval) folded
    s1 = g("g1") / np.sqrt(g("v1") + eps)
    w1e = g("w1") * s1[:, None]                          # (F1, K1)
    b1e = g("b1") - g("m1") * s1                         # (F1,)

    # GAT linear + attention projections (head-block layout)
    wg = g("wg")                                         # (F2, F1)
    asrcT = np.zeros((H, F2)); adstT = np.zeros((H, F2))
    for h in range(H):
        asrcT[h, h * dh:(h + 1) * dh] = g("att_src")[h]
        adstT[h, h * dh:(h + 1) * dh] = g("att_dst")[h]

    A = wg @ w1e;    a0 = wg @ b1e                       # (F2, K1), (F2,)
    S = asrcT @ A;   s0 = asrcT @ a0                     # (H, K1),  (H,)
    Dm = adstT @ A;  d0 = adstT @ a0

    eyeE = np.eye(E)

    def blockdiag(M):    # (R, K1) -> (R*E, E*K1); rows r*E+e, cols e*K1+k
        return (M[:, None, None, :] * eyeE[None, :, :, None]).reshape(
            M.shape[0] * E, E * K1)

    # TODO(synk): at realistic E (32-64) this block-diagonal layout is O(E^2*K1)
    # zero fill - split into two stages (per-electrode conv, then (F2+2H,F1)
    # transform) or store in bf16 + single-buffer before scaling up.
    mall = np.concatenate([blockdiag(A), blockdiag(S), blockdiag(Dm)], axis=0)
    bias = np.concatenate([np.repeat(a0, E), np.repeat(s0, E), np.repeat(d0, E)])
    mall = np.concatenate([mall, bias[:, None]], axis=1)     # (MROWS, E*K1+1)
    KP = -(-(E * K1 + 1) // 8) * 8                           # pad contract dim
    mall = np.pad(mall, ((0, 0), (0, KP - mall.shape[1])))

    # adjacency mask + its additive -1e30 form, packed in one constant (2,E,E)
    adjm = adj.astype(np.float64)
    adj2 = np.stack([adjm, (adjm - 1.0) * 1e30], axis=0)

    # post-GAT: mean-over-nodes, GAT bias, BatchNorm1d -> per-channel scale/shift
    sg = g("gg") / np.sqrt(g("vg") + eps)
    post_scale = sg / E
    post_shift = g("gbias") * sg + (g("bg") - g("mg") * sg)

    # block3 conv + BN3 folded; taps as (Ks, F2, F2)
    s3 = g("g3") / np.sqrt(g("v3") + eps)
    w3e = g("w3") * s3[:, None, None]                        # (F2, F2, Ks)
    w3t = np.transpose(w3e, (2, 0, 1))                       # (Ks, F2, F2)
    b3e = g("b3") - g("m3") * s3

    colv = np.stack([post_scale, post_shift, b3e], axis=1)   # (F2, 3)

    return {
        "mall": mall.astype(np.float32),
        "adj2": adj2.astype(np.float32),
        "colv": colv.astype(np.float32),
        "w3t": w3t.astype(np.float32),
        "KP": KP,
    }


# ----------------------------------------------------------------------------
# Pallas kernel: whole forward pass for one lane-block column of (batch, time)
# ----------------------------------------------------------------------------
def _build_kernel(E, F2, H, dh, Ks):
    F2E = F2 * E
    HE = H * E

    def elu(z):
        return jnp.where(z > 0, z, jnp.exp(jnp.minimum(z, 0.0)) - 1.0)

    def kernel(xp_ref, mall_ref, adj2_ref, colv_ref, w3t_ref, pAk_ref, pB_ref,
               out_ref):
        f32 = jnp.float32
        xp = xp_ref[0]                                       # (KP, LB)
        lb = xp.shape[1]

        # ---- block1 conv + BN1 + GAT linear + attention projections:
        #      ONE stacked matmul (bias folded as a constant column of Mall).
        pre = jnp.dot(mall_ref[...], xp,
                      preferred_element_type=f32, precision=PREC)   # (MROWS, LB)
        hw = pre[:F2E].reshape(F2, E, lb)                    # hw[g, e, t]
        asrc = pre[F2E:F2E + HE].reshape(H, E, lb)           # source scores
        adst = pre[F2E + HE:].reshape(H, E, lb)              # target scores

        # ---- GAT attention: dense masked softmax over source electrodes j
        adjm = adj2_ref[0]                                   # (E_i, E_j) in {0,1}
        adjneg = adj2_ref[1]                                 # 0 / -1e30 (host-built)
        logits = asrc[:, None, :, :] + adst[:, :, None, :]   # (H, Ei, Ej, LB)
        logits = jnp.where(logits > 0, logits, 0.2 * logits)  # LeakyReLU(0.2)
        logits = logits + adjneg[None, :, :, None]
        m = jnp.max(logits, axis=2, keepdims=True)           # sublane reduce (XLU)
        p = jnp.exp(logits - m) * adjm[None, :, :, None]
        inv = pl.reciprocal(jnp.sum(p, axis=2, keepdims=True), approx=True)  # EUP
        beta = jnp.sum(p * inv, axis=1)                      # (H, Ej, LB): sum_i alpha[i,j]

        # head-expansion via zero-copy reshape/broadcast (no sublane concat),
        # then contract over source electrodes j (sublane reduce).
        y = jnp.sum(hw.reshape(H, dh, E, lb) * beta[:, None, :, :], axis=2)
        y = y.reshape(F2, lb)                                # (F2, LB)

        # GAT bias + mean-over-nodes + BatchNorm1d folded into scale/shift
        y = y * colv_ref[:, 0:1] + colv_ref[:, 1:2]
        y = elu(y)

        # ---- AvgPool1 + block3 'same' conv + BN3: per-tap shift/mask/pool are
        #      folded into host constants pAk, so this is pure matmuls.
        acc = colv_ref[:, 2:3]                               # folded BN3 bias
        for k in range(Ks):
            piece = jnp.dot(y, pAk_ref[k],
                            preferred_element_type=f32, precision=PREC)  # (F2, NP1)
            acc = acc + jnp.dot(w3t_ref[k], piece,
                                preferred_element_type=f32, precision=PREC)
        y3 = elu(acc)

        # AvgPool2d((1, P2)); store one 2-D slab (reshaped to NCHW in wrapper)
        out_ref[0] = jnp.dot(y3, pB_ref[...],
                             preferred_element_type=f32, precision=PREC)

    return kernel


# ----------------------------------------------------------------------------
# wrapper: folding, BlockSpecs, pallas_call
# ----------------------------------------------------------------------------
def make_forward(rp, adj, hp, B, T, lane_block=128):
    E = adj.shape[0]
    F2, H, dh = hp["F2"], hp["H"], hp["dh"]
    K1, Ks, P1, P2 = hp["K1"], hp["Ks"], hp["P1"], hp["P2"]

    LB = lane_block
    assert LB % T == 0 and (B * T) % LB == 0, "lane_block must pack whole batch items"
    assert T % P1 == 0 and (T // P1) % P2 == 0
    BPB = LB // T                        # batch elements per lane block
    NB = (B * T) // LB                   # grid size ("parallel"; keep >=2 on v7x)
    T1, T2 = T // P1, (T // P1) // P2
    NP1, NP2 = BPB * T1, BPB * T2
    MROWS = F2 * E + 2 * H * E

    c = fold_params(rp, adj, hp)
    KP = c["KP"]

    # pooling matrices (block-diagonal over the BPB batch segments in the lanes)
    poolA = np.kron(np.eye(BPB),
                    np.kron(np.eye(T1), np.ones((P1, 1))) / P1)          # (LB, NP1)
    poolB = np.kron(np.eye(BPB),
                    np.kron(np.eye(T2), np.ones((P2, 1))) / P2)          # (NP1, NP2)

    # per-tap pool matrices for block3: pool1, tap shift and 'same'-padding
    # boundary mask folded together on the host (no in-kernel iota/mask/roll).
    padL3 = (Ks - 1) // 2
    pAk = np.zeros((Ks, LB, NP1), np.float64)
    for k in range(Ks):
        off = k - padL3
        for col in range(NP1):
            if 0 <= (col % T1) + off < T1:       # stay inside the time block
                pAk[k, :, col] = poolA[:, col + off]

    consts = dict(mall=jnp.asarray(c["mall"]), adj2=jnp.asarray(c["adj2"]),
                  colv=jnp.asarray(c["colv"]), w3t=jnp.asarray(c["w3t"]),
                  pAk=jnp.asarray(pAk, jnp.float32),
                  pB=jnp.asarray(poolB, jnp.float32))

    kernel = _build_kernel(E, F2, H, dh, Ks)

    grid_spec = pltpu.PrefetchScalarGridSpec(
        num_scalar_prefetch=0,
        grid=(NB,),
        in_specs=[
            pl.BlockSpec((1, KP, LB), lambda i: (i, 0, 0)),        # Xp column block
            pl.BlockSpec((MROWS, KP), lambda i: (0, 0)),           # fused weights
            pl.BlockSpec((2, E, E), lambda i: (0, 0, 0)),          # adj mask + -1e30 form
            pl.BlockSpec((F2, 3), lambda i: (0, 0)),               # packed column vecs
            pl.BlockSpec((Ks, F2, F2), lambda i: (0, 0, 0)),       # conv3 taps (BN folded)
            pl.BlockSpec((Ks, LB, NP1), lambda i: (0, 0, 0)),      # per-tap pool matrices
            pl.BlockSpec((NP1, NP2), lambda i: (0, 0)),            # avg-pool 2
        ],
        out_specs=pl.BlockSpec((1, F2, NP2), lambda i: (i, 0, 0)),
    )

    call = pl.pallas_call(
        kernel,
        out_shape=jax.ShapeDtypeStruct((NB, F2, NP2), jnp.float32),
        grid_spec=grid_spec,
        compiler_params=pltpu.CompilerParams(dimension_semantics=("parallel",)),
    )

    padL1 = (K1 - 1) // 2
    padR1 = (K1 - 1) - padL1

    @jax.jit
    def forward(x):
        # TODO(synk): at realistic EEG lengths (T in the thousands, K1=32) this
        # im2col should move in-kernel (built from lane slices of the raw (E,T)
        # block) to avoid a K1x HBM blow-up; at these shapes it is negligible.
        xs = x[:, 0].astype(jnp.float32)                          # (B, E, T)
        xpad = jnp.pad(xs, ((0, 0), (0, 0), (padL1, padR1)))      # (B, E, T+K1-1)
        patches = jnp.stack([xpad[:, :, k:k + T] for k in range(K1)], axis=2)
        rows = jnp.transpose(patches, (1, 2, 0, 3)).reshape(E * K1, B * T)
        rows = jnp.concatenate([rows, jnp.ones((1, B * T), jnp.float32)], axis=0)
        rows = jnp.pad(rows, ((0, KP - (E * K1 + 1)), (0, 0)))    # (KP, B*T)
        xp = rows.reshape(KP, NB, LB).transpose(1, 0, 2)          # (NB, KP, LB)

        out = call(xp, consts["mall"], consts["adj2"], consts["colv"],
                   consts["w3t"], consts["pAk"], consts["pB"])    # (NB, F2, NP2)
        out = out.reshape(NB, F2, BPB, T2).transpose(0, 2, 1, 3).reshape(B, F2, T2)
        return out[:, :, None, :]                                 # (B, F2, 1, T2)

    return forward


# ----------------------------------------------------------------------------
# pure-JAX reference (mirrors the PyTorch forward, eval mode) for validation
# ----------------------------------------------------------------------------
def reference_forward(x, rp, adj, hp):
    B, _, E, T = x.shape
    F2, H, dh = hp["F2"], hp["H"], hp["dh"]
    K1, Ks, P1, P2 = hp["K1"], hp["Ks"], hp["P1"], hp["P2"]
    eps = 1e-5
    elu = lambda z: jnp.where(z > 0, z, jnp.exp(jnp.minimum(z, 0.0)) - 1.0)

    padL1, padR1 = (K1 - 1) // 2, (K1 - 1) - (K1 - 1) // 2
    xp = jnp.pad(x[:, 0], ((0, 0), (0, 0), (padL1, padR1)))
    patches = jnp.stack([xp[:, :, k:k + T] for k in range(K1)], axis=-1)
    h1 = jnp.einsum("betk,fk->bfet", patches, rp["w1"], precision=PREC)
    s1 = rp["g1"] / jnp.sqrt(rp["v1"] + eps)
    h1 = h1 * s1[None, :, None, None] + (rp["b1"] - rp["m1"] * s1)[None, :, None, None]

    feats = jnp.transpose(h1, (0, 3, 2, 1))                       # (B,T,E,F1)
    hw = jnp.einsum("btef,gf->bteg", feats, rp["wg"], precision=PREC)
    hw_r = hw.reshape(B, T, E, H, dh)
    a_src = (hw_r * rp["att_src"][None, None, None]).sum(-1)      # (B,T,E,H)
    a_dst = (hw_r * rp["att_dst"][None, None, None]).sum(-1)
    logits = a_src[:, :, None, :, :] + a_dst[:, :, :, None, :]    # (B,T,i,j,H)
    logits = jnp.where(logits > 0, logits, 0.2 * logits)
    mask = adj[None, None, :, :, None]
    logits = jnp.where(mask, logits, -1e30)
    logits = logits - logits.max(axis=3, keepdims=True)
    expl = jnp.exp(logits) * mask
    alpha = expl / expl.sum(axis=3, keepdims=True)
    out = jnp.einsum("btijh,btjhd->btihd", alpha, hw_r,
                     precision=PREC).reshape(B, T, E, F2)
    out = out + rp["gbias"][None, None, None, :]
    y = jnp.transpose(out.mean(axis=2), (0, 2, 1))                # (B,F2,T)
    sg = rp["gg"] / jnp.sqrt(rp["vg"] + eps)
    y = y * sg[None, :, None] + (rp["bg"] - rp["mg"] * sg)[None, :, None]

    y = elu(y)
    T1 = T // P1
    y1 = y.reshape(B, F2, T1, P1).mean(-1)

    padL3, padR3 = (Ks - 1) // 2, (Ks - 1) - (Ks - 1) // 2
    y1p = jnp.pad(y1, ((0, 0), (0, 0), (padL3, padR3)))
    patches3 = jnp.stack([y1p[:, :, k:k + T1] for k in range(Ks)], axis=-1)
    h3 = jnp.einsum("bftk,gfk->bgt", patches3, rp["w3"], precision=PREC)
    s3 = rp["g3"] / jnp.sqrt(rp["v3"] + eps)
    h3 = h3 * s3[None, :, None] + (rp["b3"] - rp["m3"] * s3)[None, :, None]
    h3 = elu(h3)
    T2 = T1 // P2
    y2 = h3.reshape(B, F2, T2, P2).mean(-1)
    return y2[:, :, None, :]                                      # (B,F2,1,T2)


# ----------------------------------------------------------------------------
if __name__ == "__main__":
    B, E, T = 4, 8, 64
    hp = {"F1": 8, "D": 2, "H": 4, "K1": 8, "Ks": 4, "P1": 4, "P2": 2}
    hp["F2"] = hp["F1"] * hp["D"]
    hp["dh"] = hp["F2"] // hp["H"]

    key = jax.random.PRNGKey(0)
    kx, kp = jax.random.split(key)
    x = jax.random.normal(kx, (B, 1, E, T), jnp.float32)   # (B, 1, electrodes, time)
    adj = build_adjacency(E, k=4)                           # static kNN graph
    params = init_params(kp, hp)

    # lane_block=128 with B=4 gives a 2-step "parallel" grid: exercises the
    # NB>1 path and both v7x TensorCores.  Raise lane_block on v6e/v7x when
    # B*T permits to fill the 256-wide MXU / make outputs lane-dense.
    forward = make_forward(params, adj, hp, B, T, lane_block=128)
    out = jax.block_until_ready(forward(x))

    T2 = T // (hp["P1"] * hp["P2"])
    assert out.shape == (B, hp["F2"], 1, T2), out.shape

    ref = jax.block_until_ready(reference_forward(x, params, jnp.asarray(adj), hp))
    # tolerance includes headroom for the EUP approx reciprocal in the softmax
    np.testing.assert_allclose(np.asarray(out), np.asarray(ref),
                               rtol=3e-3, atol=3e-3)
    # TODO(synk): ECALayer path not exercised (use_eca=False is the module default).
    print("KERNEL_OK")
</pallas_src>

<mosaic_0001>
module attributes {stable_mosaic.version = 11 : i64} {
  func.func @kernel(%arg0: i32, %arg1: memref<1x72x128xf32, #tpu.memory_space<vmem>>, %arg2: memref<192x72xf32, #tpu.memory_space<vmem>>, %arg3: memref<2x8x8xf32, #tpu.memory_space<vmem>>, %arg4: memref<16x3xf32, #tpu.memory_space<vmem>>, %arg5: memref<4x16x16xf32, #tpu.memory_space<vmem>>, %arg6: memref<4x128x32xf32, #tpu.memory_space<vmem>>, %arg7: memref<32x16xf32, #tpu.memory_space<vmem>>, %arg8: memref<1x16x16xf32, #tpu.memory_space<vmem>>) attributes {dimension_semantics = [#tpu.dimension_semantics<parallel>], iteration_bounds = array<i64: 2>, scalar_prefetch = 0 : i64, scratch_operands = 0 : i64, tpu.core_type = #tpu.core_type<tc>, window_params = [{transform_indices = @transform_0, window_bounds = array<i64: 1, 72, 128>}, {pipeline_mode = #tpu.pipeline_mode<synchronous>, transform_indices = @transform_1, window_bounds = array<i64: 192, 72>}, {pipeline_mode = #tpu.pipeline_mode<synchronous>, transform_indices = @transform_2, window_bounds = array<i64: 2, 8, 8>}, {pipeline_mode = #tpu.pipeline_mode<synchronous>, transform_indices = @transform_3, window_bounds = array<i64: 16, 3>}, {pipeline_mode = #tpu.pipeline_mode<synchronous>, transform_indices = @transform_4, window_bounds = array<i64: 4, 16, 16>}, {pipeline_mode = #tpu.pipeline_mode<synchronous>, transform_indices = @transform_5, window_bounds = array<i64: 4, 128, 32>}, {pipeline_mode = #tpu.pipeline_mode<synchronous>, transform_indices = @transform_6, window_bounds = array<i64: 32, 16>}, {transform_indices = @transform_7, window_bounds = array<i64: 1, 16, 16>}]} {
    %c0 = arith.constant 0 : index
    %c0_0 = arith.constant 0 : index
    %c0_1 = arith.constant 0 : index
    %0 = vector.load %arg1[%c0, %c0_0, %c0_1] : memref<1x72x128xf32, #tpu.memory_space<vmem>>, vector<1x72x128xf32>
    %1 = vector.shape_cast %0 : vector<1x72x128xf32> to vector<72x128xf32>
    %c0_2 = arith.constant 0 : index
    %c0_3 = arith.constant 0 : index
    %2 = vector.load %arg2[%c0_2, %c0_3] : memref<192x72xf32, #tpu.memory_space<vmem>>, vector<192x72xf32>
    %cst = arith.constant dense<0.000000e+00> : vector<192x128xf32>
    %3 = tpu.matmul %2, %1, %cst {dimension_numbers = #tpu.dot_dimension_numbers<[1], [0], [0], [1], [0, 0, 1, 1], [], []>, precision = #tpu.contract_precision<fp32>} : vector<192x72xf32>, vector<72x128xf32>, vector<192x128xf32> -> vector<192x128xf32>
    %4 = vector.extract_strided_slice %3 {offsets = [0, 0], sizes = [128, 128], strides = [1, 1]} : vector<192x128xf32> to vector<128x128xf32>
    %5 = vector.shape_cast %4 : vector<128x128xf32> to vector<16x8x128xf32>
    %6 = vector.extract_strided_slice %3 {offsets = [128, 0], sizes = [32, 128], strides = [1, 1]} : vector<192x128xf32> to vector<32x128xf32>
    %7 = vector.shape_cast %6 : vector<32x128xf32> to vector<4x8x128xf32>
    %8 = vector.extract_strided_slice %3 {offsets = [160, 0], sizes = [32, 128], strides = [1, 1]} : vector<192x128xf32> to vector<32x128xf32>
    %9 = vector.shape_cast %8 : vector<32x128xf32> to vector<4x8x128xf32>
    %c0_4 = arith.constant 0 : index
    %c0_5 = arith.constant 0 : index
    %c0_6 = arith.constant 0 : index
    %10 = vector.load %arg3[%c0_4, %c0_5, %c0_6] : memref<2x8x8xf32, #tpu.memory_space<vmem>>, vector<1x8x8xf32>
    %11 = vector.shape_cast %10 : vector<1x8x8xf32> to vector<8x8xf32>
    %c1 = arith.constant 1 : index
    %c0_7 = arith.constant 0 : index
    %c0_8 = arith.constant 0 : index
    %12 = vector.load %arg3[%c1, %c0_7, %c0_8] : memref<2x8x8xf32, #tpu.memory_space<vmem>>, vector<1x8x8xf32>
    %13 = vector.shape_cast %12 : vector<1x8x8xf32> to vector<8x8xf32>
    %14 = vector.shape_cast %7 : vector<4x8x128xf32> to vector<4x1x8x128xf32>
    %15 = vector.shape_cast %9 : vector<4x8x128xf32> to vector<4x8x1x128xf32>
    %16 = vector.broadcast %14 : vector<4x1x8x128xf32> to vector<4x8x8x128xf32>
    %17 = vector.broadcast %15 : vector<4x8x1x128xf32> to vector<4x8x8x128xf32>
    %18 = arith.addf %16, %17 : vector<4x8x8x128xf32>
    %cst_9 = arith.constant 0.000000e+00 : f32
    %19 = vector.broadcast %cst_9 : f32 to vector<4x8x8x128xf32>
    %20 = arith.cmpf ogt, %18, %19 : vector<4x8x8x128xf32>
    %cst_10 = arith.constant 2.000000e-01 : f32
    %21 = vector.broadcast %cst_10 : f32 to vector<4x8x8x128xf32>
    %22 = arith.mulf %21, %18 : vector<4x8x8x128xf32>
    %23 = arith.select %20, %18, %22 : vector<4x8x8x128xi1>, vector<4x8x8x128xf32>
    %24 = vector.shape_cast %13 : vector<8x8xf32> to vector<1x8x8x1xf32>
    %25 = vector.broadcast %24 : vector<1x8x8x1xf32> to vector<4x8x8x128xf32>
    %26 = arith.addf %23, %25 : vector<4x8x8x128xf32>
    %cst_11 = arith.constant dense<0xFF800000> : vector<4x8x128xf32>
    %27 = vector.multi_reduction <maximumf>, %26, %cst_11 [2] : vector<4x8x8x128xf32> to vector<4x8x128xf32>
    %28 = vector.shape_cast %27 : vector<4x8x128xf32> to vector<4x8x1x128xf32>
    %29 = vector.broadcast %28 : vector<4x8x1x128xf32> to vector<4x8x8x128xf32>
    %30 = arith.subf %26, %29 : vector<4x8x8x128xf32>
    %31 = math.exp %30 : vector<4x8x8x128xf32>
    %32 = vector.shape_cast %11 : vector<8x8xf32> to vector<1x8x8x1xf32>
    %33 = vector.broadcast %32 : vector<1x8x8x1xf32> to vector<4x8x8x128xf32>
    %34 = arith.mulf %31, %33 : vector<4x8x8x128xf32>
    %cst_12 = arith.constant dense<0.000000e+00> : vector<4x8x128xf32>
    %35 = vector.multi_reduction <add>, %34, %cst_12 [2] : vector<4x8x8x128xf32> to vector<4x8x128xf32>
    %36 = vector.shape_cast %35 : vector<4x8x128xf32> to vector<4x8x1x128xf32>
    %37 = tpu.reciprocal %36 {approx = true} : vector<4x8x1x128xf32> -> vector<4x8x1x128xf32>
    %38 = vector.broadcast %37 : vector<4x8x1x128xf32> to vector<4x8x8x128xf32>
    %39 = arith.mulf %34, %38 : vector<4x8x8x128xf32>
    %cst_13 = arith.constant dense<0.000000e+00> : vector<4x8x128xf32>
    %40 = vector.multi_reduction <add>, %39, %cst_13 [1] : vector<4x8x8x128xf32> to vector<4x8x128xf32>
    %41 = vector.shape_cast %5 : vector<16x8x128xf32> to vector<4x4x8x128xf32>
    %42 = vector.shape_cast %40 : vector<4x8x128xf32> to vector<4x1x8x128xf32>
    %43 = vector.broadcast %42 : vector<4x1x8x128xf32> to vector<4x4x8x128xf32>
    %44 = arith.mulf %41, %43 : vector<4x4x8x128xf32>
    %cst_14 = arith.constant dense<0.000000e+00> : vector<4x4x128xf32>
    %45 = vector.multi_reduction <add>, %44, %cst_14 [2] : vector<4x4x8x128xf32> to vector<4x4x128xf32>
    %46 = vector.shape_cast %45 : vector<4x4x128xf32> to vector<16x128xf32>
    %c0_15 = arith.constant 0 : index
    %c0_16 = arith.constant 0 : index
    %47 = vector.load %arg4[%c0_15, %c0_16] : memref<16x3xf32, #tpu.memory_space<vmem>>, vector<16x1xf32>
    %48 = vector.broadcast %47 : vector<16x1xf32> to vector<16x128xf32>
    %49 = arith.mulf %46, %48 : vector<16x128xf32>
    %c0_17 = arith.constant 0 : index
    %c1_18 = arith.constant 1 : index
    %50 = vector.load %arg4[%c0_17, %c1_18] : memref<16x3xf32, #tpu.memory_space<vmem>>, vector<16x1xf32>
    %51 = vector.broadcast %50 : vector<16x1xf32> to vector<16x128xf32>
    %52 = arith.addf %49, %51 : vector<16x128xf32>
    %cst_19 = arith.constant 0.000000e+00 : f32
    %53 = vector.broadcast %cst_19 : f32 to vector<16x128xf32>
    %54 = arith.cmpf ogt, %52, %53 : vector<16x128xf32>
    %cst_20 = arith.constant 0.000000e+00 : f32
    %55 = vector.broadcast %cst_20 : f32 to vector<16x128xf32>
    %56 = arith.minimumf %52, %55 : vector<16x128xf32>
    %57 = math.exp %56 : vector<16x128xf32>
    %cst_21 = arith.constant 1.000000e+00 : f32
    %58 = vector.broadcast %cst_21 : f32 to vector<16x128xf32>
    %59 = arith.subf %57, %58 : vector<16x128xf32>
    %60 = arith.select %54, %52, %59 : vector<16x128xi1>, vector<16x128xf32>
    %c0_22 = arith.constant 0 : index
    %c2 = arith.constant 2 : index
    %61 = vector.load %arg4[%c0_22, %c2] : memref<16x3xf32, #tpu.memory_space<vmem>>, vector<16x1xf32>
    %c0_23 = arith.constant 0 : index
    %c0_24 = arith.constant 0 : index
    %c0_25 = arith.constant 0 : index
    %62 = vector.load %arg6[%c0_23, %c0_24, %c0_25] : memref<4x128x32xf32, #tpu.memory_space<vmem>>, vector<1x128x32xf32>
    %63 = vector.shape_cast %62 : vector<1x128x32xf32> to vector<128x32xf32>
    %cst_26 = arith.constant dense<0.000000e+00> : vector<16x32xf32>
    %64 = tpu.matmul %60, %63, %cst_26 {dimension_numbers = #tpu.dot_dimension_numbers<[1], [0], [0], [1], [0, 0, 1, 1], [], []>, precision = #tpu.contract_precision<fp32>} : vector<16x128xf32>, vector<128x32xf32>, vector<16x32xf32> -> vector<16x32xf32>
    %c0_27 = arith.constant 0 : index
    %c0_28 = arith.constant 0 : index
    %c0_29 = arith.constant 0 : index
    %65 = vector.load %arg5[%c0_27, %c0_28, %c0_29] : memref<4x16x16xf32, #tpu.memory_space<vmem>>, vector<1x16x16xf32>
    %66 = vector.shape_cast %65 : vector<1x16x16xf32> to vector<16x16xf32>
    %cst_30 = arith.constant dense<0.000000e+00> : vector<16x32xf32>
    %67 = tpu.matmul %66, %64, %cst_30 {dimension_numbers = #tpu.dot_dimension_numbers<[1], [0], [0], [1], [0, 0, 1, 1], [], []>, precision = #tpu.contract_precision<fp32>} : vector<16x16xf32>, vector<16x32xf32>, vector<16x32xf32> -> vector<16x32xf32>
    %68 = vector.broadcast %61 : vector<16x1xf32> to vector<16x32xf32>
    %69 = arith.addf %68, %67 : vector<16x32xf32>
    %c1_31 = arith.constant 1 : index
    %c0_32 = arith.constant 0 : index
    %c0_33 = arith.constant 0 : index
    %70 = vector.load %arg6[%c1_31, %c0_32, %c0_33] : memref<4x128x32xf32, #tpu.memory_space<vmem>>, vector<1x128x32xf32>
    %71 = vector.shape_cast %70 : vector<1x128x32xf32> to vector<128x32xf32>
    %cst_34 = arith.constant dense<0.000000e+00> : vector<16x32xf32>
    %72 = tpu.matmul %60, %71, %cst_34 {dimension_numbers = #tpu.dot_dimension_numbers<[1], [0], [0], [1], [0, 0, 1, 1], [], []>, precision = #tpu.contract_precision<fp32>} : vector<16x128xf32>, vector<128x32xf32>, vector<16x32xf32> -> vector<16x32xf32>
    %c1_35 = arith.constant 1 : index
    %c0_36 = arith.constant 0 : index
    %c0_37 = arith.constant 0 : index
    %73 = vector.load %arg5[%c1_35, %c0_36, %c0_37] : memref<4x16x16xf32, #tpu.memory_space<vmem>>, vector<1x16x16xf32>
    %74 = vector.shape_cast %73 : vector<1x16x16xf32> to vector<16x16xf32>
    %cst_38 = arith.constant dense<0.000000e+00> : vector<16x32xf32>
    %75 = tpu.matmul %74, %72, %cst_38 {dimension_numbers = #tpu.dot_dimension_numbers<[1], [0], [0], [1], [0, 0, 1, 1], [], []>, precision = #tpu.contract_precision<fp32>} : vector<16x16xf32>, vector<16x32xf32>, vector<16x32xf32> -> vector<16x32xf32>
    %76 = arith.addf %69, %75 : vector<16x32xf32>
    %c2_39 = arith.constant 2 : index
    %c0_40 = arith.constant 0 : index
    %c0_41 = arith.constant 0 : index
    %77 = vector.load %arg6[%c2_39, %c0_40, %c0_41] : memref<4x128x32xf32, #tpu.memory_space<vmem>>, vector<1x128x32xf32>
    %78 = vector.shape_cast %77 : vector<1x128x32xf32> to vector<128x32xf32>
    %cst_42 = arith.constant dense<0.000000e+00> : vector<16x32xf32>
    %79 = tpu.matmul %60, %78, %cst_42 {dimension_numbers = #tpu.dot_dimension_numbers<[1], [0], [0], [1], [0, 0, 1, 1], [], []>, precision = #tpu.contract_precision<fp32>} : vector<16x128xf32>, vector<128x32xf32>, vector<16x32xf32> -> vector<16x32xf32>
    %c2_43 = arith.constant 2 : index
    %c0_44 = arith.constant 0 : index
    %c0_45 = arith.constant 0 : index
    %80 = vector.load %arg5[%c2_43, %c0_44, %c0_45] : memref<4x16x16xf32, #tpu.memory_space<vmem>>, vector<1x16x16xf32>
    %81 = vector.shape_cast %80 : vector<1x16x16xf32> to vector<16x16xf32>
    %cst_46 = arith.constant dense<0.000000e+00> : vector<16x32xf32>
    %82 = tpu.matmul %81, %79, %cst_46 {dimension_numbers = #tpu.dot_dimension_numbers<[1], [0], [0], [1], [0, 0, 1, 1], [], []>, precision = #tpu.contract_precision<fp32>} : vector<16x16xf32>, vector<16x32xf32>, vector<16x32xf32> -> vector<16x32xf32>
    %83 = arith.addf %76, %82 : vector<16x32xf32>
    %c3 = arith.constant 3 : index
    %c0_47 = arith.constant 0 : index
    %c0_48 = arith.constant 0 : index
    %84 = vector.load %arg6[%c3, %c0_47, %c0_48] : memref<4x128x32xf32, #tpu.memory_space<vmem>>, vector<1x128x32xf32>
    %85 = vector.shape_cast %84 : vector<1x128x32xf32> to vector<128x32xf32>
    %cst_49 = arith.constant dense<0.000000e+00> : vector<16x32xf32>
    %86 = tpu.matmul %60, %85, %cst_49 {dimension_numbers = #tpu.dot_dimension_numbers<[1], [0], [0], [1], [0, 0, 1, 1], [], []>, precision = #tpu.contract_precision<fp32>} : vector<16x128xf32>, vector<128x32xf32>, vector<16x32xf32> -> vector<16x32xf32>
    %c3_50 = arith.constant 3 : index
    %c0_51 = arith.constant 0 : index
    %c0_52 = arith.constant 0 : index
    %87 = vector.load %arg5[%c3_50, %c0_51, %c0_52] : memref<4x16x16xf32, #tpu.memory_space<vmem>>, vector<1x16x16xf32>
    %88 = vector.shape_cast %87 : vector<1x16x16xf32> to vector<16x16xf32>
    %cst_53 = arith.constant dense<0.000000e+00> : vector<16x32xf32>
    %89 = tpu.matmul %88, %86, %cst_53 {dimension_numbers = #tpu.dot_dimension_numbers<[1], [0], [0], [1], [0, 0, 1, 1], [], []>, precision = #tpu.contract_precision<fp32>} : vector<16x16xf32>, vector<16x32xf32>, vector<16x32xf32> -> vector<16x32xf32>
    %90 = arith.addf %83, %89 : vector<16x32xf32>
    %cst_54 = arith.constant 0.000000e+00 : f32
    %91 = vector.broadcast %cst_54 : f32 to vector<16x32xf32>
    %92 = arith.cmpf ogt, %90, %91 : vector<16x32xf32>
    %cst_55 = arith.constant 0.000000e+00 : f32
    %93 = vector.broadcast %cst_55 : f32 to vector<16x32xf32>
    %94 = arith.minimumf %90, %93 : vector<16x32xf32>
    %95 = math.exp %94 : vector<16x32xf32>
    %cst_56 = arith.constant 1.000000e+00 : f32
    %96 = vector.broadcast %cst_56 : f32 to vector<16x32xf32>
    %97 = arith.subf %95, %96 : vector<16x32xf32>
    %98 = arith.select %92, %90, %97 : vector<16x32xi1>, vector<16x32xf32>
    %c0_57 = arith.constant 0 : index
    %c0_58 = arith.constant 0 : index
    %99 = vector.load %arg7[%c0_57, %c0_58] : memref<32x16xf32, #tpu.memory_space<vmem>>, vector<32x16xf32>
    %cst_59 = arith.constant dense<0.000000e+00> : vector<16x16xf32>
    %100 = tpu.matmul %98, %99, %cst_59 {dimension_numbers = #tpu.dot_dimension_numbers<[1], [0], [0], [1], [0, 0, 1, 1], [], []>, precision = #tpu.contract_precision<fp32>} : vector<16x32xf32>, vector<32x16xf32>, vector<16x16xf32> -> vector<16x16xf32>
    %c0_60 = arith.constant 0 : index
    %c0_61 = arith.constant 0 : index
    %c0_62 = arith.constant 0 : index
    %101 = vector.load %arg8[%c0_60, %c0_61, %c0_62] : memref<1x16x16xf32, #tpu.memory_space<vmem>>, vector<1x16x16xf32>
    %102 = vector.shape_cast %101 : vector<1x16x16xf32> to vector<16x16xf32>
    %103 = vector.shape_cast %100 : vector<16x16xf32> to vector<1x16x16xf32>
    tpu.vector_store %arg8[%c0_60, %c0_61, %c0_62], %103 {strides = array<i32>} : memref<1x16x16xf32, #tpu.memory_space<vmem>>, vector<1x16x16xf32>,
    return
  }
  func.func @transform_0(%arg0: i32) -> (i32, i32, i32) {
    %c0_i32 = arith.constant 0 : i32
    %c0_i32_0 = arith.constant 0 : i32
    %c0_i32_1 = arith.constant 0 : i32
    return %arg0, %c0_i32, %c0_i32_0 : i32, i32, i32
  }
  func.func @transform_1(%arg0: i32) -> (i32, i32) {
    %c0_i32 = arith.constant 0 : i32
    %c0_i32_0 = arith.constant 0 : i32
    %c0_i32_1 = arith.constant 0 : i32
    return %c0_i32, %c0_i32_0 : i32, i32
  }
  func.func @transform_2(%arg0: i32) -> (i32, i32, i32) {
    %c0_i32 = arith.constant 0 : i32
    %c0_i32_0 = arith.constant 0 : i32
    %c0_i32_1 = arith.constant 0 : i32
    %c0_i32_2 = arith.constant 0 : i32
    return %c0_i32, %c0_i32_0, %c0_i32_1 : i32, i32, i32
  }
  func.func @transform_3(%arg0: i32) -> (i32, i32) {
    %c0_i32 = arith.constant 0 : i32
    %c0_i32_0 = arith.constant 0 : i32
    %c0_i32_1 = arith.constant 0 : i32
    return %c0_i32, %c0_i32_0 : i32, i32
  }
  func.func @transform_4(%arg0: i32) -> (i32, i32, i32) {
    %c0_i32 = arith.constant 0 : i32
    %c0_i32_0 = arith.constant 0 : i32
    %c0_i32_1 = arith.constant 0 : i32
    %c0_i32_2 = arith.constant 0 : i32
    return %c0_i32, %c0_i32_0, %c0_i32_1 : i32, i32, i32
  }
  func.func @transform_5(%arg0: i32) -> (i32, i32, i32) {
    %c0_i32 = arith.constant 0 : i32
    %c0_i32_0 = arith.constant 0 : i32
    %c0_i32_1 = arith.constant 0 : i32
    %c0_i32_2 = arith.constant 0 : i32
    return %c0_i32, %c0_i32_0, %c0_i32_1 : i32, i32, i32
  }
  func.func @transform_6(%arg0: i32) -> (i32, i32) {
    %c0_i32 = arith.constant 0 : i32
    %c0_i32_0 = arith.constant 0 : i32
    %c0_i32_1 = arith.constant 0 : i32
    return %c0_i32, %c0_i32_0 : i32, i32
  }
  func.func @transform_7(%arg0: i32) -> (i32, i32, i32) {
    %c0_i32 = arith.constant 0 : i32
    %c0_i32_0 = arith.constant 0 : i32
    %c0_i32_1 = arith.constant 0 : i32
    return %arg0, %c0_i32, %c0_i32_0 : i32, i32, i32
  }
}

</mosaic_0001>

<bundles_post_ra>
// kernel: forward.1
= control target key start
LH: loop header
LB: loop body
LE: loop exit
PB: predicated region body
PF: predicated region fallthrough
CT: control target
= control target key end

     0   :  { %s12710_s24 = smov 0   ;;  %s15931_s0 = inlined_call_operand.vmem [shape: f32[2,72,128], index: 0, kind: input, shape index: {}]   ;;  %s15932_s1 = inlined_call_operand.vmem [shape: f32[192,72], index: 1, kind: input, shape index: {}]   ;;  %s15933_s2 = inlined_call_operand.vmem [shape: f32[2,8,8], index: 2, kind: input, shape index: {}]   ;;  %s15934_s3 = inlined_call_operand.vmem [shape: f32[16,3], index: 3, kind: input, shape index: {}]   ;;  %s15935_s4 = inlined_call_operand.vmem [shape: f32[4,16,16], index: 4, kind: input, shape index: {}]   ;;  %s15936_s5 = inlined_call_operand.vmem [shape: f32[4,128,32], index: 5, kind: input, shape index: {}]   ;;  %s15937_s6 = inlined_call_operand.vmem [shape: f32[32,16], index: 6, kind: input, shape index: {}]   ;;  %s15938_s7 = inlined_call_operand.vmem [shape: f32[2,16,16], index: 7, kind: output, shape index: {}]  }
   0x1 LB: > { %s9003_s25 = sadd.s32 4294967295, %s12664_s24   ;;  %p9007_p0 = scmp.ge.s32.totalorder %s12664_s24, 1  ;;  %s12664_s24 = sphi %s12710_s24, %s17_s24  }
   0x2   : > { %p237_p1 = scmp.lt.s32.totalorder %s12664_s24, 3 }
   0x4   : > { %p238_p2 = pnand %p9007_p0, %p237_p1 }
   0x6   : > { %241 = sbr.rel (%p238_p2) target bundleno = 2632 (0xa48), region = 48 }
   0xd   : > { %p269_p3 = scmp.lt.s32.totalorder %s9003_s25, 1  ;;  %v288_v0 = vld [vmem:[%s15932_s1] sm:$0xff]  ;;  %vm312_vm0 = vcmask 588800   ;;  %v289_v1 = vld [vmem:[%s15932_s1 + $0x8] sm:$0xff]  ;;  %v290_v3 = vld [vmem:[%s15932_s1 + $0x10] sm:$0xff] }
   0xe   : > { %v314_v2 = vsel %vm312_vm0, %v288_v0, 0  ;;  %v291_v4 = vld [vmem:[%s15932_s1 + $0x18] sm:$0xff]  ;;  %v317_v6 = vsel %vm312_vm0, %v289_v1, 0  ;;  %v320_v8 = vsel %vm312_vm0, %v290_v3, 0  ;;  %v292_v12 = vld [vmem:[%s15932_s1 + $0x20] sm:$0xff]  ;;  %v293_v13 = vld [vmem:[%s15932_s1 + $0x28] sm:$0xff] }
   0xf   : > { %s16304_s25 = smov (!%p269_p3, %s9003_s25), 1  ;;  %v12733_v5 = vand.u32 4294901760, %v314_v2  ;;  %v323_v9 = vsel %vm312_vm0, %v291_v4, 0  ;;  %v12742_v10 = vand.u32 4294901760, %v317_v6  ;;  %v294_v14 = vld [vmem:[%s15932_s1 + $0x30] sm:$0xff]  ;;  %v12762_v18 = vand.u32 4294901760, %v320_v8 }
  0x10   : > { %s12473_s11 = smul.u32 72, %s16304_s25  ;;  %v12764_v19 = vand.u32 4294901760, %v323_v9  ;;  %v326_v29 = vsel %vm312_vm0, %v292_v12, 0  ;;  %v329_v37 = vsel %vm312_vm0, %v293_v13, 0  ;;  %v332_v38 = vsel %vm312_vm0, %v294_v14, 0  ;;  %v295_v47 = vld [vmem:[%s15932_s1 + $0x38] sm:$0xff] }
  0x11   : > { %v12738_v7 = vsub.f32 %v314_v2, %v12733_v5  ;;  %v12777_v28 = vsub.f32 %v317_v6, %v12742_v10  ;;  %v12796_v39 = vsub.f32 %v320_v8, %v12762_v18  ;;  %v12803_v42 = vand.u32 4294901760, %v326_v29  ;;  %v296_v61 = vld [vmem:[%s15932_s1 + $0x40] sm:$0xff]  ;;  %v297_v13 = vld [vmem:[%s15932_s1 + $0x48] sm:$0xff]  ;;  %s9086_s9 = sshll.u32 %s16304_s25, 4 }
  0x12   : > { %s12747_s14 = scalar_lea.vmem %s15931_s0, %s12473_s11  ;;  %v12799_v40 = vsub.f32 %v323_v9, %v12764_v19  ;;  %v12823_v51 = vand.u32 4294901760, %v329_v37  ;;  %v12825_v52 = vand.u32 4294901760, %v332_v38  ;;  %v335_v54 = vsel %vm312_vm0, %v295_v47, 0  ;;  %s278_s12 = scalar_lea.vmem %s15938_s7, %s9086_s9 }
  0x13   : > { %v15944_v11 = vand.u32 4294901760, %v12738_v7  ;;  %v279_v15 = vld [vmem:[%s12747_s14] sm:$0xff]  ;;  %v280_v16 = vld [vmem:[%s12747_s14 + $0x8] sm:$0xff]  ;;  %v281_v17 = vld [vmem:[%s12747_s14 + $0x10] sm:$0xff]  ;;  %v15943_v45 = vand.u32 4294901760, %v12777_v28  ;;  %v15941_v53 = vand.u32 4294901760, %v12796_v39  ;;  %v12845_v60 = vsub.f32 %v326_v29, %v12803_v42 }
  0x14   : > { %v386_v20 = vand.u32 4294901760, %v279_v15  ;;  %v389_v21 = vand.u32 4294901760, %v280_v16  ;;  %v282_v22 = vld [vmem:[%s12747_s14 + $0x18] sm:$0xff]  ;;  %v392_v23 = vand.u32 4294901760, %v281_v17  ;;  %v12768_v24 = vld [vmem:[%s12747_s14 + $0x20] sm:$0xff]  ;;  %v12771_v25 = vld [vmem:[%s12747_s14 + $0x28] sm:$0xff]  ;;  %v12863_v3 = vsub.f32 %v329_v37, %v12823_v51 }
  0x15   : > { %v462_v26 = vsub.f32 %v12738_v7, %v15944_v11  ;;  %v395_v27 = vand.u32 4294901760, %v282_v22  ;;  %v398_v31 = vand.u32 4294901760, %v12768_v24  ;;  %v401_v32 = vand.u32 4294901760, %v12771_v25  ;;  %v12785_v33 = vld [vmem:[%s12747_s14 + $0x30] sm:$0xff]  ;;  %v12788_v34 = vld [vmem:[%s12747_s14 + $0x38] sm:$0xff]  ;;  %v12860_v2 = vld [vmem:[%s12747_s14 + $0x40] sm:$0xff] }
  0x16   : > { %v12780_v30 = vpack.c.bf16 %v389_v21, %v386_v20  ;;  %v12801_v41 = vsub.f32 %v279_v15, %v386_v20  ;;  %v404_v43 = vand.u32 4294901760, %v12785_v33  ;;  %v15952_v44 = vand.u32 4294901760, %v12788_v34  ;;  %v299_v37 = vld [vmem:[%s15932_s1 + $0x58] sm:$0xff] }
  0x17   : > { %v12790_v35 = vpack.c.bf16 %v395_v27, %v392_v23  ;;  %v463_v36 = vand.u32 4294901760, %v462_v26  ;;  %v12809_v46 = vsub.f32 %v280_v16, %v389_v21  ;;  %v12819_v48 = vpack.c.bf16 %v401_v32, %v398_v31 }
  0x18   : > { %11248 = vmatprep.subr.bf16.mxu0 %v12780_v30  ;;  %v15951_v49 = vand.u32 4294901760, %v12801_v41  ;;  %v12829_v55 = vsub.f32 %v281_v17, %v392_v23  ;;  %v12831_v56 = vsub.f32 %v282_v22, %v395_v27  ;;  %v12838_v57 = vpack.c.bf16 %v15952_v44, %v404_v43  ;;  %v298_v17 = vld [vmem:[%s15932_s1 + $0x50] sm:$0xff] }
  0x19   : > { %11250 = vmatpush3.bf16.msra.mxu0 %v12780_v30  ;;  %9867 = vmatprep.mubr.f32.mxu0 %v463_v36  ;;  %v15950_v50 = vand.u32 4294901760, %v12809_v46  ;;  %v472_v58 = vsub.f32 %v12777_v28, %v15943_v45  ;;  %v15939_v59 = vand.u32 4294901760, %v12799_v40  ;;  %v12866_v4 = vsub.f32 %v332_v38, %v12825_v52 }
  0x1a   : > { %11252 = vmatprep.subr.bf16.mxu0 %v12790_v35  ;;  %16056 = vst [vmem:[#allocation2_spill] sm:$0xff] %v12838_v57  ;;  %v703_v62 = vsub.f32 %v12801_v41, %v15951_v49  ;;  %v15949_v0 = vand.u32 4294901760, %v12829_v55  ;;  %v15948_v1 = vand.u32 4294901760, %v12831_v56  ;;  %v12868_v6 = vand.u32 4294901760, %v335_v54 }
  0x1b   : > { %v710_v63 = vsub.f32 %v12809_v46, %v15950_v50  ;;  %16057 = vst [vmem:[#allocation3_spill] sm:$0xff] %v12866_v4  ;;  %v338_v12 = vsel %vm312_vm0, %v296_v61, 0  ;;  %v482_v14 = vsub.f32 %v12796_v39, %v15941_v53  ;;  %v12887_v15 = vsub.f32 %v12799_v40, %v15939_v59  ;;  %v300_v59 = vld [vmem:[%s15932_s1 + $0x60] sm:$0xff] }
  0x1c   : > { %v717_v8 = vsub.f32 %v12829_v55, %v15949_v0  ;;  %v724_v9 = vsub.f32 %v12831_v56, %v15948_v1  ;;  %v15940_v16 = vand.u32 4294901760, %v12845_v60  ;;  %v12895_v20 = vand.u32 4294901760, %v12860_v2 }
  0x1d   : > { %11254 = vmatpush3.bf16.msra.mxu0 %v12790_v35  ;;  %v473_v21 = vand.u32 4294901760, %v472_v58  ;;  %v704_v22 = vand.u32 4294901760, %v703_v62  ;;  %v711_v23 = vand.u32 4294901760, %v710_v63  ;;  %v15942_v26 = vand.u32 4294901760, %v12863_v3 }
  0x1e   : > { %11256 = vmatprep.subr.bf16.mxu0 %v12819_v48  ;;  %v15945_v27 = vand.u32 4294901760, %v12866_v4  ;;  %v12899_v29 = vand.u32 4294901760, %v338_v12  ;;  %v341_v36 = vsel %vm312_vm0, %v297_v13, 0  ;;  %v12906_v38 = vsub.f32 %v335_v54, %v12868_v6 }
  0x1f   : > { %v718_v47 = vand.u32 4294901760, %v717_v8  ;;  %v725_v61 = vand.u32 4294901760, %v724_v9  ;;  %v344_v58 = vsel %vm312_vm0, %v298_v17, 0  ;;  %v483_v62 = vand.u32 4294901760, %v482_v14 }
  0x20   : > { %16058 = vst [vmem:[#allocation4_spill] sm:$0xff] %v12906_v38  ;;  %v493_v63 = vand.u32 4294901760, %v12887_v15  ;;  %v502_v13 = vsub.f32 %v12845_v60, %v15940_v16  ;;  %v12920_v54 = vsub.f32 %v12768_v24, %v398_v31  ;;  %v11263_v8 = vpack.c.bf16 %v711_v23, %v704_v22  ;;  %v301_v15 = vld [vmem:[%s15932_s1 + $0x68] sm:$0xff] }
  0x21   : > { %11258 = vmatpush3.bf16.msra.mxu0 %v12819_v48  ;;  %v12923_v9 = vand.u32 4294901760, %v341_v36  ;;  %v347_v14 = vsel %vm312_vm0, %v299_v37, 0  ;;  %v12932_v17 = vsub.f32 %v12771_v25, %v401_v32  ;;  %v512_v24 = vsub.f32 %v12863_v3, %v15942_v26  ;;  %v302_v37 = vld [vmem:[%s15932_s1 + $0x70] sm:$0xff] }
  0x22   : > { %11260 = vmatprep.subr.bf16.mxu0 %v12838_v57  ;;  %v12938_v31 = vsub.f32 %v338_v12, %v12899_v29  ;;  %v12940_v22 = vand.u32 4294901760, %v344_v58  ;;  %v15946_v23 = vand.u32 4294901760, %v12920_v54  ;;  %v15953_v16 = vand.u32 4294901760, %v12906_v38 }
  0x23   : > { %v11267_v53 = vpack.c.bf16 %v725_v61, %v718_v47  ;;  %v350_v25 = vsel %vm312_vm0, %v300_v59, 0  ;;  %v15947_v32 = vand.u32 4294901760, %v12932_v17  ;;  %v522_v12 = vsub.f32 %v12866_v4, %v15945_v27 }
  0x24   : > { %16059 = vst [vmem:[#allocation5_spill] sm:$0xff] %v12938_v31  ;;  %v12953_v26 = vand.u32 4294901760, %v347_v14  ;;  %v353_v45 = vsel %vm312_vm0, %v301_v15, 0  ;;  %v731_v11 = vsub.f32 %v12920_v54, %v15946_v23  ;;  %v503_v47 = vand.u32 4294901760, %v502_v13  ;;  %v303_v15 = vld [vmem:[%s15932_s1 + $0x78] sm:$0xff] }
  0x25   : > { %11262 = vmatpush3.bf16.msra.mxu0 %v12838_v57  ;;  %v12960_v59 = vsub.f32 %v341_v36, %v12923_v9  ;;  %v738_v61 = vsub.f32 %v12932_v17, %v15947_v32  ;;  %v356_v27 = vsel %vm312_vm0, %v302_v37, 0  ;;  %v15954_v23 = vand.u32 4294901760, %v12938_v31  ;;  %v304_v32 = vld [vmem:[%s15932_s1 + $0x80] sm:$0xff] }
  0x26   : > { %9865 = vmatprep.subr.mxu0 %v12895_v20  ;;  %v12973_v13 = vand.u32 4294901760, %v350_v25  ;;  %v732_v36 = vand.u32 4294901760, %v731_v11  ;;  %v513_v1 = vand.u32 4294901760, %v512_v24  ;;  %v532_v37 = vsub.f32 %v12906_v38, %v15953_v16  ;;  %v305_v16 = vld [vmem:[%s15932_s1 + $0x88] sm:$0xff] }
  0x27   : > { %16060 = vst [vmem:[#allocation6_spill] sm:$0xff] %v12960_v59  ;;  %v523_v0 = vand.u32 4294901760, %v522_v12  ;;  %v12986_v50 = vand.u32 4294901760, %v356_v27  ;;  %v359_v11 = vsel %vm312_vm0, %v303_v15, 0  ;;  %v15957_v49 = vand.u32 4294901760, %v12960_v59 }
  0x28   : > { %v362_v44 = vsel %vm312_vm0, %v304_v32, 0  ;;  %v12997_v12 = vsub.f32 %v12785_v33, %v404_v43  ;;  %v16064_v32 = vand.u32 4294901760, %v12788_v34  ;;  %v306_v33 = vld [vmem:[%s15932_s1 + $0x90] sm:$0xff]  ;;  %v533_v43 = vand.u32 4294901760, %v532_v37 }
  0x29   : > { %9866 = vmatpush3.msra.mxu0 %v12895_v20 }
  0x2a   : > { %9868 = vmatmul.mubr.f32.vlgmr.msra.gmra.mrb[0].mxu0 %v473_v21  ;;  %11264 = vmatprep.subr.bf16.mxu0 %v11263_v8  ;;  %v12971_v21 = vsub.f32 %v344_v58, %v12940_v22  ;;  %v12984_v58 = vsub.f32 %v347_v14, %v12953_v26  ;;  %v542_v14 = vsub.f32 %v12938_v31, %v15954_v23 }
  0x2b   : > { %9870 = vmatprep.mubr.f32.mxu0 %v483_v62  ;;  %11266 = vmatpush3.bf16.msra.mxu0 %v11263_v8  ;;  %v12981_v62 = vand.u32 4294901760, %v353_v45  ;;  %v739_v8 = vand.u32 4294901760, %v738_v61  ;;  %v13004_v61 = vsub.f32 %v350_v25, %v12973_v13  ;;  %v13009_v15 = vsub.f32 %v12788_v34, %v16064_v32 }
  0x2c   : > { %16061 = vst [vmem:[#allocation7_spill] sm:$0xff] %v12971_v21  ;;  %11268 = vmatprep.subr.bf16.mxu0 %v11267_v53  ;;  %16062 = vst [vmem:[#allocation8_spill] sm:$0xff] %v12984_v58  ;;  %v13021_v25 = vsub.f32 %v356_v27, %v12986_v50  ;;  %v365_v34 = vsel %vm312_vm0, %v305_v16, 0  ;;  %v368_v27 = vsel %vm312_vm0, %v306_v33, 0  ;;  %v16067_v31 = vand.u32 4294901760, %v12971_v21 }
  0x2d   : > { %v11271_v24 = vpack.c.bf16 %v739_v8, %v732_v36  ;;  %16063 = vst [vmem:[#allocation9_spill] sm:$0xff] %v13004_v61  ;;  %v15960_v36 = vand.u32 4294901760, %v12997_v12  ;;  %v13023_v8 = vand.u32 4294901760, %v362_v44  ;;  %v15961_v32 = vand.u32 4294901760, %v13009_v15 }
  0x2e   : > { %9871 = vmatmul.mubr.f32.gmra.mrb[2].mxu0 %v493_v63  ;;  %16066 = vst [vmem:[#allocation11_spill] sm:$0xff] %v13021_v25  ;;  %v543_v63 = vand.u32 4294901760, %v542_v14  ;;  %v562_v16 = vsub.f32 %v12971_v21, %v16067_v31  ;;  %v307_v14 = vld [vmem:[%s15932_s1 + $0x98] sm:$0xff]  ;;  %v16071_v31 = vand.u32 4294901760, %v13004_v61 }
  0x2f   : > { %9873 = vmatprep.mubr.f32.mxu0 %v503_v47  ;;  %11270 = vmatpush3.bf16.msra.mxu0 %v11267_v53  ;;  %v13015_v47 = vsub.f32 %v353_v45, %v12981_v62  ;;  %v13017_v53 = vand.u32 4294901760, %v359_v11  ;;  %v552_v45 = vsub.f32 %v12960_v59, %v15957_v49  ;;  %v745_v23 = vsub.f32 %v12997_v12, %v15960_v36 }
  0x30   : > { %11272 = vmatprep.subr.bf16.mxu0 %v11271_v24  ;;  %v752_v49 = vsub.f32 %v13009_v15, %v15961_v32  ;;  %v13046_v36 = vand.u32 4294901760, %v365_v34  ;;  %v563_v21 = vand.u32 4294901760, %v562_v16  ;;  %v13077_v16 = vsub.f32 %v12860_v2, %v12895_v20 }
  0x31   : > { %16065 = vst [vmem:[#allocation10_spill] sm:$0xff] %v13015_v47  ;;  %v13044_v59 = vsub.f32 %v359_v11, %v13017_v53  ;;  %v308_v11 = vld [vmem:[%s15932_s1 + $0xa0] sm:$0xff]  ;;  %v553_v32 = vand.u32 4294901760, %v552_v45  ;;  %v16072_v57 = vand.u32 4294901760, %v13015_v47 }
  0x32   : > { %9874 = vmatmul.mubr.f32.gmra.mrb[4].mxu0 %v513_v1  ;;  %v753_v33 = vand.u32 4294901760, %v752_v49  ;;  %v13055_v1 = vand.u32 4294901760, %v368_v27  ;;  %v371_v49 = vsel %vm312_vm0, %v307_v14, 0  ;;  %v374_v45 = vsel %vm312_vm0, %v308_v11, 0  ;;  %v310_v11 = vld [vmem:[%s15932_s1 + $0xb0] sm:$0xff] }
  0x33   : > { %9876 = vmatprep.mubr.f32.mxu0 %v523_v0  ;;  %11274 = vmatpush3.bf16.msra.mxu0 %v11271_v24  ;;  %16068 = vst [vmem:[#allocation12_spill] sm:$0xff] %v13044_v59  ;;  %v746_v0 = vand.u32 4294901760, %v745_v23  ;;  %v13053_v24 = vsub.f32 %v362_v44, %v13023_v8  ;;  %v16070_v23 = vand.u32 4294901760, %v12984_v58  ;;  %v582_v44 = vsub.f32 %v13004_v61, %v16071_v31 }
  0x34   : > { %v592_v4 = vsub.f32 %v13015_v47, %v16072_v57  ;;  %v13084_v57 = vsub.f32 %v365_v34, %v13046_v36  ;;  %v13097_v34 = vand.u32 4294901760, %v374_v45 }
  0x35   : > { %16069 = vst [vmem:[#allocation13_spill] sm:$0xff] %v13053_v24  ;;  %v572_v37 = vsub.f32 %v12984_v58, %v16070_v23  ;;  %v11275_v38 = vpack.c.bf16 %v753_v33, %v746_v0  ;;  %v16073_v0 = vand.u32 4294901760, %v13021_v25  ;;  %v13087_v33 = vsub.f32 %v368_v27, %v13055_v1 }
  0x36   : > { %9877 = vmatmul.mubr.f32.gmra.mrb[6].mxu0 %v533_v43  ;;  %v13092_v23 = vand.u32 4294901760, %v371_v49  ;;  %v13095_v43 = vand.u32 4294901760, %v13077_v16  ;;  %v593_v27 = vand.u32 4294901760, %v592_v4  ;;  %v15984_v4 = vand.u32 4294901760, %v13084_v57 }
  0x37   : > { %9879 = vmatprep.mubr.f32.mxu0 %v543_v63  ;;  %v309_v63 = vld [vmem:[%s15932_s1 + $0xa8] sm:$0xff]  ;;  %v602_v14 = vsub.f32 %v13021_v25, %v16073_v0  ;;  %11276 = vmatprep.subr.bf16.mxu0 %v11275_v38  ;;  %16074 = vst [vmem:[#allocation14_spill] sm:$0xff] %v13087_v33  ;;  %v573_v2 = vand.u32 4294901760, %v572_v37  ;;  %v583_v0 = vand.u32 4294901760, %v582_v44  ;;  %v16076_v25 = vand.u32 4294901760, %v13044_v59 }
  0x38   : > { %16075 = vst [vmem:[#allocation15_spill] sm:$0xff] %v13095_v43  ;;  %11278 = vmatpush3.bf16.msra.mxu0 %v11275_v38  ;;  %v377_v31 = vsel %vm312_vm0, %v309_v63, 0  ;;  %v759_v37 = vsub.f32 %v13077_v16, %v13095_v43  ;;  %v16077_v38 = vand.u32 4294901760, %v13053_v24  ;;  %v16079_v63 = vand.u32 4294901760, %v12801_v41 }
  0x39   : > { %v612_v47 = vsub.f32 %v13044_v59, %v16076_v25  ;;  %v603_v44 = vand.u32 4294901760, %v602_v14  ;;  %v13115_v25 = vsub.f32 %v371_v49, %v13092_v23  ;;  %v11279_v59 = vpack.c.bf16 %v12809_v46, %v12801_v41 }
  0x3a   : > { %9880 = vmatmul.mubr.f32.gmra.mrb[8].mxu0 %v553_v32  ;;  %v380_v32 = vsel %vm312_vm0, %v310_v11, 0  ;;  %v622_v61 = vsub.f32 %v13053_v24, %v16077_v38  ;;  %v13117_v11 = vand.u32 4294901760, %v377_v31  ;;  %v760_v43 = vand.u32 4294901760, %v759_v37 }
  0x3b   : > { %9882 = vmatprep.mubr.f32.mxu0 %v563_v21  ;;  %v311_v21 = vld [vmem:[%s15932_s1 + $0xb8] sm:$0xff]  ;;  %16078 = vst [vmem:[#allocation16_spill] sm:$0xff] %v13115_v25  ;;  %v13122_v14 = vsub.f32 %v374_v45, %v13097_v34  ;;  %v13124_v58 = vand.u32 4294901760, %v380_v32  ;;  %v632_v37 = vsub.f32 %v13084_v57, %v15984_v4  ;;  %v15985_v45 = vand.u32 4294901760, %v13115_v25 }
  0x3c   : > { %v383_v38 = vsel %vm312_vm0, %v311_v21, 0  ;;  %9919 = vmatprep.subr.mxu0 %v760_v43  ;;  %v13138_v24 = vsub.f32 %v377_v31, %v13117_v11  ;;  %v623_v41 = vand.u32 4294901760, %v622_v61  ;;  %v16082_v61 = vand.u32 4294901760, %v12829_v55 }
  0x3d   : > { %9920 = vmatpush3.msra.mxu0 %v760_v43  ;;  %v13140_v21 = vand.u32 4294901760, %v383_v38  ;;  %v13147_v43 = vsub.f32 %v380_v32, %v13124_v58  ;;  %v652_v31 = vsub.f32 %v13115_v25, %v15985_v45 }
  0x3e   : > { %9883 = vmatmul.mubr.f32.gmra.mrb[10].mxu0 %v573_v2  ;;  %v16080_v2 = vand.u32 4294901760, %v12809_v46  ;;  %11280 = vmatprep.subr.bf16.mxu0 %v11279_v59  ;;  %v16081_v46 = vand.u32 4294901760, %v13087_v33 }
  0x3f   : > { %9885 = vmatprep.mubr.f32.mxu0 %v583_v0  ;;  %v613_v0 = vand.u32 4294901760, %v612_v47  ;;  %v633_v47 = vand.u32 4294901760, %v632_v37  ;;  %v653_v45 = vand.u32 4294901760, %v652_v31 }
  0x40   : > { %v13131_v49 = vpack.c.bf16 %v16080_v2, %v16079_v63  ;;  %v642_v63 = vsub.f32 %v13087_v33, %v16081_v46  ;;  %v661_v2 = vand.u32 4294901760, %v13122_v14  ;;  %v16083_v46 = vand.u32 4294901760, %v12831_v56 }
  0x42   : > { %9886 = vmatmul.mubr.f32.gmra.mrb[12].mxu0 %v593_v27  ;;  %v15990_v27 = vand.u32 4294901760, %v13138_v24  ;;  %v13160_v4 = vpack.c.bf16 %v16083_v46, %v16082_v61  ;;  %v643_v32 = vand.u32 4294901760, %v642_v63  ;;  %v662_v37 = vsub.f32 %v13122_v14, %v661_v2 }
  0x43   : > { %9888 = vmatprep.mubr.f32.mxu0 %v603_v44  ;;  %v13154_v44 = vsub.f32 %v383_v38, %v13140_v21  ;;  %v16084_v46 = vand.u32 4294901760, %v12920_v54 }
  0x44   : > { %v672_v38 = vsub.f32 %v13138_v24, %v15990_v27  ;;  %v663_v33 = vand.u32 4294901760, %v662_v37  ;;  %v16085_v27 = vand.u32 4294901760, %v12932_v17  ;;  %v16087_v37 = vand.u32 4294901760, %v13009_v15 }
  0x45   : > { %v15991_v25 = vand.u32 4294901760, %v13154_v44 }
  0x46   : > { %9889 = vmatmul.mubr.f32.gmra.mrb[14].mxu0 %v613_v0  ;;  %v681_v0 = vand.u32 4294901760, %v13147_v43  ;;  %v673_v63 = vand.u32 4294901760, %v672_v38 }
  0x47   : > { %9891 = vmatprep.mubr.f32.mxu0 %v623_v41  ;;  %v692_v61 = vsub.f32 %v13154_v44, %v15991_v25  ;;  %v16106_v25 = vand.u32 4294901760, %v12845_v60 }
  0x48   : > { %v682_v41 = vsub.f32 %v13147_v43, %v681_v0 }
  0x49   : > { %v693_v31 = vand.u32 4294901760, %v692_v61  ;;  %v16097_v61 = vld [vmem:[#allocation11_spill] sm:$0xff] }
  0x4a   : > { %9892 = vmatmul.mubr.f32.gmra.mrb[16].mxu0 %v633_v47  ;;  %v683_v47 = vand.u32 4294901760, %v682_v41  ;;  %v16095_v41 = vld [vmem:[#allocation9_spill] sm:$0xff] }
  0x4b   : > { %9894 = vmatprep.mubr.f32.mxu0 %v643_v32  ;;  %v13180_v32 = vpack.c.bf16 %v16085_v27, %v16084_v46  ;;  %v11287_v27 = vpack.c.bf16 %v12932_v17, %v12920_v54  ;;  %v16089_v54 = vld [vmem:[#allocation2_spill] sm:$0xff]  ;;  %v16090_v17 = vld [vmem:[#allocation4_spill] sm:$0xff] }
  0x4c   : > { %v16100_v46 = vld [vmem:[#allocation14_spill] sm:$0xff] }
  0x4e   : > { %9895 = vmatmul.mubr.f32.gmra.mrb[18].mxu0 %v653_v45  ;;  %v11283_v45 = vpack.c.bf16 %v12831_v56, %v12829_v55  ;;  %v11291_v55 = vpack.c.bf16 %v13009_v15, %v12997_v12  ;;  %v16088_v56 = vld [vmem:[#allocation3_spill] sm:$0xff] }
  0x4f   : > { %9897 = vmatprep.mubr.f32.mxu0 %v663_v33  ;;  %v16086_v33 = vand.u32 4294901760, %v12997_v12  ;;  %v16092_v12 = vld [vmem:[#allocation6_spill] sm:$0xff]  ;;  %v16093_v15 = vld [vmem:[#allocation7_spill] sm:$0xff] }
  0x51   : > { %v13190_v38 = vpack.c.bf16 %v16087_v37, %v16086_v33  ;;  %v16102_v33 = vand.u32 4294901760, %v12738_v7  ;;  %v16103_v37 = vand.u32 4294901760, %v12777_v28 }
  0x52   : > { %9898 = vmatmul.mubr.f32.gmra.mrb[20].mxu0 %v673_v63  ;;  %v16096_v63 = vld [vmem:[#allocation10_spill] sm:$0xff] }
  0x53   : > { %9900 = vmatprep.mubr.f32.mxu0 %v683_v47  ;;  %v16098_v47 = vld [vmem:[#allocation12_spill] sm:$0xff] }
  0x56   : > { %9901 = vmatmul.mubr.f32.gmra.mrb[22].mxu0 %v693_v31  ;;  %v16099_v31 = vld [vmem:[#allocation13_spill] sm:$0xff] }
  0x57   : > { %9921 = vmatprep.mubr.f32.mxu0 %v12733_v5 }
  0x5a   : > { %9922 = vmatmul.mubr.f32.vlgmr.msra.gmra.mrb[0].mxu0 %v12742_v10 }
  0x5b   : > { %9924 = vmatprep.mubr.f32.mxu0 %v12762_v18  ;;  %11282 = vmatpush3.bf16.msra.mxu0 %v11279_v59  ;;  %v16091_v59 = vld [vmem:[#allocation5_spill] sm:$0xff] }
  0x5c   : > { %11284 = vmatprep.subr.bf16.mxu0 %v11283_v45 }
  0x5e   : > { %9925 = vmatmul.mubr.f32.gmra.mrb[2].mxu0 %v12764_v19 }
  0x5f   : > { %9927 = vmatprep.mubr.f32.mxu0 %v12803_v42  ;;  %11286 = vmatpush3.bf16.msra.mxu0 %v11283_v45  ;;  %v16101_v45 = vld [vmem:[#allocation16_spill] sm:$0xff] }
  0x60   : > { %11288 = vmatprep.subr.bf16.mxu0 %v11287_v27 }
  0x62   : > { %9928 = vmatmul.mubr.f32.gmra.mrb[4].mxu0 %v12823_v51 }
  0x63   : > { %9930 = vmatprep.mubr.f32.mxu0 %v12825_v52  ;;  %11290 = vmatpush3.bf16.msra.mxu0 %v11287_v27  ;;  %v16104_v27 = vand.u32 4294901760, %v12796_v39 }
  0x64   : > { %11292 = vmatprep.subr.bf16.mxu0 %v11291_v55 }
  0x66   : > { %9931 = vmatmul.mubr.f32.gmra.mrb[6].mxu0 %v12868_v6 }
  0x67   : > { %9933 = vmatprep.mubr.f32.mxu0 %v12899_v29  ;;  %11294 = vmatpush3.bf16.msra.mxu0 %v11291_v55  ;;  %v16105_v55 = vand.u32 4294901760, %v12799_v40 }
  0x68   : > { %9973 = vmatprep.subr.mxu0 %v13077_v16 }
  0x6a   : > { %9934 = vmatmul.mubr.f32.gmra.mrb[8].mxu0 %v12923_v9 }
  0x6b   : > { %9936 = vmatprep.mubr.f32.mxu0 %v12940_v22  ;;  %9974 = vmatpush3.msra.mxu0 %v13077_v16  ;;  %v16094_v16 = vld [vmem:[#allocation8_spill] sm:$0xff] }
  0x6c   : > { %11296 = vmatprep.subr.bf16.mxu0 %v12780_v30 }
  0x6e   : > { %9937 = vmatmul.mubr.f32.gmra.mrb[10].mxu0 %v12953_v26 }
  0x6f   : > { %9939 = vmatprep.mubr.f32.mxu0 %v12973_v13 }
  0x72   : > { %9940 = vmatmul.mubr.f32.gmra.mrb[12].mxu0 %v12981_v62 }
  0x73   : > { %9942 = vmatprep.mubr.f32.mxu0 %v12986_v50 }
  0x76   : > { %9943 = vmatmul.mubr.f32.gmra.mrb[14].mxu0 %v13017_v53 }
  0x77   : > { %9945 = vmatprep.mubr.f32.mxu0 %v13023_v8 }
  0x7a   : > { %9946 = vmatmul.mubr.f32.gmra.mrb[16].mxu0 %v13046_v36 }
  0x7b   : > { %9948 = vmatprep.mubr.f32.mxu0 %v13055_v1 }
  0x7e   : > { %9949 = vmatmul.mubr.f32.gmra.mrb[18].mxu0 %v13092_v23 }
  0x7f   : > { %9951 = vmatprep.mubr.f32.mxu0 %v13097_v34 }
  0x82   : > { %9952 = vmatmul.mubr.f32.gmra.mrb[20].mxu0 %v13117_v11 }
  0x83   : > { %9954 = vmatprep.mubr.f32.mxu0 %v13124_v58 }
  0x86   : > { %9955 = vmatmul.mubr.f32.gmra.mrb[22].mxu0 %v13140_v21 }
  0x87   : > { %9975 = vmatprep.mubr.f32.mxu0 %v12738_v7  ;;  %v16107_v7 = vand.u32 4294901760, %v12863_v3 }
  0x8a   : > { %9976 = vmatmul.mubr.f32.vlgmr.msra.gmra.mrb[0].mxu0 %v12777_v28  ;;  %v16108_v28 = vand.u32 4294901760, %v16088_v56 }
  0x8b   : > { %9978 = vmatprep.mubr.f32.mxu0 %v12796_v39  ;;  %11298 = vmatpush3.bf16.msra.mxu0 %v12780_v30  ;;  %v16109_v39 = vand.u32 4294901760, %v16090_v17 }
  0x8c   : > { %11300 = vmatprep.subr.bf16.mxu0 %v12790_v35 }
  0x8e   : > { %9979 = vmatmul.mubr.f32.gmra.mrb[2].mxu0 %v12799_v40  ;;  %v1935_v40 = vlaneseq }
  0x8f   : > { %9981 = vmatprep.mubr.f32.mxu0 %v12845_v60  ;;  %11302 = vmatpush3.bf16.msra.mxu0 %v12790_v35  ;;  %v16110_v60 = vand.u32 4294901760, %v16091_v59 }
  0x90   : > { %11304 = vmatprep.subr.bf16.mxu0 %v12819_v48 }
  0x92   : > { %9982 = vmatmul.mubr.f32.gmra.mrb[4].mxu0 %v12863_v3  ;;  %v13281_v3 = vshrl.u32 %v1935_v40, 7 }
  0x93   : > { %9984 = vmatprep.mubr.f32.mxu0 %v16088_v56  ;;  %11306 = vmatpush3.bf16.msra.mxu0 %v12819_v48 }
  0x94   : > { %11308 = vmatprep.subr.bf16.mxu0 %v16089_v54  ;;  %v2431_v56 = vsub.s32 2, %v13281_v3 }
  0x96   : > { %9985 = vmatmul.mubr.f32.gmra.mrb[6].mxu0 %v16090_v17  ;;  %v2424_v17 = vsub.s32 1, %v13281_v3 }
  0x97   : > { %9987 = vmatprep.mubr.f32.mxu0 %v16091_v59  ;;  %11310 = vmatpush3.bf16.msra.mxu0 %v16089_v54  ;;  %v2438_v59 = vsub.s32 3, %v13281_v3 }
  0x98   : > { %10027 = vmatprep.subr.mxu0 %v12895_v20 }
  0x9a   : > { %9988 = vmatmul.mubr.f32.gmra.mrb[8].mxu0 %v16092_v12 }
  0x9b   : > { %9990 = vmatprep.mubr.f32.mxu0 %v16093_v15  ;;  %10028 = vmatpush3.msra.mxu0 %v12895_v20 }
  0x9c   : > { %11312 = vmatprep.subr.bf16.mxu0 %v13131_v49 }
  0x9e   : > { %9991 = vmatmul.mubr.f32.gmra.mrb[10].mxu0 %v16094_v16 }
  0x9f   : > { %9993 = vmatprep.mubr.f32.mxu0 %v16095_v41 }
  0xa2   : > { %9994 = vmatmul.mubr.f32.gmra.mrb[12].mxu0 %v16096_v63 }
  0xa3   : > { %9996 = vmatprep.mubr.f32.mxu0 %v16097_v61 }
  0xa6   : > { %9997 = vmatmul.mubr.f32.gmra.mrb[14].mxu0 %v16098_v47 }
  0xa7   : > { %9999 = vmatprep.mubr.f32.mxu0 %v16099_v31 }
  0xaa   : > { %10000 = vmatmul.mubr.f32.gmra.mrb[16].mxu0 %v13084_v57 }
  0xab   : > { %10002 = vmatprep.mubr.f32.mxu0 %v16100_v46 }
  0xae   : > { %10003 = vmatmul.mubr.f32.gmra.mrb[18].mxu0 %v16101_v45 }
  0xaf   : > { %10005 = vmatprep.mubr.f32.mxu0 %v13122_v14 }
  0xb2   : > { %10006 = vmatmul.mubr.f32.gmra.mrb[20].mxu0 %v13138_v24 }
  0xb3   : > { %10008 = vmatprep.mubr.f32.mxu0 %v13147_v43 }
  0xb6   : > { %10009 = vmatmul.mubr.f32.gmra.mrb[22].mxu0 %v13154_v44 }
  0xb7   : > { %10029 = vmatprep.mubr.f32.mxu0 %v16102_v33 }
  0xba   : > { %10030 = vmatmul.mubr.f32.vlgmr.msra.gmra.mrb[0].mxu0 %v16103_v37  ;;  %v16114_v37 = vand.u32 4294901760, %v16094_v16  ;;  %v16117_v16 = vand.u32 4294901760, %v16097_v61  ;;  %v16120_v61 = vand.u32 4294901760, %v13084_v57  ;;  %v16123_v57 = vand.u32 4294901760, %v13138_v24 }
  0xbb   : > { %10032 = vmatprep.mubr.f32.mxu0 %v16104_v27  ;;  %11314 = vmatpush3.bf16.msra.mxu0 %v13131_v49  ;;  %v16112_v49 = vand.u32 4294901760, %v16092_v12 }
  0xbc   : > { %11316 = vmatprep.subr.bf16.mxu0 %v13160_v4 }
  0xbe   : > { %10033 = vmatmul.mubr.f32.gmra.mrb[2].mxu0 %v16105_v55  ;;  %v2445_v55 = vsub.s32 4, %v13281_v3 }
  0xbf   : > { %10035 = vmatprep.mubr.f32.mxu0 %v16106_v25  ;;  %11318 = vmatpush3.bf16.msra.mxu0 %v13160_v4  ;;  %v16111_v4 = vld [vmem:[#allocation15_spill] sm:$0xff] }
  0xc0   : > { %11320 = vmatprep.subr.bf16.mxu0 %v13180_v32  ;;  %v9011_v25 = vld [vmem:[%s15933_s2 + $0x8] sm:$0xff] }
  0xc1   : > { %v2432_v12 = vrot.slane %v9011_v25, %v2431_v56  ;;  %v2425_v27 = vrot.slane %v9011_v25, %v2424_v17  ;;  %v2446_v40 = vrot.slane %v9011_v25, %v2445_v55 }
  0xc2   : > { %10036 = vmatmul.mubr.f32.gmra.mrb[4].mxu0 %v16107_v7  ;;  %v16115_v7 = vand.u32 4294901760, %v16095_v41  ;;  %v16118_v41 = vand.u32 4294901760, %v16098_v47  ;;  %v16121_v47 = vand.u32 4294901760, %v16100_v46 }
  0xc3   : > { %10038 = vmatprep.mubr.f32.mxu0 %v16108_v28  ;;  %11322 = vmatpush3.bf16.msra.mxu0 %v13180_v32  ;;  %v13289_v32 = vsub.s32 0, %v13281_v3  ;;  %v2452_v28 = vsub.s32 5, %v13281_v3 }
  0xc4   : > { %11324 = vmatprep.subr.bf16.mxu0 %v13190_v38  ;;  %2434 = vbcast.lane.b32.xlu1 %v2432_v12, 256  ;;  %v1924_v12 = vld [vmem:[%s15933_s2] sm:$0xff] }
  0xc5   : > { %v2418_v33 = vrot.slane %v9011_v25, %v13289_v32  ;;  %v2829_v46 = vrot.slane %v1924_v12, %v2452_v28 }
  0xc6   : > { %10039 = vmatmul.mubr.f32.gmra.mrb[6].mxu0 %v16109_v39  ;;  %v16116_v39 = vand.u32 4294901760, %v16096_v63 }
  0xc7   : > { %10041 = vmatprep.mubr.f32.mxu0 %v16110_v60  ;;  %11326 = vmatpush3.bf16.msra.mxu0 %v13190_v38  ;;  %v16113_v38 = vand.u32 4294901760, %v16093_v15  ;;  %v2439_v15 = vrot.slane %v9011_v25, %v2438_v59  ;;  %v2459_v60 = vsub.s32 6, %v13281_v3 }
  0xc8   : > { %10081 = vmatprep.subr.mxu0 %v16111_v4  ;;  %2420 = vbcast.lane.b32.xlu0 %v2418_v33, 256  ;;  %v16119_v33 = vand.u32 4294901760, %v16099_v31  ;;  %v16122_v31 = vand.u32 4294901760, %v16101_v45  ;;  %v16124_v45 = vand.u32 4294901760, %v13154_v44 }
  0xc9   : > { %2441 = vbcast.lane.b32.xlu1 %v2439_v15, 256  ;;  %v2822_v15 = vrot.slane %v1924_v12, %v2445_v55 }
  0xca   : > { %10042 = vmatmul.mubr.f32.gmra.mrb[8].mxu0 %v16112_v49  ;;  %v2466_v49 = vsub.s32 7, %v13281_v3 }
  0xcb   : > { %10044 = vmatprep.mubr.f32.mxu0 %v16113_v38  ;;  %10082 = vmatpush3.msra.mxu0 %v16111_v4  ;;  %v2453_v4 = vrot.slane %v9011_v25, %v2452_v28  ;;  %v2460_v38 = vrot.slane %v9011_v25, %v2459_v60 }
  0xcc   : > { %11328 = vmatprep.subr.bf16.mxu0 %v12780_v30  ;;  %2427 = vbcast.lane.b32.xlu0 %v2425_v27, 256  ;;  %v2467_v63 = vrot.slane %v9011_v25, %v2466_v49  ;;  %v2801_v27 = vrot.slane %v1924_v12, %v2424_v17  ;;  %v2808_v25 = vrot.slane %v1924_v12, %v2431_v56 }
  0xcd   : > { %2455 = vbcast.lane.b32.xlu1 %v2453_v4, 256  ;;  %v2836_v56 = vrot.slane %v1924_v12, %v2459_v60  ;;  %v2843_v14 = vrot.slane %v1924_v12, %v2466_v49 }
  0xce   : > { %10045 = vmatmul.mubr.f32.gmra.mrb[10].mxu0 %v16114_v37  ;;  %v2794_v37 = vrot.slane %v1924_v12, %v13289_v32 }
  0xcf   : > { %10047 = vmatprep.mubr.f32.mxu0 %v16115_v7  ;;  %v2815_v7 = vrot.slane %v1924_v12, %v2438_v59 }
  0xd0   : > { %2448 = vbcast.lane.b32.xlu0 %v2446_v40, 256 }
  0xd1   : > { %2469 = vbcast.lane.b32.xlu1 %v2467_v63, 256 }
  0xd2   : > { %10048 = vmatmul.mubr.f32.gmra.mrb[12].mxu0 %v16116_v39 }
  0xd3   : > { %10050 = vmatprep.mubr.f32.mxu0 %v16117_v16 }
  0xd4   : > { %2462 = vbcast.lane.b32.xlu0 %v2460_v38, 256 }
  0xd5   : > { %2803 = vbcast.lane.b32.xlu1 %v2801_v27, 256 }
  0xd6   : > { %10051 = vmatmul.mubr.f32.gmra.mrb[14].mxu0 %v16118_v41 }
  0xd7   : > { %10053 = vmatprep.mubr.f32.mxu0 %v16119_v33 }
  0xd8   : > { %2796 = vbcast.lane.b32.xlu0 %v2794_v37, 256 }
  0xd9   : > { %2817 = vbcast.lane.b32.xlu1 %v2815_v7, 256 }
  0xda   : > { %10054 = vmatmul.mubr.f32.gmra.mrb[16].mxu0 %v16120_v61 }
  0xdb   : > { %10056 = vmatprep.mubr.f32.mxu0 %v16121_v47 }
  0xdc   : > { %2810 = vbcast.lane.b32.xlu0 %v2808_v25, 256 }
  0xdd   : > { %2831 = vbcast.lane.b32.xlu1 %v2829_v46, 256 }
  0xde   : > { %10057 = vmatmul.mubr.f32.gmra.mrb[18].mxu0 %v16122_v31 }
  0xdf   : > { %10059 = vmatprep.mubr.f32.mxu0 %v661_v2 }
  0xe0   : > { %2824 = vbcast.lane.b32.xlu0 %v2822_v15, 256 }
  0xe1   : > { %2845 = vbcast.lane.b32.xlu1 %v2843_v14, 256 }
  0xe2   : > { %10060 = vmatmul.mubr.f32.gmra.mrb[20].mxu0 %v16123_v57 }
  0xe3   : > { %10062 = vmatprep.mubr.f32.mxu0 %v681_v0 }
  0xe4   : > { %2838 = vbcast.lane.b32.xlu0 %v2836_v56, 256 }
  0xe6   : > { %10063 = vmatmul.mubr.f32.gmra.mrb[22].mxu0 %v16124_v45 }
  0xe7   : > { %10083 = vmatprep.mubr.f32.mxu0 %v12733_v5 }
  0xea   : > { %10084 = vmatmul.mubr.f32.vlgmr.msra.gmra.mrb[0].mxu0 %v12742_v10 }
  0xeb   : > { %10086 = vmatprep.mubr.f32.mxu0 %v12762_v18  ;;  %11330 = vmatpush3.bf16.msra.mxu0 %v12780_v30 }
  0xec   : > { %11332 = vmatprep.subr.bf16.mxu0 %v12790_v35 }
  0xee   : > { %10087 = vmatmul.mubr.f32.gmra.mrb[2].mxu0 %v12764_v19 }
  0xef   : > { %10089 = vmatprep.mubr.f32.mxu0 %v12803_v42  ;;  %11334 = vmatpush3.bf16.msra.mxu0 %v12790_v35 }
  0xf0   : > { %11336 = vmatprep.subr.bf16.mxu0 %v12819_v48 }
  0xf2   : > { %10090 = vmatmul.mubr.f32.gmra.mrb[4].mxu0 %v12823_v51 }
  0xf3   : > { %10092 = vmatprep.mubr.f32.mxu0 %v12825_v52  ;;  %11338 = vmatpush3.bf16.msra.mxu0 %v12819_v48 }
  0xf4   : > { %11340 = vmatprep.subr.bf16.mxu0 %v16089_v54 }
  0xf6   : > { %10093 = vmatmul.mubr.f32.gmra.mrb[6].mxu0 %v12868_v6 }
  0xf7   : > { %10095 = vmatprep.mubr.f32.mxu0 %v12899_v29  ;;  %11342 = vmatpush3.bf16.msra.mxu0 %v16089_v54 }
  0xf8   : > { %10135 = vmatprep.subr.mxu0 %v12895_v20 }
  0xfa   : > { %10096 = vmatmul.mubr.f32.gmra.mrb[8].mxu0 %v12923_v9 }
  0xfb   : > { %10098 = vmatprep.mubr.f32.mxu0 %v12940_v22  ;;  %10136 = vmatpush3.msra.mxu0 %v12895_v20 }
  0xfe   : > { %10099 = vmatmul.mubr.f32.gmra.mrb[10].mxu0 %v12953_v26 }
  0xff   : > { %10101 = vmatprep.mubr.f32.mxu0 %v12973_v13 }
 0x102   : > { %10102 = vmatmul.mubr.f32.gmra.mrb[12].mxu0 %v12981_v62 }
 0x103   : > { %10104 = vmatprep.mubr.f32.mxu0 %v12986_v50 }
 0x106   : > { %10105 = vmatmul.mubr.f32.gmra.mrb[14].mxu0 %v13017_v53 }
 0x107   : > { %10107 = vmatprep.mubr.f32.mxu0 %v13023_v8 }
 0x10a   : > { %10108 = vmatmul.mubr.f32.gmra.mrb[16].mxu0 %v13046_v36 }
 0x10b   : > { %10110 = vmatprep.mubr.f32.mxu0 %v13055_v1 }
 0x10e   : > { %10111 = vmatmul.mubr.f32.gmra.mrb[18].mxu0 %v13092_v23 }
 0x10f   : > { %10113 = vmatprep.mubr.f32.mxu0 %v13097_v34 }
 0x112   : > { %10114 = vmatmul.mubr.f32.gmra.mrb[20].mxu0 %v13117_v11 }
 0x113   : > { %10116 = vmatprep.mubr.f32.mxu0 %v13124_v58 }
 0x116   : > { %10117 = vmatmul.mubr.f32.gmra.mrb[22].mxu0 %v13140_v21 }
 0x117   : > { %10137 = vmatprep.mubr.f32.mxu0 %v12733_v5  ;;  %v12666_v5 = vmov 0  }
 0x118   : > { %12487 = vset.pattern.permute.xlu1 %v12666_v5  ;;  %12486 = vset.pattern.permute.xlu0 %v12666_v5 }
 0x11a   : > { %10138 = vmatmul.mubr.f32.vlgmr.msra.gmra.mrb[0].mxu0 %v12742_v10  ;;  %v3276_v10 = vld [vmem:[%s15934_s3 + $0x8] sm:$0xff] }
 0x11b   : > { %10140 = vmatprep.mubr.f32.mxu0 %v12762_v18  ;;  %3283 = vperm.xlu1 %12487, %v3276_v10   ;;  %v3275_v18 = vld [vmem:[%s15934_s3] sm:$0xff] }
 0x11c   : > { %3279 = vperm.xlu0 %12486, %v3275_v18  }
 0x11e   : > { %10141 = vmatmul.mubr.f32.gmra.mrb[2].mxu0 %v12764_v19  ;;  %v12667_v19 = vmov 1  }
 0x11f   : > { %10143 = vmatprep.mubr.f32.mxu0 %v12803_v42  ;;  %12488 = vset.pattern.permute.xlu1 %v12667_v19 }
 0x120   : > { %3332 = vperm.xlu1 %12488, %v3275_v18   ;;  %12489 = vset.pattern.permute.xlu0 %v12667_v19 }
 0x121   : > { %3335 = vperm.xlu0 %12489, %v3276_v10  }
 0x122   : > { %10144 = vmatmul.mubr.f32.gmra.mrb[4].mxu0 %v12823_v51 }
 0x123   : > { %10146 = vmatprep.mubr.f32.mxu0 %v12825_v52 }
 0x126   : > { %10147 = vmatmul.mubr.f32.gmra.mrb[6].mxu0 %v12868_v6 }
 0x127   : > { %10149 = vmatprep.mubr.f32.mxu0 %v12899_v29 }
 0x12a   : > { %10150 = vmatmul.mubr.f32.gmra.mrb[8].mxu0 %v12923_v9 }
 0x12b   : > { %10152 = vmatprep.mubr.f32.mxu0 %v12940_v22 }
 0x12e   : > { %10153 = vmatmul.mubr.f32.gmra.mrb[10].mxu0 %v12953_v26 }
 0x12f   : > { %10155 = vmatprep.mubr.f32.mxu0 %v12973_v13 }
 0x132   : > { %10156 = vmatmul.mubr.f32.gmra.mrb[12].mxu0 %v12981_v62 }
 0x133   : > { %10158 = vmatprep.mubr.f32.mxu0 %v12986_v50 }
 0x136   : > { %10159 = vmatmul.mubr.f32.gmra.mrb[14].mxu0 %v13017_v53  ;;  %v12668_v53 = vmov 1966171168  }
 0x137   : > { %10161 = vmatprep.mubr.f32.mxu0 %v13023_v8 }
 0x13a   : > { %10162 = vmatmul.mubr.f32.gmra.mrb[16].mxu0 %v13046_v36  ;;  %v1933_v36 = vunpack.c.l.s4 %v12668_v53 }
 0x13b   : > { %10164 = vmatprep.mubr.f32.mxu0 %v13055_v1 }
 0x13c   : > { %v1934_v24 = vunpack.c.0.s8 %v1933_v36 }
 0x13e   : > { %10165 = vmatmul.mubr.f32.gmra.mrb[18].mxu0 %v13092_v23 }
 0x13f   : > { %10167 = vmatprep.mubr.f32.mxu0 %v13097_v34 }
 0x142   : > { %10168 = vmatmul.mubr.f32.gmra.mrb[20].mxu0 %v13117_v11  ;;  %v13437_v11 = vsub.s32 %v1934_v24, %v13281_v3 }
 0x143   : > { %10170 = vmatprep.mubr.f32.mxu0 %v13124_v58 }
 0x146   : > { %10171 = vmatmul.mubr.f32.gmra.mrb[22].mxu0 %v13140_v21 }
 0x1ed   : > { %v13396_v30 = vpop.f32.mrb[0].mxu0 }
 0x1ee   : > { %16125 = vst [vmem:[#allocation3_spill] sm:$0xff] %v13396_v30  ;;  %v13398_v35 = vpop.f32.mrb[1].mxu0 }
 0x1ef   : > { %16126 = vst [vmem:[#allocation2_spill] sm:$0xff] %v13398_v35 }
 0x1f1   : > { %v13400_v42 = vpop.f32.mrb[2].mxu0 }
 0x1f2   : > { %16127 = vst [vmem:[#allocation4_spill] sm:$0xff] %v13400_v42  ;;  %v13402_v48 = vpop.f32.mrb[3].mxu0 }
 0x1f3   : > { %16128 = vst [vmem:[#allocation5_spill] sm:$0xff] %v13402_v48 }
 0x1f5   : > { %v13404_v50 = vpop.f32.mrb[4].mxu0 }
 0x1f6   : > { %16129 = vst [vmem:[#allocation6_spill] sm:$0xff] %v13404_v50  ;;  %v13406_v51 = vpop.f32.mrb[5].mxu0 }
 0x1f7   : > { %16130 = vst [vmem:[#allocation7_spill] sm:$0xff] %v13406_v51 }
 0x1f9   : > { %v13408_v52 = vpop.f32.mrb[6].mxu0 }
 0x1fa   : > { %16131 = vst [vmem:[#allocation8_spill] sm:$0xff] %v13408_v52  ;;  %v13410_v6 = vpop.f32.mrb[7].mxu0 }
 0x1fb   : > { %16132 = vst [vmem:[#allocation9_spill] sm:$0xff] %v13410_v6 }
 0x1fd   : > { %v13412_v20 = vpop.f32.mrb[8].mxu0 }
 0x1fe   : > { %16133 = vst [vmem:[#allocation10_spill] sm:$0xff] %v13412_v20  ;;  %v13414_v26 = vpop.f32.mrb[9].mxu0 }
 0x1ff   : > { %16134 = vst [vmem:[#allocation11_spill] sm:$0xff] %v13414_v26 }
 0x201   : > { %v13416_v29 = vpop.f32.mrb[10].mxu0 }
 0x202   : > { %16135 = vst [vmem:[#allocation12_spill] sm:$0xff] %v13416_v29  ;;  %v13418_v9 = vpop.f32.mrb[11].mxu0 }
 0x203   : > { %16136 = vst [vmem:[#allocation13_spill] sm:$0xff] %v13418_v9 }
 0x205   : > { %v13420_v22 = vpop.f32.mrb[12].mxu0 }
 0x206   : > { %16137 = vst [vmem:[#allocation14_spill] sm:$0xff] %v13420_v22  ;;  %v13422_v13 = vpop.f32.mrb[13].mxu0 }
 0x207   : > { %16138 = vst [vmem:[#allocation16_spill] sm:$0xff] %v13422_v13 }
 0x209   : > { %v13424_v62 = vpop.f32.mrb[14].mxu0 }
 0x20a   : > { %16139 = vst [vmem:[#allocation15_spill] sm:$0xff] %v13424_v62  ;;  %v13426_v58 = vpop.f32.mrb[15].mxu0 }
 0x20b   : > { %16140 = vst [vmem:[#allocation17_spill] sm:$0xff] %v13426_v58 }
 0x20d   : > { %v13428_v8 = vpop.f32.mrb[16].mxu0 }
 0x20e   : > { %v13430_v1 = vpop.f32.mrb[17].mxu0 }
 0x211   : > { %v13432_v23 = vpop.f32.mrb[18].mxu0 }
 0x212   : > { %v13434_v34 = vpop.f32.mrb[19].mxu0 }
 0x215   : > { %v10169_v21 = vpop.f32.mrb[20].mxu0 }
 0x216   : > { %v1980_v2 = vcombine.high %v10169_v21, %v10169_v21  ;;  %v1987_v43 = vrot.slane %v10169_v21, %v13437_v11  ;;  %v1902_v44 = vpop.f32.mrb[21].mxu0 }
 0x217   : > { %v1931_v0 = vcombine.high %v1902_v44, %v1902_v44  ;;  %v1938_v54 = vrot.slane %v1902_v44, %v13437_v11 }
 0x218   : > { %v1994_v17 = vrot.slane %v1980_v2, %v13437_v11  ;;  %v1995_v59 = vcombine.high %v1987_v43, %v1987_v43  ;;  %v2003_v55 = vrot.slane %v1987_v43, %v13437_v11 }
 0x219   : > { %v1945_v28 = vrot.slane %v1931_v0, %v13437_v11  ;;  %v1946_v39 = vcombine.high %v1938_v54, %v1938_v54  ;;  %v1954_v40 = vrot.slane %v1938_v54, %v13437_v11  ;;  %v10172_v3 = vpop.f32.mrb[22].mxu0 }
 0x21a   : > { %v1996_v60 = vcombine.high %v1994_v17, %v1994_v17  ;;  %v2010_v16 = vrot.slane %v1994_v17, %v13437_v11  ;;  %v2017_v4 = vrot.slane %v1995_v59, %v13437_v11  ;;  %v2025_v49 = vcombine.high %v2003_v55, %v2003_v55  ;;  %v13447_v41 = vpop.f32.mrb[23].mxu0 }
 0x21b   : > { %v2162_v38 = vrot.slane %v2003_v55, %v13289_v32  ;;  %v1947_v33 = vcombine.high %v1945_v28, %v1945_v28  ;;  %v1961_v63 = vrot.slane %v1945_v28, %v13437_v11  ;;  %v1968_v12 = vrot.slane %v1946_v39, %v13437_v11 }
 0x21c   : > { %v13453_v61 = vrot.slane %v1996_v60, %v13437_v11  ;;  %v2026_v37 = vcombine.high %v2010_v16, %v2010_v16  ;;  %v2027_v47 = vcombine.high %v2017_v4, %v2017_v4  ;;  %v2166_v27 = vrot.slane %v2017_v4, %v13289_v32 }
 0x21d   : > { %v2170_v31 = vrot.slane %v2025_v49, %v13289_v32  ;;  %v2178_v25 = vrot.slane %v2010_v16, %v13289_v32  ;;  %v2295_v7 = vadd.f32 %v13428_v8, %v2162_v38  ;;  %v13460_v57 = vrot.slane %v1947_v33, %v13437_v11  ;;  %v13511_v38 = vpop.permute.xlu0 %2420 }
 0x21e   : > { %v2028_v15 = vcombine.high %v13453_v61, %v13453_v61  ;;  %v13465_v46 = vrot.slane %v2027_v47, %v13289_v32  ;;  %v13470_v56 = vrot.slane %v2026_v37, %v13289_v32  ;;  %v13473_v14 = vadd.f32 %v13428_v8, %v2166_v27 }
 0x21f   : > { %v13476_v5 = vadd.f32 %v13428_v8, %v2170_v31  ;;  %v13479_v10 = vadd.f32 %v13428_v8, %v2178_v25  ;;  %v1976_v18 = vcombine.high %v1954_v40, %v1954_v40  ;;  %v1977_v53 = vcombine.high %v1961_v63, %v1961_v63 }
 0x220   : > { %v13482_v19 = vrot.slane %v2028_v15, %v13289_v32  ;;  %v1978_v36 = vcombine.high %v1968_v12, %v1968_v12  ;;  %v1979_v24 = vcombine.high %v13460_v57, %v13460_v57  ;;  %v2130_v21 = vrot.slane %v1954_v40, %v13289_v32 }
 0x221   : > { %v2134_v2 = vrot.slane %v1968_v12, %v13289_v32  ;;  %v2138_v43 = vrot.slane %v1976_v18, %v13289_v32  ;;  %v2146_v44 = vrot.slane %v1961_v63, %v13289_v32  ;;  %v13496_v17 = vrot.slane %v1977_v53, %v13289_v32 }
 0x222   : > { %v13491_v0 = vrot.slane %v1978_v36, %v13289_v32  ;;  %v13499_v59 = vrot.slane %v1979_v24, %v13289_v32  ;;  %v2287_v55 = vadd.f32 %v2130_v21, %v13430_v1  ;;  %vm2327_vm1 = vcmp.gt.f32.partialorder %v2295_v7, 0.0 }
 0x223   : > { %v13503_v28 = vadd.f32 %v2134_v2, %v13430_v1  ;;  %v2289_v39 = vadd.f32 %v2138_v43, %v13430_v1  ;;  %v13507_v40 = vadd.f32 %v2146_v44, %v13430_v1  ;;  %v2359_v60 = vmul.f32 0.2, %v2295_v7 }
 0x224   : > { %v2078_v16 = vcombine.high %v10172_v3, %v10172_v3  ;;  %v2085_v4 = vrot.slane %v10172_v3, %v13437_v11  ;;  %vm2319_vm2 = vcmp.gt.f32.partialorder %v2287_v55, 0.0  ;;  %v2351_v49 = vmul.f32 0.2, %v2287_v55 }
 0x225   : > { %vm2321_vm3 = vcmp.gt.f32.partialorder %v2289_v39, 0.0  ;;  %vm2329_vm4 = vcmp.gt.f32.partialorder %v13476_v5, 0.0  ;;  %v2391_v33 = vsel %vm2327_vm1, %v2295_v7, %v2359_v60  ;;  %v2353_v31 = vmul.f32 0.2, %v2289_v39 }
 0x226   : > { %v2092_v63 = vrot.slane %v2078_v16, %v13437_v11  ;;  %v2093_v12 = vcombine.high %v2085_v4, %v2085_v4  ;;  %v2101_v37 = vrot.slane %v2085_v4, %v13437_v11  ;;  %v2383_v47 = vsel %vm2319_vm2, %v2287_v55, %v2351_v49 }
 0x227   : > { %v13516_v27 = vadd.f32 %v13511_v38, %v2391_v33  ;;  %v2361_v3 = vmul.f32 0.2, %v13476_v5  ;;  %v13520_v25 = vadd.f32 %v13511_v38, %v2383_v47  ;;  %v2385_v21 = vsel %vm2321_vm3, %v2289_v39, %v2353_v31 }
 0x228   : > { %v2094_v15 = vcombine.high %v2092_v63, %v2092_v63  ;;  %v2108_v18 = vrot.slane %v2092_v63, %v13437_v11  ;;  %v2115_v7 = vrot.slane %v2093_v12, %v13437_v11  ;;  %v2123_v36 = vcombine.high %v2101_v37, %v2101_v37  ;;  %v13557_v12 = vpop.permute.xlu1 %2434 }
 0x229   : > { %v2551_v53 = vrot.slane %v13516_v27, 4  ;;  %v2226_v24 = vrot.slane %v2101_v37, %v13289_v32  ;;  %v2503_v2 = vrot.slane %v13520_v25, 4  ;;  %vm2320_vm7 = vcmp.gt.f32.partialorder %v13503_v28, 0.0 }
 0x22a   : > { %v13529_v43 = vrot.slane %v2094_v15, %v13437_v11  ;;  %v2124_v44 = vcombine.high %v2108_v18, %v2108_v18  ;;  %v2125_v55 = vcombine.high %v2115_v7, %v2115_v7  ;;  %v2230_v16 = vrot.slane %v2115_v7, %v13289_v32 }
 0x22b   : > { %v2552_v60 = vmax.f32 %v13516_v27, %v2551_v53  ;;  %v2234_v4 = vrot.slane %v2123_v36, %v13289_v32  ;;  %v2242_v49 = vrot.slane %v2108_v18, %v13289_v32  ;;  %v2504_v33 = vmax.f32 %v13520_v25, %v2503_v2 }
 0x22c   : > { %v2126_v39 = vcombine.high %v13529_v43, %v13529_v43  ;;  %v13539_v63 = vrot.slane %v2125_v55, %v13289_v32  ;;  %v13544_v47 = vrot.slane %v2124_v44, %v13289_v32  ;;  %v2311_v31 = vadd.f32 %v13432_v23, %v2226_v24  ;;  %v2442_v51 = vpop.permute.xlu1 %2441 }
 0x22d   : > { %v2553_v37 = vrot.slane %v2552_v60, 2  ;;  %v13548_v15 = vadd.f32 %v13432_v23, %v2230_v16  ;;  %v2505_v18 = vrot.slane %v2504_v33, 2  ;;  %v2313_v53 = vadd.f32 %v13432_v23, %v2234_v4 }
 0x22e   : > { %v13551_v7 = vrot.slane %v2126_v39, %v13289_v32  ;;  %v13555_v36 = vadd.f32 %v13432_v23, %v2242_v49  ;;  %vm2343_vm5 = vcmp.gt.f32.partialorder %v2311_v31, 0.0  ;;  %v2375_v55 = vmul.f32 0.2, %v2311_v31 }
 0x22f   : > { %v2554_v2 = vmax.f32 %v2552_v60, %v2553_v37  ;;  %v2393_v24 = vsel %vm2329_vm4, %v13476_v5, %v2361_v3  ;;  %v2506_v44 = vmax.f32 %v2504_v33, %v2505_v18  ;;  %vm2345_vm6 = vcmp.gt.f32.partialorder %v2313_v53, 0.0 }
 0x230   : > { %v2377_v16 = vmul.f32 0.2, %v2313_v53  ;;  %v2473_v39 = vadd.f32 %v13557_v12, %v2385_v21  ;;  %v2407_v54 = vsel %vm2343_vm5, %v2311_v31, %v2375_v55  ;;  %v13564_v4 = vadd.f32 %v13557_v12, %v2393_v24 }
 0x231   : > { %v2555_v45 = vrot.slane %v2554_v2, 1  ;;  %v2029_v60 = vcombine.high %v13447_v41, %v13447_v41  ;;  %v2507_v49 = vrot.slane %v2506_v44, 1  ;;  %v13569_v37 = vadd.f32 %v13511_v38, %v2407_v54 }
 0x232   : > { %v2409_v62 = vsel %vm2345_vm6, %v2313_v53, %v2377_v16  ;;  %v2515_v58 = vrot.slane %v2473_v39, 4  ;;  %v2563_v21 = vrot.slane %v13564_v4, 4  ;;  %v2036_v33 = vrot.slane %v13447_v41, %v13437_v11 }
 0x233   : > { %v2556_v5 = vmax.f32 %v2554_v2, %v2555_v45  ;;  %v13572_v3 = vadd.f32 %v13557_v12, %v2409_v62  ;;  %v2508_v31 = vmax.f32 %v2506_v44, %v2507_v49  ;;  %v2647_v18 = vrot.slane %v13569_v37, 4 }
 0x234   : > { %v2516_v55 = vmax.f32 %v2473_v39, %v2515_v58  ;;  %v2043_v24 = vrot.slane %v2029_v60, %v13437_v11  ;;  %v2564_v53 = vmax.f32 %v13564_v4, %v2563_v21  ;;  %v2044_v2 = vcombine.high %v2036_v33, %v2036_v33 }
 0x235   : > { %v2703_v54 = vsub.f32 %v13516_v27, %v2556_v5  ;;  %v2659_v45 = vrot.slane %v13572_v3, 4  ;;  %v2695_v62 = vsub.f32 %v13520_v25, %v2508_v31  ;;  %v2648_v16 = vmax.f32 %v13569_v37, %v2647_v18 }
 0x236   : > { %v2517_v22 = vrot.slane %v2516_v55, 2  ;;  %v2045_v13 = vcombine.high %v2043_v24, %v2043_v24  ;;  %v2565_v44 = vrot.slane %v2564_v53, 2  ;;  %v2052_v58 = vrot.slane %v2036_v33, %v13437_v11 }
 0x237   : > { %v2743_v41 = vmul.f32 1.442695, %v2703_v54  ;;  %v2660_v49 = vmax.f32 %v13572_v3, %v2659_v45  ;;  %v2727_v60 = vmul.f32 1.442695, %v2695_v62  ;;  %v2649_v29 = vrot.slane %v2648_v16, 2 }
 0x238   : > { %v2518_v27 = vmax.f32 %v2516_v55, %v2517_v22  ;;  %v2059_v5 = vrot.slane %v2043_v24, %v13437_v11  ;;  %v2566_v21 = vmax.f32 %v2564_v53, %v2565_v44  ;;  %v2066_v25 = vrot.slane %v2044_v2, %v13437_v11 }
 0x239   : > { %12492 = vpow2.f32 %v2743_v41  ;;  %v2661_v9 = vrot.slane %v2660_v49, 2  ;;  %v13588_v31 = vmax.f32 %v2648_v16, %v2649_v29  ;;  %v13591_v54 = vrot.slane %v2045_v13, %v13437_v11 }
 0x23a   : > { %12494 = vpow2.f32 %v2727_v60  ;;  %v2519_v18 = vrot.slane %v2518_v27, 1  ;;  %v2567_v45 = vrot.slane %v2566_v21, 1  ;;  %v2074_v33 = vcombine.high %v2052_v58, %v2052_v58 }
 0x23b   : > { %v2662_v20 = vmax.f32 %v2660_v49, %v2661_v9  ;;  %v2075_v62 = vcombine.high %v2059_v5, %v2059_v5  ;;  %v2076_v22 = vcombine.high %v2066_v25, %v2066_v25  ;;  %v2077_v55 = vcombine.high %v13591_v54, %v13591_v54 }
 0x23c   : > { %v2520_v26 = vmax.f32 %v2518_v27, %v2519_v18  ;;  %v2194_v24 = vrot.slane %v2052_v58, %v13289_v32  ;;  %v2568_v53 = vmax.f32 %v2566_v21, %v2567_v45  ;;  %v2198_v29 = vrot.slane %v2066_v25, %v13289_v32 }
 0x23d   : > { %v2663_v2 = vrot.slane %v2662_v20, 1  ;;  %v2202_v16 = vrot.slane %v2074_v33, %v13289_v32  ;;  %v2206_v13 = vrot.slane %v2076_v22, %v13289_v32  ;;  %v2210_v9 = vrot.slane %v2059_v5, %v13289_v32 }
 0x23e   : > { %v2697_v41 = vsub.f32 %v2473_v39, %v2520_v26  ;;  %v2705_v49 = vsub.f32 %v13564_v4, %v2568_v53  ;;  %v13604_v60 = vrot.slane %v2075_v62, %v13289_v32  ;;  %v13607_v58 = vrot.slane %v2077_v55, %v13289_v32 }
 0x23f   : > { %v2664_v44 = vmax.f32 %v2662_v20, %v2663_v2  ;;  %v2303_v21 = vadd.f32 %v2194_v24, %v13434_v34  ;;  %v2304_v26 = vadd.f32 %v2198_v29, %v13434_v34  ;;  %v2305_v39 = vadd.f32 %v2202_v16, %v13434_v34  ;;  %v2428_v29 = vpop.permute.xlu0 %2427 }
 0x240   : > { %v2731_v27 = vmul.f32 1.442695, %v2697_v41  ;;  %v2747_v25 = vmul.f32 1.442695, %v2705_v49  ;;  %v13614_v20 = vadd.f32 %v2210_v9, %v13434_v34  ;;  %vm2328_vm10 = vcmp.gt.f32.partialorder %v13473_v14, 0.0 }
 0x241   : > { %v2721_v5 = vsub.f32 %v13572_v3, %v2664_v44  ;;  %vm2335_vm8 = vcmp.gt.f32.partialorder %v2303_v21, 0.0  ;;  %vm2337_vm9 = vcmp.gt.f32.partialorder %v2305_v39, 0.0  ;;  %v2367_v4 = vmul.f32 0.2, %v2303_v21 }
 0x242   : > { %12496 = vpow2.f32 %v2731_v27  ;;  %v2369_v33 = vmul.f32 0.2, %v2305_v39  ;;  %vm2336_vm11 = vcmp.gt.f32.partialorder %v2304_v26, 0.0  ;;  %vm2344_vm12 = vcmp.gt.f32.partialorder %v13548_v15, 0.0 }
 0x243   : > { %v13617_v18 = vpop.eup %12492  ;;  %12498 = vpow2.f32 %v2747_v25  ;;  %v2779_v45 = vmul.f32 1.442695, %v2721_v5  ;;  %v2399_v3 = vsel %vm2335_vm8, %v2303_v21, %v2367_v4  ;;  %v2352_v22 = vmul.f32 0.2, %v13503_v28 }
 0x244   : > { %v13620_v62 = vpop.eup %12494  ;;  %v2401_v55 = vsel %vm2337_vm9, %v2305_v39, %v2369_v33  ;;  %v13625_v24 = vadd.f32 %v13511_v38, %v2399_v3  ;;  %v2360_v53 = vmul.f32 0.2, %v13473_v14  ;;  %v2368_v16 = vmul.f32 0.2, %v2304_v26 }
 0x245   : > { %12500 = vpow2.f32 %v2779_v45  ;;  %v13629_v2 = vadd.f32 %v13557_v12, %v2401_v55  ;;  %v2376_v41 = vmul.f32 0.2, %v13548_v15  ;;  %v2384_v9 = vsel %vm2320_vm7, %v13503_v28, %v2352_v22 }
 0x246   : > { %v2599_v44 = vrot.slane %v13625_v24, 4  ;;  %v2392_v38 = vsel %vm2328_vm10, %v13473_v14, %v2360_v53  ;;  %v13639_v49 = vadd.f32 %v2428_v29, %v2384_v9  ;;  %v2290_v12 = vadd.f32 %v13491_v0, %v13430_v1 }
 0x247   : > { %16141 = vst [vmem:[#allocation18_spill] sm:$0xff] %v13629_v2  ;;  %v2611_v27 = vrot.slane %v13629_v2, 4  ;;  %v2400_v21 = vsel %vm2336_vm11, %v2304_v26, %v2368_v16  ;;  %v2408_v39 = vsel %vm2344_vm12, %v13548_v15, %v2376_v41  ;;  %v13648_v28 = vadd.f32 %v2428_v29, %v2392_v38 }
 0x248   : > { %v2600_v5 = vmax.f32 %v13625_v24, %v2599_v44  ;;  %v13651_v25 = vadd.f32 %v2428_v29, %v2400_v21  ;;  %v13653_v14 = vadd.f32 %v2428_v29, %v2408_v39  ;;  %v2509_v4 = vrot.slane %v13639_v49, 4 }
 0x249   : > { %v13657_v0 = vmax.f32 %v13629_v2, %v2611_v27  ;;  %v2557_v45 = vrot.slane %v13648_v28, 4  ;;  %v2298_v26 = vadd.f32 %v13428_v8, %v13465_v46  ;;  %v2306_v15 = vadd.f32 %v2206_v13, %v13434_v34 }
 0x24a   : > { %v2601_v33 = vrot.slane %v2600_v5, 2  ;;  %v2510_v3 = vmax.f32 %v13639_v49, %v2509_v4  ;;  %v2605_v22 = vrot.slane %v13651_v25, 4  ;;  %v2653_v55 = vrot.slane %v13653_v14, 4 }
 0x24b   : > { %v2558_v16 = vmax.f32 %v13648_v28, %v2557_v45  ;;  %v2314_v41 = vadd.f32 %v13432_v23, %v13539_v63  ;;  %vm2322_vm13 = vcmp.gt.f32.partialorder %v2290_v12, 0.0  ;;  %vm2330_vm14 = vcmp.gt.f32.partialorder %v2298_v26, 0.0 }
 0x24c   : > { %v13666_v53 = vpop.eup %12496  ;;  %v13674_v13 = vmax.f32 %v2600_v5, %v2601_v33  ;;  %v2511_v9 = vrot.slane %v2510_v3, 2  ;;  %v2606_v44 = vmax.f32 %v13651_v25, %v2605_v22  ;;  %v2654_v38 = vmax.f32 %v13653_v14, %v2653_v55 }
 0x24d   : > { %v13672_v46 = vpop.eup %12498  ;;  %v2559_v27 = vrot.slane %v2558_v16, 2  ;;  %vm2338_vm15 = vcmp.gt.f32.partialorder %v2306_v15, 0.0  ;;  %vm2346_vm0 = vcmp.gt.f32.partialorder %v2314_v41, 0.0  ;;  %v2354_v63 = vmul.f32 0.2, %v2290_v12 }
 0x24e   : > { %v2512_v39 = vmax.f32 %v2510_v3, %v2511_v9  ;;  %v2607_v4 = vrot.slane %v2606_v44, 2  ;;  %v2655_v45 = vrot.slane %v2654_v38, 2  ;;  %v2362_v11 = vmul.f32 0.2, %v2298_v26 }
 0x24f   : > { %v13678_v21 = vpop.eup %12500  ;;  %v2560_v29 = vmax.f32 %v2558_v16, %v2559_v27  ;;  %v2370_v52 = vmul.f32 0.2, %v2306_v15  ;;  %v2378_v5 = vmul.f32 0.2, %v2314_v41  ;;  %v2386_v22 = vsel %vm2322_vm13, %v2290_v12, %v2354_v63 }
 0x250   : > { %v2513_v33 = vrot.slane %v2512_v39, 1  ;;  %v2608_v6 = vmax.f32 %v2606_v44, %v2607_v4  ;;  %v2656_v50 = vmax.f32 %v2654_v38, %v2655_v45  ;;  %v2394_v42 = vsel %vm2330_vm14, %v2298_v26, %v2362_v11 }
 0x251   : > { %v2561_v55 = vrot.slane %v2560_v29, 1  ;;  %v2402_v48 = vsel %vm2338_vm15, %v2306_v15, %v2370_v52  ;;  %v2410_v3 = vsel %vm2346_vm0, %v2314_v41, %v2378_v5  ;;  %v13684_v16 = vadd.f32 %v2442_v51, %v2386_v22 }
 0x252   : > { %v2514_v9 = vmax.f32 %v2512_v39, %v2513_v33  ;;  %v2609_v30 = vrot.slane %v2608_v6, 1  ;;  %v2657_v35 = vrot.slane %v2656_v50, 1  ;;  %v13686_v2 = vadd.f32 %v2442_v51, %v2394_v42 }
 0x253   : > { %v2562_v27 = vmax.f32 %v2560_v29, %v2561_v55  ;;  %v13688_v44 = vadd.f32 %v2442_v51, %v2402_v48  ;;  %v13690_v38 = vadd.f32 %v2442_v51, %v2410_v3  ;;  %v2521_v52 = vrot.slane %v13684_v16, 4 }
 0x254   : > { %v2610_v12 = vmax.f32 %v2608_v6, %v2609_v30  ;;  %v2658_v4 = vmax.f32 %v2656_v50, %v2657_v35  ;;  %v2696_v11 = vsub.f32 %v13639_v49, %v2514_v9  ;;  %v2569_v15 = vrot.slane %v13686_v2, 4 }
 0x255   : > { %v2704_v26 = vsub.f32 %v13648_v28, %v2562_v27  ;;  %v2617_v41 = vrot.slane %v13688_v44, 4  ;;  %v2665_v29 = vrot.slane %v13690_v38, 4  ;;  %v2522_v30 = vmax.f32 %v13684_v16, %v2521_v52 }
 0x256   : > { %v2712_v42 = vsub.f32 %v13651_v25, %v2610_v12  ;;  %v2720_v48 = vsub.f32 %v13653_v14, %v2658_v4  ;;  %v2729_v51 = vmul.f32 1.442695, %v2696_v11  ;;  %v2570_v50 = vmax.f32 %v13686_v2, %v2569_v15 }
 0x257   : > { %v2745_v35 = vmul.f32 1.442695, %v2704_v26  ;;  %v2618_v6 = vmax.f32 %v13688_v44, %v2617_v41  ;;  %v2666_v49 = vmax.f32 %v13690_v38, %v2665_v29  ;;  %v2523_v45 = vrot.slane %v2522_v30, 2 }
 0x258   : > { %12502 = vpow2.f32 %v2729_v51  ;;  %v2761_v28 = vmul.f32 1.442695, %v2712_v42  ;;  %v2777_v39 = vmul.f32 1.442695, %v2720_v48  ;;  %v2571_v63 = vrot.slane %v2570_v50, 2  ;;  %v2449_v51 = vpop.permute.xlu0 %2448 }
 0x259   : > { %12504 = vpow2.f32 %v2745_v35  ;;  %v2619_v5 = vrot.slane %v2618_v6, 2  ;;  %v2667_v25 = vrot.slane %v2666_v49, 2  ;;  %v2524_v14 = vmax.f32 %v2522_v30, %v2523_v45 }
 0x25a   : > { %12506 = vpow2.f32 %v2761_v28  ;;  %vm2323_vm1 = vcmp.gt.f32.partialorder %v13507_v40, 0.0  ;;  %vm2331_vm2 = vcmp.gt.f32.partialorder %v13479_v10, 0.0  ;;  %v2572_v33 = vmax.f32 %v2570_v50, %v2571_v63 }
 0x25b   : > { %12508 = vpow2.f32 %v2777_v39  ;;  %v2620_v22 = vmax.f32 %v2618_v6, %v2619_v5  ;;  %v2668_v55 = vmax.f32 %v2666_v49, %v2667_v25  ;;  %v2525_v3 = vrot.slane %v2524_v14, 1 }
 0x25c   : > { %vm2339_vm3 = vcmp.gt.f32.partialorder %v13614_v20, 0.0  ;;  %vm2347_vm4 = vcmp.gt.f32.partialorder %v13555_v36, 0.0  ;;  %v2355_v9 = vmul.f32 0.2, %v13507_v40  ;;  %v2573_v27 = vrot.slane %v2572_v33, 1 }
 0x25d   : > { %v2621_v12 = vrot.slane %v2620_v22, 1  ;;  %v2669_v4 = vrot.slane %v2668_v55, 1  ;;  %v2363_v11 = vmul.f32 0.2, %v13479_v10  ;;  %v2526_v52 = vmax.f32 %v2524_v14, %v2525_v3 }
 0x25e   : > { %v2371_v26 = vmul.f32 0.2, %v13614_v20  ;;  %v2379_v15 = vmul.f32 0.2, %v13555_v36  ;;  %v2387_v41 = vsel %vm2323_vm1, %v13507_v40, %v2355_v9  ;;  %v2574_v29 = vmax.f32 %v2572_v33, %v2573_v27 }
 0x25f   : > { %v2622_v42 = vmax.f32 %v2620_v22, %v2621_v12  ;;  %v2670_v48 = vmax.f32 %v2668_v55, %v2669_v4  ;;  %v2395_v30 = vsel %vm2331_vm2, %v13479_v10, %v2363_v11  ;;  %v2698_v35 = vsub.f32 %v13684_v16, %v2526_v52 }
 0x260   : > { %v2403_v50 = vsel %vm2339_vm3, %v13614_v20, %v2371_v26  ;;  %v2411_v6 = vsel %vm2347_vm4, %v13555_v36, %v2379_v15  ;;  %v13725_v49 = vadd.f32 %v2449_v51, %v2387_v41  ;;  %v2706_v40 = vsub.f32 %v13686_v2, %v2574_v29 }
 0x261   : > { %v2714_v28 = vsub.f32 %v13688_v44, %v2622_v42  ;;  %v2722_v39 = vsub.f32 %v13690_v38, %v2670_v48  ;;  %v13730_v45 = vadd.f32 %v2449_v51, %v2395_v30  ;;  %v2733_v16 = vmul.f32 1.442695, %v2698_v35 }
 0x262   : > { %v13732_v10 = vpop.eup %12502  ;;  %v13734_v63 = vadd.f32 %v2449_v51, %v2403_v50  ;;  %v13736_v20 = vadd.f32 %v2449_v51, %v2411_v6  ;;  %v2527_v5 = vrot.slane %v13725_v49, 4  ;;  %v2749_v25 = vmul.f32 1.442695, %v2706_v40 }
 0x263   : > { %v13739_v36 = vpop.eup %12504  ;;  %v2765_v14 = vmul.f32 1.442695, %v2714_v28  ;;  %v2781_v2 = vmul.f32 1.442695, %v2722_v39  ;;  %v16142_v44 = vrot.slane %v13460_v57, %v13289_v32  ;;  %12510 = vpow2.f32 %v2733_v16 }
 0x264   : > { %v13745_v33 = vpop.eup %12506  ;;  %v2528_v22 = vmax.f32 %v13725_v49, %v2527_v5  ;;  %v2575_v55 = vrot.slane %v13730_v45, 4  ;;  %v2623_v3 = vrot.slane %v13734_v63, 4  ;;  %12512 = vpow2.f32 %v2749_v25 }
 0x265   : > { %v2292_v38 = vadd.f32 %v16142_v44, %v13430_v1  ;;  %v13750_v9 = vpop.eup %12508  ;;  %v2671_v27 = vrot.slane %v13736_v20, 4  ;;  %v16143_v12 = vrot.slane %v13453_v61, %v13289_v32  ;;  %v16144_v4 = vrot.slane %v13591_v54, %v13289_v32 }
 0x266   : > { %12514 = vpow2.f32 %v2765_v14  ;;  %v2529_v52 = vrot.slane %v2528_v22, 2  ;;  %v2576_v26 = vmax.f32 %v13730_v45, %v2575_v55  ;;  %v2624_v15 = vmax.f32 %v13734_v63, %v2623_v3  ;;  %v2456_v14 = vpop.permute.xlu1 %2455 }
 0x267   : > { %v2300_v57 = vadd.f32 %v13428_v8, %v16143_v12  ;;  %v2308_v11 = vadd.f32 %v16144_v4, %v13434_v34  ;;  %12516 = vpow2.f32 %v2781_v2  ;;  %v2672_v41 = vmax.f32 %v13736_v20, %v2671_v27 }
 0x268   : > { %v16145_v29 = vrot.slane %v13529_v43, %v13289_v32  ;;  %vm2324_vm5 = vcmp.gt.f32.partialorder %v2292_v38, 0.0  ;;  %v2530_v42 = vmax.f32 %v2528_v22, %v2529_v52  ;;  %v2577_v48 = vrot.slane %v2576_v26, 2 }
 0x269   : > { %v2625_v51 = vrot.slane %v2624_v15, 2  ;;  %vm2332_vm6 = vcmp.gt.f32.partialorder %v2300_v57, 0.0  ;;  %v2673_v54 = vrot.slane %v2672_v41, 2  ;;  %vm2340_vm7 = vcmp.gt.f32.partialorder %v2308_v11, 0.0 }
 0x26a   : > { %v2316_v61 = vadd.f32 %v13432_v23, %v16145_v29  ;;  %v2356_v30 = vmul.f32 0.2, %v2292_v38  ;;  %v2531_v35 = vrot.slane %v2530_v42, 1  ;;  %v2578_v50 = vmax.f32 %v2576_v26, %v2577_v48 }
 0x26b   : > { %v2626_v6 = vmax.f32 %v2624_v15, %v2625_v51  ;;  %v2364_v40 = vmul.f32 0.2, %v2300_v57  ;;  %v2674_v28 = vmax.f32 %v2672_v41, %v2673_v54  ;;  %v2372_v39 = vmul.f32 0.2, %v2308_v11 }
 0x26c   : > { %vm2348_vm8 = vcmp.gt.f32.partialorder %v2316_v61, 0.0  ;;  %v2380_v16 = vmul.f32 0.2, %v2316_v61  ;;  %v2388_v32 = vsel %vm2324_vm5, %v2292_v38, %v2356_v30  ;;  %v2532_v43 = vmax.f32 %v2530_v42, %v2531_v35 }
 0x26d   : > { %v2579_v5 = vrot.slane %v2578_v50, 1  ;;  %v2627_v25 = vrot.slane %v2626_v6, 1  ;;  %v2396_v2 = vsel %vm2332_vm6, %v2300_v57, %v2364_v40  ;;  %v2675_v44 = vrot.slane %v2674_v28, 1  ;;  %v13774_v27 = vpop.eup %12510 }
 0x26e   : > { %v2404_v22 = vsel %vm2340_vm7, %v2308_v11, %v2372_v39  ;;  %v2412_v55 = vsel %vm2348_vm8, %v2316_v61, %v2380_v16  ;;  %v13772_v3 = vadd.f32 %v2456_v14, %v2388_v32  ;;  %v2699_v52 = vsub.f32 %v13725_v49, %v2532_v43  ;;  %v13779_v26 = vpop.eup %12512 }
 0x26f   : > { %v2580_v12 = vmax.f32 %v2578_v50, %v2579_v5  ;;  %v2628_v4 = vmax.f32 %v2626_v6, %v2627_v25  ;;  %v13777_v38 = vadd.f32 %v2456_v14, %v2396_v2  ;;  %v2676_v15 = vmax.f32 %v2674_v28, %v2675_v44 }
 0x270   : > { %v13781_v41 = vadd.f32 %v2456_v14, %v2404_v22  ;;  %v13783_v57 = vadd.f32 %v2456_v14, %v2412_v55  ;;  %v2533_v11 = vrot.slane %v13772_v3, 4  ;;  %v13786_v29 = vpop.eup %12514  ;;  %v2735_v48 = vmul.f32 1.442695, %v2699_v52 }
 0x271   : > { %v2707_v61 = vsub.f32 %v13730_v45, %v2580_v12  ;;  %v2715_v42 = vsub.f32 %v13734_v63, %v2628_v4  ;;  %v2581_v49 = vrot.slane %v13777_v38, 4  ;;  %v13791_v51 = vpop.eup %12516  ;;  %v2723_v54 = vsub.f32 %v13736_v20, %v2676_v15 }
 0x272   : > { %v2534_v30 = vmax.f32 %v13772_v3, %v2533_v11  ;;  %v2629_v35 = vrot.slane %v13781_v41, 4  ;;  %v2677_v50 = vrot.slane %v13783_v57, 4  ;;  %12518 = vpow2.f32 %v2735_v48 }
 0x273   : > { %v2751_v6 = vmul.f32 1.442695, %v2707_v61  ;;  %v2767_v40 = vmul.f32 1.442695, %v2715_v42  ;;  %v2582_v45 = vmax.f32 %v13777_v38, %v2581_v49  ;;  %v2783_v28 = vmul.f32 1.442695, %v2723_v54  ;;  %v2463_v42 = vpop.permute.xlu0 %2462 }
 0x274   : > { %v2535_v63 = vrot.slane %v2534_v30, 2  ;;  %v2630_v39 = vmax.f32 %v13781_v41, %v2629_v35  ;;  %v2678_v16 = vmax.f32 %v13783_v57, %v2677_v50  ;;  %v2293_v20 = vadd.f32 %v13496_v17, %v13430_v1 }
 0x275   : > { %12520 = vpow2.f32 %v2751_v6  ;;  %v2583_v32 = vrot.slane %v2582_v45, 2  ;;  %v2301_v43 = vadd.f32 %v13428_v8, %v13470_v56  ;;  %v2309_v44 = vadd.f32 %v13604_v60, %v13434_v34 }
 0x276   : > { %12522 = vpow2.f32 %v2767_v40  ;;  %v2536_v5 = vmax.f32 %v2534_v30, %v2535_v63  ;;  %v2631_v25 = vrot.slane %v2630_v39, 2  ;;  %v2679_v14 = vrot.slane %v2678_v16, 2 }
 0x277   : > { %12524 = vpow2.f32 %v2783_v28  ;;  %v2584_v2 = vmax.f32 %v2582_v45, %v2583_v32  ;;  %v2317_v22 = vadd.f32 %v13432_v23, %v13544_v47  ;;  %vm2325_vm9 = vcmp.gt.f32.partialorder %v2293_v20, 0.0 }
 0x278   : > { %v2537_v55 = vrot.slane %v2536_v5, 1  ;;  %v2632_v12 = vmax.f32 %v2630_v39, %v2631_v25  ;;  %v2680_v4 = vmax.f32 %v2678_v16, %v2679_v14  ;;  %vm2333_vm10 = vcmp.gt.f32.partialorder %v2301_v43, 0.0 }
 0x279   : > { %v2585_v17 = vrot.slane %v2584_v2, 1  ;;  %vm2341_vm11 = vcmp.gt.f32.partialorder %v2309_v44, 0.0  ;;  %vm2349_vm12 = vcmp.gt.f32.partialorder %v2317_v22, 0.0  ;;  %v2357_v11 = vmul.f32 0.2, %v2293_v20 }
 0x27a   : > { %v2538_v56 = vmax.f32 %v2536_v5, %v2537_v55  ;;  %v2633_v52 = vrot.slane %v2632_v12, 1  ;;  %v2681_v15 = vrot.slane %v2680_v4, 1  ;;  %v2365_v48 = vmul.f32 0.2, %v2301_v43 }
 0x27b   : > { %v2586_v61 = vmax.f32 %v2584_v2, %v2585_v17  ;;  %v2373_v49 = vmul.f32 0.2, %v2309_v44  ;;  %v2381_v60 = vmul.f32 0.2, %v2317_v22  ;;  %v2389_v35 = vsel %vm2325_vm9, %v2293_v20, %v2357_v11 }
 0x27c   : > { %v2634_v54 = vmax.f32 %v2632_v12, %v2633_v52  ;;  %v2682_v30 = vmax.f32 %v2680_v4, %v2681_v15  ;;  %v2700_v47 = vsub.f32 %v13772_v3, %v2538_v56  ;;  %v13810_v50 = vpop.eup %12518  ;;  %v2397_v40 = vsel %vm2333_vm10, %v2301_v43, %v2365_v48 }
 0x27d   : > { %v2708_v6 = vsub.f32 %v13777_v38, %v2586_v61  ;;  %v2405_v45 = vsel %vm2341_vm11, %v2309_v44, %v2373_v49  ;;  %v2413_v28 = vsel %vm2349_vm12, %v2317_v22, %v2381_v60  ;;  %v13818_v32 = vadd.f32 %v2463_v42, %v2389_v35 }
 0x27e   : > { %v2716_v63 = vsub.f32 %v13781_v41, %v2634_v54  ;;  %v2724_v39 = vsub.f32 %v13783_v57, %v2682_v30  ;;  %v2737_v16 = vmul.f32 1.442695, %v2700_v47  ;;  %v13822_v5 = vadd.f32 %v2463_v42, %v2397_v40  ;;  %v2470_v30 = vpop.permute.xlu1 %2469 }
 0x27f   : > { %v13820_v3 = vpop.eup %12520  ;;  %v2753_v20 = vmul.f32 1.442695, %v2708_v6  ;;  %v13824_v25 = vadd.f32 %v2463_v42, %v2405_v45  ;;  %v13826_v38 = vadd.f32 %v2463_v42, %v2413_v28  ;;  %v2539_v41 = vrot.slane %v13818_v32, 4 }
 0x280   : > { %v13828_v43 = vpop.eup %12522  ;;  %12526 = vpow2.f32 %v2737_v16  ;;  %v2769_v14 = vmul.f32 1.442695, %v2716_v63  ;;  %v2785_v2 = vmul.f32 1.442695, %v2724_v39  ;;  %v2587_v44 = vrot.slane %v13822_v5, 4 }
 0x281   : > { %v13831_v57 = vpop.eup %12524  ;;  %12528 = vpow2.f32 %v2753_v20  ;;  %v2635_v22 = vrot.slane %v13824_v25, 4  ;;  %v2683_v55 = vrot.slane %v13826_v38, 4  ;;  %v2540_v12 = vmax.f32 %v13818_v32, %v2539_v41 }
 0x282   : > { %12530 = vpow2.f32 %v2769_v14  ;;  %v2294_v4 = vadd.f32 %v13499_v59, %v13430_v1  ;;  %v2302_v17 = vadd.f32 %v13428_v8, %v13482_v19  ;;  %v2588_v56 = vmax.f32 %v13822_v5, %v2587_v44 }
 0x283   : > { %12532 = vpow2.f32 %v2785_v2  ;;  %v2636_v52 = vmax.f32 %v13824_v25, %v2635_v22  ;;  %v2684_v15 = vmax.f32 %v13826_v38, %v2683_v55  ;;  %v2541_v11 = vrot.slane %v2540_v12, 2 }
 0x284   : > { %v2310_v61 = vadd.f32 %v13607_v58, %v13434_v34  ;;  %v2318_v42 = vadd.f32 %v13432_v23, %v13551_v7  ;;  %vm2326_vm13 = vcmp.gt.f32.partialorder %v2294_v4, 0.0  ;;  %v2589_v48 = vrot.slane %v2588_v56, 2 }
 0x285   : > { %v2637_v1 = vrot.slane %v2636_v52, 2  ;;  %v2685_v59 = vrot.slane %v2684_v15, 2  ;;  %vm2334_vm14 = vcmp.gt.f32.partialorder %v2302_v17, 0.0  ;;  %v2542_v8 = vmax.f32 %v2540_v12, %v2541_v11 }
 0x286   : > { %vm2342_vm15 = vcmp.gt.f32.partialorder %v2310_v61, 0.0  ;;  %vm2350_vm0 = vcmp.gt.f32.partialorder %v2318_v42, 0.0  ;;  %v2358_v19 = vmul.f32 0.2, %v2294_v4  ;;  %v2590_v49 = vmax.f32 %v2588_v56, %v2589_v48 }
 0x287   : > { %v2638_v60 = vmax.f32 %v2636_v52, %v2637_v1  ;;  %v2686_v54 = vmax.f32 %v2684_v15, %v2685_v59  ;;  %v2366_v47 = vmul.f32 0.2, %v2302_v17  ;;  %v2543_v35 = vrot.slane %v2542_v8, 1 }
 0x288   : > { %v2374_v6 = vmul.f32 0.2, %v2310_v61  ;;  %v2382_v34 = vmul.f32 0.2, %v2318_v42  ;;  %v2390_v58 = vsel %vm2326_vm13, %v2294_v4, %v2358_v19  ;;  %v2591_v23 = vrot.slane %v2590_v49, 1 }
 0x289   : > { %v2639_v7 = vrot.slane %v2638_v60, 1  ;;  %v2687_v40 = vrot.slane %v2686_v54, 1  ;;  %v2398_v45 = vsel %vm2334_vm14, %v2302_v17, %v2366_v47  ;;  %v2544_v63 = vmax.f32 %v2542_v8, %v2543_v35 }
 0x28a   : > { %v13850_v28 = vpop.eup %12526  ;;  %v2406_v39 = vsel %vm2342_vm15, %v2310_v61, %v2374_v6  ;;  %v2414_v16 = vsel %vm2350_vm0, %v2318_v42, %v2382_v34  ;;  %v13854_v20 = vadd.f32 %v2470_v30, %v2390_v58  ;;  %v2592_v2 = vmax.f32 %v2590_v49, %v2591_v23  ;;  %v13882_v23 = vpop.permute.xlu0 %2796 }
 0x28b   : > { %v13856_v14 = vpop.eup %12528  ;;  %v2640_v41 = vmax.f32 %v2638_v60, %v2639_v7  ;;  %v2688_v44 = vmax.f32 %v2686_v54, %v2687_v40  ;;  %v13858_v22 = vadd.f32 %v2470_v30, %v2398_v45  ;;  %v2701_v12 = vsub.f32 %v13818_v32, %v2544_v63 }
 0x28c   : > { %v13860_v55 = vpop.eup %12530  ;;  %v13863_v4 = vadd.f32 %v2470_v30, %v2406_v39  ;;  %v13865_v17 = vadd.f32 %v2470_v30, %v2414_v16  ;;  %v2545_v56 = vrot.slane %v13854_v20, 4  ;;  %v2709_v15 = vsub.f32 %v13822_v5, %v2592_v2 }
 0x28d   : > { %v13868_v52 = vpop.eup %12532  ;;  %v2717_v11 = vsub.f32 %v13824_v25, %v2640_v41  ;;  %v2725_v61 = vsub.f32 %v13826_v38, %v2688_v44  ;;  %v2593_v42 = vrot.slane %v13858_v22, 4  ;;  %v2739_v48 = vmul.f32 1.442695, %v2701_v12 }
 0x28e   : > { %v2546_v1 = vmax.f32 %v13854_v20, %v2545_v56  ;;  %v2641_v32 = vrot.slane %v13863_v4, 4  ;;  %v2689_v59 = vrot.slane %v13865_v17, 4  ;;  %v2755_v8 = vmul.f32 1.442695, %v2709_v15 }
 0x28f   : > { %v2771_v19 = vmul.f32 1.442695, %v2717_v11  ;;  %v2787_v49 = vmul.f32 1.442695, %v2725_v61  ;;  %v2594_v60 = vmax.f32 %v13858_v22, %v2593_v42  ;;  %12534 = vpow2.f32 %v2739_v48 }
 0x290   : > { %v2547_v5 = vrot.slane %v2546_v1, 2  ;;  %v2642_v25 = vmax.f32 %v13863_v4, %v2641_v32  ;;  %v2690_v38 = vmax.f32 %v13865_v17, %v2689_v59  ;;  %12536 = vpow2.f32 %v2755_v8  ;;  %v2804_v32 = vpop.permute.xlu1 %2803 }
 0x291   : > { %v2595_v54 = vrot.slane %v2594_v60, 2  ;;  %v2603_v30 = vrot.slane %v13674_v13, 1  ;;  %v2651_v47 = vrot.slane %v13588_v31, 1  ;;  %12538 = vpow2.f32 %v2771_v19 }
 0x292   : > { %v2548_v35 = vmax.f32 %v2546_v1, %v2547_v5  ;;  %v2643_v6 = vrot.slane %v2642_v25, 2  ;;  %v2691_v34 = vrot.slane %v2690_v38, 2  ;;  %12540 = vpow2.f32 %v2787_v49 }
 0x293   : > { %v2596_v58 = vmax.f32 %v2594_v60, %v2595_v54  ;;  %v2604_v7 = vmax.f32 %v13674_v13, %v2603_v30  ;;  %v2652_v40 = vmax.f32 %v13588_v31, %v2651_v47  ;;  %v13888_v16 = vmul.f32 %v13620_v62, %v13882_v23 }
 0x294   : > { %v2549_v45 = vrot.slane %v2548_v35, 1  ;;  %v2644_v63 = vmax.f32 %v2642_v25, %v2643_v6  ;;  %v2692_v39 = vmax.f32 %v2690_v38, %v2691_v34  ;;  %v13894_v12 = vmul.f32 %v13617_v18, %v13882_v23 }
 0x295   : > { %v2597_v2 = vrot.slane %v2596_v58, 1  ;;  %v2711_v41 = vsub.f32 %v13625_v24, %v2604_v7  ;;  %v2719_v44 = vsub.f32 %v13569_v37, %v2652_v40  ;;  %v2879_v31 = vrot.slane %v13888_v16, 4 }
 0x296   : > { %v2550_v56 = vmax.f32 %v2548_v35, %v2549_v45  ;;  %v2645_v13 = vrot.slane %v2644_v63, 1  ;;  %v2693_v15 = vrot.slane %v2692_v39, 1  ;;  %v2927_v62 = vrot.slane %v13894_v12, 4 }
 0x297   : > { %v2598_v11 = vmax.f32 %v2596_v58, %v2597_v2  ;;  %v2759_v61 = vmul.f32 1.442695, %v2711_v41  ;;  %v2775_v42 = vmul.f32 1.442695, %v2719_v44  ;;  %v2880_v37 = vadd.f32 %v2879_v31, %v13888_v16 }
 0x298   : > { %v2646_v48 = vmax.f32 %v2644_v63, %v2645_v13  ;;  %v2694_v1 = vmax.f32 %v2692_v39, %v2693_v15  ;;  %v2702_v24 = vsub.f32 %v13854_v20, %v2550_v56  ;;  %v2928_v59 = vadd.f32 %v2927_v62, %v13894_v12 }
 0x299   : > { %v2710_v18 = vsub.f32 %v13858_v22, %v2598_v11  ;;  %12542 = vpow2.f32 %v2759_v61  ;;  %v13903_v8 = vmul.f32 %v13732_v10, %v2804_v32  ;;  %v13905_v19 = vpop.eup %12534  ;;  %v2881_v38 = vrot.slane %v2880_v37, 2 }
 0x29a   : > { %v2718_v49 = vsub.f32 %v13863_v4, %v2646_v48  ;;  %v2726_v60 = vsub.f32 %v13865_v17, %v2694_v1  ;;  %v2741_v5 = vmul.f32 1.442695, %v2702_v24  ;;  %12544 = vpow2.f32 %v2775_v42  ;;  %v13909_v20 = vpop.eup %12536 }
 0x29b   : > { %v2757_v25 = vmul.f32 1.442695, %v2710_v18  ;;  %v2929_v54 = vrot.slane %v2928_v59, 2  ;;  %v13912_v22 = vmul.f32 %v13739_v36, %v2804_v32  ;;  %v13914_v30 = vpop.eup %12538  ;;  %v13917_v35 = vmul.f32 %v13745_v33, %v2804_v32 }
 0x29c   : > { %12546 = vpow2.f32 %v2741_v5  ;;  %v2773_v10 = vmul.f32 1.442695, %v2718_v49  ;;  %v2789_v47 = vmul.f32 1.442695, %v2726_v60  ;;  %v13919_v4 = vpop.eup %12540  ;;  %v2882_v17 = vadd.f32 %v2881_v38, %v2880_v37 }
 0x29d   : > { %12548 = vpow2.f32 %v2757_v25  ;;  %v2930_v6 = vadd.f32 %v2929_v54, %v2928_v59  ;;  %v13922_v34 = vmul.f32 %v13750_v9, %v2804_v32  ;;  %v2885_v36 = vrot.slane %v13903_v8, 4  ;;  %v13931_v9 = vpop.permute.xlu0 %2810 }
 0x29e   : > { %12550 = vpow2.f32 %v2773_v10  ;;  %v2933_v58 = vrot.slane %v13912_v22, 4  ;;  %v2981_v7 = vrot.slane %v13917_v35, 4  ;;  %v2883_v40 = vrot.slane %v2882_v17, 1 }
 0x29f   : > { %12552 = vpow2.f32 %v2789_v47  ;;  %v2931_v45 = vrot.slane %v2930_v6, 1  ;;  %v3029_v33 = vrot.slane %v13922_v34, 4  ;;  %v2886_v63 = vadd.f32 %v2885_v36, %v13903_v8  ;;  %v16147_v36 = vld [vmem:[#allocation18_spill] sm:$0xff] }
 0x2a0   : > { %v2934_v39 = vadd.f32 %v2933_v58, %v13912_v22  ;;  %v2982_v2 = vadd.f32 %v2981_v7, %v13917_v35  ;;  %v16146_v41 = vrot.slane %v13657_v0, 2  ;;  %v2884_v56 = vadd.f32 %v2883_v40, %v2882_v17 }
 0x2a1   : > { %v2932_v13 = vadd.f32 %v2931_v45, %v2930_v6  ;;  %v3030_v15 = vadd.f32 %v3029_v33, %v13922_v34  ;;  %v13939_v31 = vmul.f32 %v13666_v53, %v13931_v9  ;;  %v2887_v11 = vrot.slane %v2886_v63, 2 }
 0x2a2   : > { %v2614_v44 = vmax.f32 %v13657_v0, %v16146_v41  ;;  %v2935_v61 = vrot.slane %v2934_v39, 2  ;;  %v2983_v42 = vrot.slane %v2982_v2, 2  ;;  %12554 = vrcp.f32 %v2884_v56 }
 0x2a3   : > { %v12543_v48 = vpop.eup %12542  ;;  %v3031_v1 = vrot.slane %v3030_v15, 2  ;;  %v13943_v24 = vmul.f32 %v13672_v46, %v13931_v9  ;;  %v13947_v0 = vmul.f32 %v13678_v21, %v13931_v9  ;;  %12556 = vrcp.f32 %v2932_v13 }
 0x2a4   : > { %v2615_v62 = vrot.slane %v2614_v44, 1  ;;  %v12545_v37 = vpop.eup %12544  ;;  %v13950_v32 = vmul.f32 %v12543_v48, %v13882_v23  ;;  %v2888_v53 = vadd.f32 %v2887_v11, %v2886_v63  ;;  %v2936_v18 = vadd.f32 %v2935_v61, %v2934_v39  ;;  %v2818_v11 = vpop.permute.xlu1 %2817 }
 0x2a5   : > { %v13953_v59 = vmul.f32 %v12545_v37, %v13882_v23  ;;  %v2984_v49 = vadd.f32 %v2983_v42, %v2982_v2  ;;  %v3032_v60 = vadd.f32 %v3031_v1, %v3030_v15  ;;  %v2891_v54 = vrot.slane %v13939_v31, 4 }
 0x2a6   : > { %v2616_v5 = vmax.f32 %v2614_v44, %v2615_v62  ;;  %v13955_v25 = vpop.eup %12546  ;;  %v2975_v46 = vrot.slane %v13950_v32, 4  ;;  %v2889_v38 = vrot.slane %v2888_v53, 1  ;;  %v2937_v21 = vrot.slane %v2936_v18, 1 }
 0x2a7   : > { %v13959_v10 = vpop.eup %12548  ;;  %v3023_v47 = vrot.slane %v13953_v59, 4  ;;  %v2985_v17 = vrot.slane %v2984_v49, 1  ;;  %v3033_v6 = vrot.slane %v3032_v60, 1  ;;  %v2892_v33 = vadd.f32 %v2891_v54, %v13939_v31 }
 0x2a8   : > { %v2713_v23 = vsub.f32 %v16147_v36, %v2616_v5  ;;  %v13963_v58 = vpop.eup %12550  ;;  %v2976_v7 = vadd.f32 %v2975_v46, %v13950_v32  ;;  %v2890_v40 = vadd.f32 %v2889_v38, %v2888_v53  ;;  %v2938_v45 = vadd.f32 %v2937_v21, %v2936_v18 }
 0x2a9   : > { %v13967_v63 = vpop.eup %12552  ;;  %v3024_v39 = vadd.f32 %v3023_v47, %v13953_v59  ;;  %v2986_v2 = vadd.f32 %v2985_v17, %v2984_v49  ;;  %v3034_v41 = vadd.f32 %v3033_v6, %v3032_v60  ;;  %v2893_v13 = vrot.slane %v2892_v33, 2 }
 0x2aa   : > { %v2763_v44 = vmul.f32 1.442695, %v2713_v23  ;;  %v2977_v56 = vrot.slane %v2976_v7, 2  ;;  %12558 = vrcp.f32 %v2890_v40  ;;  %v2939_v15 = vrot.slane %v13943_v24, 4 }
 0x2ab   : > { %v3025_v61 = vrot.slane %v3024_v39, 2  ;;  %12560 = vrcp.f32 %v2938_v45  ;;  %v3035_v42 = vrot.slane %v13947_v0, 4  ;;  %v13973_v62 = vmul.f32 %v13774_v27, %v2818_v11 }
 0x2ac   : > { %v2978_v48 = vadd.f32 %v2977_v56, %v2976_v7  ;;  %12562 = vrcp.f32 %v2986_v2  ;;  %v2894_v1 = vadd.f32 %v2893_v13, %v2892_v33  ;;  %v2940_v37 = vadd.f32 %v2939_v15, %v13943_v24  ;;  %v12555_v53 = vpop.eup %12554 }
 0x2ad   : > { %v3026_v18 = vadd.f32 %v3025_v61, %v3024_v39  ;;  %12564 = vrcp.f32 %v3034_v41  ;;  %v3036_v49 = vadd.f32 %v3035_v42, %v13947_v0  ;;  %v13978_v60 = vmul.f32 %v13779_v26, %v2818_v11  ;;  %v12557_v5 = vpop.eup %12556 }
 0x2ae   : > { %v2979_v46 = vrot.slane %v2978_v48, 1  ;;  %v3103_v38 = vmul.f32 %v12555_v53, %v13888_v16  ;;  %12566 = vpow2.f32 %v2763_v44  ;;  %v2895_v27 = vrot.slane %v2894_v1, 1 }
 0x2af   : > { %v3027_v21 = vrot.slane %v3026_v18, 1  ;;  %v3111_v54 = vmul.f32 %v12557_v5, %v13894_v12  ;;  %v2941_v47 = vrot.slane %v2940_v37, 2  ;;  %v3037_v17 = vrot.slane %v3036_v49, 2 }
 0x2b0   : > { %v2980_v6 = vadd.f32 %v2979_v46, %v2978_v48  ;;  %v2896_v36 = vadd.f32 %v2895_v27, %v2894_v1  ;;  %v13983_v23 = vmul.f32 %v13786_v29, %v2818_v11  ;;  %v13986_v7 = vmul.f32 %v13791_v51, %v2818_v11 }
 0x2b1   : > { %v3028_v26 = vadd.f32 %v3027_v21, %v3026_v18  ;;  %v2942_v40 = vadd.f32 %v2941_v47, %v2940_v37  ;;  %v3038_v45 = vadd.f32 %v3037_v17, %v3036_v49  ;;  %v2897_v16 = vrot.slane %v13973_v62, 4 }
 0x2b2   : > { %12568 = vrcp.f32 %v2980_v6  ;;  %v2945_v33 = vrot.slane %v13978_v60, 4  ;;  %v2993_v12 = vrot.slane %v13983_v23, 4  ;;  %v3041_v39 = vrot.slane %v13986_v7, 4 }
 0x2b3   : > { %12570 = vrcp.f32 %v3028_v26  ;;  %v2943_v2 = vrot.slane %v2942_v40, 1  ;;  %v3039_v41 = vrot.slane %v3038_v45, 1  ;;  %v2898_v29 = vadd.f32 %v2897_v16, %v13973_v62 }
 0x2b4   : > { %v12559_v44 = vpop.eup %12558  ;;  %12572 = vrcp.f32 %v2896_v36  ;;  %v2946_v51 = vadd.f32 %v2945_v33, %v13978_v60  ;;  %v2994_v56 = vadd.f32 %v2993_v12, %v13983_v23  ;;  %v3042_v13 = vadd.f32 %v3041_v39, %v13986_v7 }
 0x2b5   : > { %v12561_v15 = vpop.eup %12560  ;;  %v3104_v11 = vmul.f32 %v12559_v44, %v13903_v8  ;;  %v2944_v61 = vadd.f32 %v2943_v2, %v2942_v40  ;;  %v3040_v42 = vadd.f32 %v3039_v41, %v3038_v45  ;;  %v2899_v48 = vrot.slane %v2898_v29, 2  ;;  %v2825_v45 = vpop.permute.xlu0 %2824 }
 0x2b6   : > { %v12563_v1 = vpop.eup %12562  ;;  %v3112_v37 = vmul.f32 %v12561_v15, %v13912_v22  ;;  %v2947_v53 = vrot.slane %v2946_v51, 2  ;;  %v2995_v18 = vrot.slane %v2994_v56, 2  ;;  %v3043_v49 = vrot.slane %v3042_v13, 2 }
 0x2b7   : > { %v12565_v5 = vpop.eup %12564  ;;  %v3120_v46 = vmul.f32 %v12563_v1, %v13917_v35  ;;  %v3135_v27 = vadd.f32 %v3104_v11, %v3103_v38  ;;  %12574 = vrcp.f32 %v2944_v61  ;;  %v2900_v21 = vadd.f32 %v2899_v48, %v2898_v29 }
 0x2b8   : > { %v12567_v47 = vpop.eup %12566  ;;  %v3128_v17 = vmul.f32 %v12565_v5, %v13922_v34  ;;  %v3142_v6 = vadd.f32 %v3112_v37, %v3111_v54  ;;  %12576 = vrcp.f32 %v3040_v42  ;;  %v2948_v8 = vadd.f32 %v2947_v53, %v2946_v51 }
 0x2b9   : > { %v14001_v36 = vmul.f32 %v12567_v47, %v13931_v9  ;;  %v2901_v26 = vrot.slane %v2900_v21, 1  ;;  %v2996_v22 = vadd.f32 %v2995_v18, %v2994_v56  ;;  %v3044_v40 = vadd.f32 %v3043_v49, %v3042_v13 }
 0x2ba   : > { %v2949_v16 = vrot.slane %v2948_v8, 1  ;;  %v14004_v33 = vmul.f32 %v13810_v50, %v2825_v45  ;;  %v14007_v35 = vmul.f32 %v13820_v3, %v2825_v45  ;;  %v14010_v38 = vmul.f32 %v13828_v43, %v2825_v45 }
 0x2bb   : > { %v2987_v34 = vrot.slane %v14001_v36, 4  ;;  %v2902_v54 = vadd.f32 %v2901_v26, %v2900_v21  ;;  %v2997_v12 = vrot.slane %v2996_v22, 1  ;;  %v3045_v9 = vrot.slane %v3044_v40, 1  ;;  %v2832_v26 = vpop.permute.xlu1 %2831 }
 0x2bc   : > { %v12569_v39 = vpop.eup %12568  ;;  %v2950_v2 = vadd.f32 %v2949_v16, %v2948_v8  ;;  %v14014_v41 = vmul.f32 %v13831_v57, %v2825_v45  ;;  %v2903_v29 = vrot.slane %v14004_v33, 4  ;;  %v2951_v50 = vrot.slane %v14007_v35, 4 }
 0x2bd   : > { %v12571_v44 = vpop.eup %12570  ;;  %v3119_v3 = vmul.f32 %v12569_v39, %v13950_v32  ;;  %v2988_v43 = vadd.f32 %v2987_v34, %v14001_v36  ;;  %v2998_v51 = vadd.f32 %v2997_v12, %v2996_v22  ;;  %v3046_v56 = vadd.f32 %v3045_v9, %v3044_v40 }
 0x2be   : > { %v12573_v13 = vpop.eup %12572  ;;  %v3127_v15 = vmul.f32 %v12571_v44, %v13953_v59  ;;  %12578 = vrcp.f32 %v2902_v54  ;;  %v2904_v11 = vadd.f32 %v2903_v29, %v14004_v33  ;;  %v2952_v57 = vadd.f32 %v2951_v50, %v14007_v35 }
 0x2bf   : > { %v14023_v61 = vadd.f32 %v3120_v46, %v3119_v3  ;;  %v2989_v42 = vrot.slane %v2988_v43, 2  ;;  %v3105_v48 = vmul.f32 %v12573_v13, %v13939_v31  ;;  %12580 = vrcp.f32 %v2950_v2 }
 0x2c0   : > { %v3156_v1 = vadd.f32 %v3128_v17, %v3127_v15  ;;  %12582 = vrcp.f32 %v2998_v51  ;;  %v2905_v32 = vrot.slane %v2904_v11, 2  ;;  %v2953_v37 = vrot.slane %v2952_v57, 2 }
 0x2c1   : > { %v12575_v53 = vpop.eup %12574  ;;  %v2990_v18 = vadd.f32 %v2989_v42, %v2988_v43  ;;  %v3136_v49 = vadd.f32 %v3135_v27, %v3105_v48  ;;  %12584 = vrcp.f32 %v3046_v56  ;;  %v2999_v59 = vrot.slane %v14010_v38, 4 }
 0x2c2   : > { %v12577_v5 = vpop.eup %12576  ;;  %v3113_v21 = vmul.f32 %v12575_v53, %v13943_v24  ;;  %v2906_v47 = vadd.f32 %v2905_v32, %v2904_v11  ;;  %v2954_v46 = vadd.f32 %v2953_v37, %v2952_v57  ;;  %v3047_v8 = vrot.slane %v14014_v41, 4 }
 0x2c3   : > { %v2991_v31 = vrot.slane %v2990_v18, 1  ;;  %v3129_v17 = vmul.f32 %v12577_v5, %v13947_v0  ;;  %v3000_v22 = vadd.f32 %v2999_v59, %v14010_v38  ;;  %v14032_v40 = vmul.f32 %v13850_v28, %v2832_v26 }
 0x2c4   : > { %v3143_v27 = vadd.f32 %v3142_v6, %v3113_v21  ;;  %v2907_v45 = vrot.slane %v2906_v47, 1  ;;  %v2955_v16 = vrot.slane %v2954_v46, 1  ;;  %v3048_v34 = vadd.f32 %v3047_v8, %v14014_v41 }
 0x2c5   : > { %v2992_v54 = vadd.f32 %v2991_v31, %v2990_v18  ;;  %v3157_v24 = vadd.f32 %v3156_v1, %v3129_v17  ;;  %v3001_v12 = vrot.slane %v3000_v22, 2  ;;  %v14036_v9 = vmul.f32 %v13856_v14, %v2832_v26  ;;  %v2839_v18 = vpop.permute.xlu0 %2838 }
 0x2c6   : > { %v2908_v39 = vadd.f32 %v2907_v45, %v2906_v47  ;;  %v2956_v2 = vadd.f32 %v2955_v16, %v2954_v46  ;;  %v3049_v29 = vrot.slane %v3048_v34, 2  ;;  %v14039_v0 = vmul.f32 %v13860_v55, %v2832_v26 }
 0x2c7   : > { %12586 = vrcp.f32 %v2992_v54  ;;  %v3002_v28 = vadd.f32 %v3001_v12, %v3000_v22  ;;  %v14042_v6 = vmul.f32 %v13868_v52, %v2832_v26  ;;  %v2909_v50 = vrot.slane %v14032_v40, 4 }
 0x2c8   : > { %v12579_v44 = vpop.eup %12578  ;;  %v3050_v3 = vadd.f32 %v3049_v29, %v3048_v34  ;;  %12588 = vrcp.f32 %v2908_v39  ;;  %v2957_v43 = vrot.slane %v14036_v9, 4  ;;  %v3005_v14 = vrot.slane %v14039_v0, 4 }
 0x2c9   : > { %v12581_v51 = vpop.eup %12580  ;;  %v3106_v56 = vmul.f32 %v12579_v44, %v13973_v62  ;;  %v3003_v13 = vrot.slane %v3002_v28, 1  ;;  %12590 = vrcp.f32 %v2956_v2  ;;  %v2910_v55 = vadd.f32 %v2909_v50, %v14032_v40 }
 0x2ca   : > { %v12583_v15 = vpop.eup %12582  ;;  %v3114_v52 = vmul.f32 %v12581_v51, %v13978_v60  ;;  %v3051_v11 = vrot.slane %v3050_v3, 1  ;;  %v2958_v57 = vadd.f32 %v2957_v43, %v14036_v9  ;;  %v3006_v42 = vadd.f32 %v3005_v14, %v14039_v0  ;;  %v2846_v51 = vpop.permute.xlu1 %2845 }
 0x2cb   : > { %v12585_v48 = vpop.eup %12584  ;;  %v3122_v1 = vmul.f32 %v12583_v15, %v13983_v23  ;;  %v3137_v32 = vadd.f32 %v3136_v49, %v3106_v56  ;;  %v3004_v37 = vadd.f32 %v3003_v13, %v3002_v28  ;;  %v2911_v53 = vrot.slane %v2910_v55, 2 }
 0x2cc   : > { %v3130_v62 = vmul.f32 %v12585_v48, %v13986_v7  ;;  %v3144_v59 = vadd.f32 %v3143_v27, %v3114_v52  ;;  %v3052_v5 = vadd.f32 %v3051_v11, %v3050_v3  ;;  %v2959_v21 = vrot.slane %v2958_v57, 2 }
 0x2cd   : > { %12592 = vrcp.f32 %v3004_v37  ;;  %v2912_v47 = vadd.f32 %v2911_v53, %v2910_v55  ;;  %v3007_v60 = vrot.slane %v3006_v42, 2  ;;  %v3053_v46 = vrot.slane %v14042_v6, 4 }
 0x2ce   : > { %v3158_v8 = vadd.f32 %v3157_v24, %v3130_v62  ;;  %12594 = vrcp.f32 %v3052_v5  ;;  %v2960_v26 = vadd.f32 %v2959_v21, %v2958_v57  ;;  %v14056_v31 = vmul.f32 %v13905_v19, %v2839_v18 }
 0x2cf   : > { %v2913_v23 = vrot.slane %v2912_v47, 1  ;;  %v3008_v49 = vadd.f32 %v3007_v60, %v3006_v42  ;;  %v3054_v17 = vadd.f32 %v3053_v46, %v14042_v6  ;;  %v14060_v7 = vmul.f32 %v13909_v20, %v2839_v18 }
 0x2d0   : > { %v2961_v22 = vrot.slane %v2960_v26, 1  ;;  %v14063_v27 = vmul.f32 %v13914_v30, %v2839_v18  ;;  %v14066_v45 = vmul.f32 %v13919_v4, %v2839_v18  ;;  %v2915_v16 = vrot.slane %v14056_v31, 4 }
 0x2d1   : > { %v12587_v34 = vpop.eup %12586  ;;  %v2914_v54 = vadd.f32 %v2913_v23, %v2912_v47  ;;  %v3009_v19 = vrot.slane %v3008_v49, 1  ;;  %v3055_v24 = vrot.slane %v3054_v17, 2  ;;  %v2963_v12 = vrot.slane %v14060_v7, 4 }
 0x2d2   : > { %v12589_v39 = vpop.eup %12588  ;;  %v3121_v2 = vmul.f32 %v12587_v34, %v14001_v36  ;;  %v2962_v20 = vadd.f32 %v2961_v22, %v2960_v26  ;;  %v2916_v29 = vadd.f32 %v2915_v16, %v14056_v31  ;;  %v3011_v30 = vrot.slane %v14063_v27, 4 }
 0x2d3   : > { %v12591_v28 = vpop.eup %12590  ;;  %v3107_v4 = vmul.f32 %v12589_v39, %v14004_v33  ;;  %v3010_v50 = vadd.f32 %v3009_v19, %v3008_v49  ;;  %v3056_v44 = vadd.f32 %v3055_v24, %v3054_v17  ;;  %12596 = vrcp.f32 %v2914_v54 }
 0x2d4   : > { %v3150_v3 = vadd.f32 %v14023_v61, %v3121_v2  ;;  %v3115_v43 = vmul.f32 %v12591_v28, %v14007_v35  ;;  %12598 = vrcp.f32 %v2962_v20  ;;  %v2917_v14 = vrot.slane %v2916_v29, 2 }
 0x2d5   : > { %v3138_v56 = vadd.f32 %v3137_v32, %v3107_v4  ;;  %v3057_v36 = vrot.slane %v3056_v44, 1  ;;  %12600 = vrcp.f32 %v3010_v50  ;;  %v2964_v13 = vadd.f32 %v2963_v12, %v14060_v7 }
 0x2d6   : > { %v3151_v55 = vadd.f32 %v3150_v3, %v3122_v1  ;;  %v3145_v15 = vadd.f32 %v3144_v59, %v3115_v43  ;;  %v2918_v52 = vadd.f32 %v2917_v14, %v2916_v29  ;;  %v3012_v33 = vadd.f32 %v3011_v30, %v14063_v27 }
 0x2d7   : > { %v12593_v11 = vpop.eup %12592  ;;  %v3058_v57 = vadd.f32 %v3057_v36, %v3056_v44  ;;  %v2965_v42 = vrot.slane %v2964_v13, 2  ;;  %v3059_v61 = vrot.slane %v14066_v45, 4  ;;  %v14080_v35 = vmul.f32 %v13955_v25, %v2846_v51 }
 0x2d8   : > { %v12595_v48 = vpop.eup %12594  ;;  %v3123_v32 = vmul.f32 %v12593_v11, %v14010_v38  ;;  %v2919_v37 = vrot.slane %v2918_v52, 1  ;;  %v3013_v53 = vrot.slane %v3012_v33, 2  ;;  %v14084_v18 = vmul.f32 %v13959_v10, %v2846_v51 }
 0x2d9   : > { %v3131_v1 = vmul.f32 %v12595_v48, %v14014_v41  ;;  %12602 = vrcp.f32 %v3058_v57  ;;  %v2966_v62 = vadd.f32 %v2965_v42, %v2964_v13  ;;  %v3060_v59 = vadd.f32 %v3059_v61, %v14066_v45  ;;  %v14106_v57 = vpop.permute.xlu1 %3283 }
 0x2da   : > { %v3152_v5 = vadd.f32 %v3151_v55, %v3123_v32  ;;  %v2920_v21 = vadd.f32 %v2919_v37, %v2918_v52  ;;  %v3014_v47 = vadd.f32 %v3013_v53, %v3012_v33  ;;  %v14089_v25 = vmul.f32 %v13963_v58, %v2846_v51 }
 0x2db   : > { %v3159_v60 = vadd.f32 %v3158_v8, %v3131_v1  ;;  %v2967_v46 = vrot.slane %v2966_v62, 1  ;;  %v3061_v38 = vrot.slane %v3060_v59, 2  ;;  %v14092_v26 = vmul.f32 %v13967_v63, %v2846_v51 }
 0x2dc   : > { %v3015_v10 = vrot.slane %v3014_v47, 1  ;;  %12604 = vrcp.f32 %v2920_v21  ;;  %v2921_v41 = vrot.slane %v14080_v35, 4  ;;  %v2969_v23 = vrot.slane %v14084_v18, 4 }
 0x2dd   : > { %v12597_v49 = vpop.eup %12596  ;;  %v2968_v17 = vadd.f32 %v2967_v46, %v2966_v62  ;;  %v3062_v22 = vadd.f32 %v3061_v38, %v3060_v59  ;;  %v3017_v16 = vrot.slane %v14089_v25, 4  ;;  %v3065_v58 = vrot.slane %v14092_v26, 4  ;;  %v14110_v59 = vpop.permute.xlu0 %3279 }
 0x2de   : > { %v12599_v34 = vpop.eup %12598  ;;  %v3108_v8 = vmul.f32 %v12597_v49, %v14032_v40  ;;  %v3016_v54 = vadd.f32 %v3015_v10, %v3014_v47  ;;  %v2922_v63 = vadd.f32 %v2921_v41, %v14080_v35  ;;  %v2970_v19 = vadd.f32 %v2969_v23, %v14084_v18  ;;  %v14118_v10 = vpop.permute.xlu1 %3332 }
 0x2df   : > { %v12601_v24 = vpop.eup %12600  ;;  %v3116_v12 = vmul.f32 %v12599_v34, %v14036_v9  ;;  %v3063_v39 = vrot.slane %v3062_v22, 1  ;;  %12606 = vrcp.f32 %v2968_v17  ;;  %v3018_v2 = vadd.f32 %v3017_v16, %v14089_v25  ;;  %v3479_v34 = vld [vmem:[%s15936_s5] sm:$0xff] }
 0x2e0   : > { %v3124_v20 = vmul.f32 %v12601_v24, %v14039_v0  ;;  %v3139_v29 = vadd.f32 %v3138_v56, %v3108_v8  ;;  %12608 = vrcp.f32 %v3016_v54  ;;  %v2923_v30 = vrot.slane %v2922_v63, 2  ;;  %v3480_v8 = vld [vmem:[%s15936_s5 + $0x8] sm:$0xff]  ;;  %v3481_v54 = vld [vmem:[%s15936_s5 + $0x10] sm:$0xff] }
 0x2e1   : > { %v3146_v28 = vadd.f32 %v3145_v15, %v3116_v12  ;;  %v3064_v4 = vadd.f32 %v3063_v39, %v3062_v22  ;;  %v2971_v40 = vrot.slane %v2970_v19, 2  ;;  %v3019_v50 = vrot.slane %v3018_v2, 2  ;;  %v3482_v12 = vld [vmem:[%s15936_s5 + $0x18] sm:$0xff]  ;;  %v14146_v39 = vld [vmem:[%s15936_s5 + $0x20] sm:$0xff] }
 0x2e2   : > { %v3153_v44 = vadd.f32 %v3152_v5, %v3124_v20  ;;  %v2924_v3 = vadd.f32 %v2923_v30, %v2922_v63  ;;  %v3066_v43 = vadd.f32 %v3065_v58, %v14092_v26  ;;  %v3285_v49 = vrot.slane %v14110_v59, 1 }
 0x2e3   : > { %v12603_v14 = vpop.eup %12602  ;;  %12610 = vrcp.f32 %v3064_v4  ;;  %v2972_v9 = vadd.f32 %v2971_v40, %v2970_v19  ;;  %v3020_v51 = vadd.f32 %v3019_v50, %v3018_v2  ;;  %v3286_v22 = vrot.slane %v14110_v59, 2 }
 0x2e4   : > { %v3132_v36 = vmul.f32 %v12603_v14, %v14042_v6  ;;  %v2925_v13 = vrot.slane %v2924_v3, 1  ;;  %v3067_v55 = vrot.slane %v3066_v43, 2  ;;  %v3287_v16 = vrot.slane %v14110_v59, 3 }
 0x2e5   : > { %v2973_v0 = vrot.slane %v2972_v9, 1  ;;  %v3021_v56 = vrot.slane %v3020_v51, 1  ;;  %v3288_v58 = vrot.slane %v14110_v59, 4  ;;  %v3290_v63 = vrot.slane %v14110_v59, 6 }
 0x2e6   : > { %v12605_v52 = vpop.eup %12604  ;;  %v3160_v33 = vadd.f32 %v3159_v60, %v3132_v36  ;;  %v2926_v15 = vadd.f32 %v2925_v13, %v2924_v3  ;;  %v3068_v11 = vadd.f32 %v3067_v55, %v3066_v43  ;;  %v3291_v19 = vrot.slane %v14110_v59, 7 }
 0x2e7   : > { %v3109_v42 = vmul.f32 %v12605_v52, %v14056_v31  ;;  %v2974_v61 = vadd.f32 %v2973_v0, %v2972_v9  ;;  %v3022_v48 = vadd.f32 %v3021_v56, %v3020_v51  ;;  %v3549_v4 = vand.u32 4294901760, %v3479_v34  ;;  %v14159_v9 = vpop.permute.xlu0 %3335 }
 0x2e8   : > { %v3069_v32 = vrot.slane %v3068_v11, 1  ;;  %12612 = vrcp.f32 %v2926_v15  ;;  %v3552_v40 = vand.u32 4294901760, %v3480_v8  ;;  %v3555_v50 = vand.u32 4294901760, %v3481_v54 }
 0x2e9   : > { %v12607_v37 = vpop.eup %12606  ;;  %v3140_v53 = vadd.f32 %v3139_v29, %v3109_v42  ;;  %12614 = vrcp.f32 %v2974_v61  ;;  %v3558_v51 = vand.u32 4294901760, %v3482_v12  ;;  %v3561_v36 = vand.u32 4294901760, %v14146_v39 }
 0x2ea   : > { %v12609_v6 = vpop.eup %12608  ;;  %v3117_v1 = vmul.f32 %v12607_v37, %v14060_v7  ;;  %v3070_v62 = vadd.f32 %v3069_v32, %v3068_v11  ;;  %12616 = vrcp.f32 %v3022_v48  ;;  %v14163_v0 = vpack.c.bf16 %v3552_v40, %v3549_v4 }
 0x2eb   : > { %v3125_v5 = vmul.f32 %v12609_v6, %v14063_v27  ;;  %v14165_v56 = vsub.f32 %v3479_v34, %v3549_v4  ;;  %v14167_v52 = vsub.f32 %v3480_v8, %v3552_v40  ;;  %v14170_v11 = vsub.f32 %v3481_v54, %v3555_v50  ;;  %v16149_v34 = vld [vmem:[#allocation3_spill] sm:$0xff]  ;;  %v16150_v8 = vld [vmem:[#allocation5_spill] sm:$0xff] }
 0x2ec   : > { %v3147_v60 = vadd.f32 %v3146_v28, %v3117_v1  ;;  %12618 = vrcp.f32 %v3070_v62  ;;  %v14172_v42 = vsub.f32 %v3482_v12, %v3558_v51  ;;  %11344 = vmatprep.subr.bf16.mxu0 %v14163_v0  ;;  %v14180_v62 = vpack.c.bf16 %v3558_v51, %v3555_v50  ;;  %v16151_v12 = vld [vmem:[#allocation4_spill] sm:$0xff]  ;;  %v16152_v40 = vld [vmem:[#allocation7_spill] sm:$0xff] }
 0x2ed   : > { %v12611_v7 = vpop.eup %12610  ;;  %v3154_v41 = vadd.f32 %v3153_v44, %v3125_v5  ;;  %v14155_v44 = vld [vmem:[%s15936_s5 + $0x28] sm:$0xff]  ;;  %v11407_v37 = vpack.c.bf16 %v14167_v52, %v14165_v56  ;;  %11346 = vmatpush3.bf16.msra.mxu0 %v14163_v0  ;;  %vm3512_vm7 = vcmask 1041409   ;;  %vm3515_vm8 = vcmask 1042434  }
 0x2ee   : > { %v3133_v17 = vmul.f32 %v12611_v7, %v14066_v45  ;;  %v3289_v45 = vrot.slane %v14110_v59, 5  ;;  %v3564_v61 = vand.u32 4294901760, %v14155_v44  ;;  %v16148_v7 = vld [vmem:[#allocation2_spill] sm:$0xff]  ;;  %11348 = vmatprep.subr.bf16.mxu0 %v14180_v62  ;;  %vm3518_vm9 = vcmask 1043459  }
 0x2ef   : > { %11408 = vmatprep.subr.bf16.mxu1 %v11407_v37 }
 0x2f0   : > { %v3161_v2 = vadd.f32 %v3160_v33, %v3133_v17  ;;  %11410 = vmatpush3.bf16.msra.mxu1 %v11407_v37 }
 0x2f1   : > { %11350 = vmatpush3.bf16.msra.mxu0 %v14180_v62 }
 0x2f2   : > { %v12613_v3 = vpop.eup %12612 }
 0x2f3   : > { %v12615_v13 = vpop.eup %12614  ;;  %v3110_v55 = vmul.f32 %v12613_v3, %v14080_v35  ;;  %v16153_v3 = vld [vmem:[#allocation6_spill] sm:$0xff] }
 0x2f4   : > { %v12617_v33 = vpop.eup %12616  ;;  %v3118_v15 = vmul.f32 %v12615_v13, %v14084_v18  ;;  %v11411_v18 = vpack.c.bf16 %v14172_v42, %v14170_v11 }
 0x2f5   : > { %v3126_v48 = vmul.f32 %v12617_v33, %v14089_v25  ;;  %v3141_v32 = vadd.f32 %v3140_v53, %v3110_v55  ;;  %v14189_v25 = vpack.c.bf16 %v3564_v61, %v3561_v36  ;;  %v16154_v55 = vld [vmem:[#allocation9_spill] sm:$0xff] }
 0x2f6   : > { %v12619_v6 = vpop.eup %12618  ;;  %v3148_v1 = vadd.f32 %v3147_v60, %v3118_v15  ;;  %v16155_v15 = vld [vmem:[#allocation8_spill] sm:$0xff]  ;;  %11412 = vmatprep.subr.bf16.mxu1 %v11411_v18 }
 0x2f7   : > { %v3134_v53 = vmul.f32 %v12619_v6, %v14092_v26  ;;  %v3155_v5 = vadd.f32 %v3154_v41, %v3126_v48  ;;  %v3163_v17 = vmul.f32 %v3141_v32, %v16148_v7  ;;  %v3164_v60 = vmul.f32 %v16149_v34, %v3141_v32  ;;  %v16156_v41 = vld [vmem:[#allocation11_spill] sm:$0xff]  ;;  %v16157_v6 = vld [vmem:[#allocation10_spill] sm:$0xff]  ;;  %v16158_v34 = vld [vmem:[#allocation13_spill] sm:$0xff]  ;;  %11414 = vmatpush3.bf16.msra.mxu1 %v11411_v18 }
 0x2f8   : > { %v3165_v54 = vmul.f32 %v3141_v32, %v16150_v8  ;;  %v3166_v4 = vmul.f32 %v16151_v12, %v3141_v32  ;;  %v3167_v50 = vmul.f32 %v3148_v1, %v16152_v40  ;;  %v3168_v51 = vmul.f32 %v16153_v3, %v3148_v1  ;;  %v16159_v8 = vld [vmem:[#allocation12_spill] sm:$0xff]  ;;  %v16162_v40 = vld [vmem:[#allocation17_spill] sm:$0xff]  ;;  %11352 = vmatprep.subr.bf16.mxu0 %v14189_v25 }
 0x2f9   : > { %v3162_v13 = vadd.f32 %v3161_v2, %v3134_v53  ;;  %v3169_v33 = vmul.f32 %v3148_v1, %v16154_v55  ;;  %v3170_v26 = vmul.f32 %v16155_v15, %v3148_v1  ;;  %v3171_v48 = vmul.f32 %v3155_v5, %v16156_v41  ;;  %v16160_v12 = vld [vmem:[#allocation16_spill] sm:$0xff]  ;;  %v16161_v2 = vld [vmem:[#allocation14_spill] sm:$0xff]  ;;  %v16163_v1 = vld [vmem:[#allocation15_spill] sm:$0xff]  ;;  %11354 = vmatpush3.bf16.msra.mxu0 %v14189_v25 }
 0x2fa   : > { %v3172_v7 = vmul.f32 %v16157_v6, %v3155_v5  ;;  %v3173_v35 = vmul.f32 %v3155_v5, %v16158_v34  ;;  %v14204_v27 = vmul.f32 %v16159_v8, %v3155_v5  ;;  %v3179_v32 = vrot.slane %v3163_v17, 4 }
 0x2fb   : > { %v3175_v37 = vmul.f32 %v3162_v13, %v16160_v12  ;;  %v3176_v53 = vmul.f32 %v16161_v2, %v3162_v13  ;;  %v14210_v3 = vmul.f32 %v3162_v13, %v16162_v40  ;;  %v14213_v55 = vmul.f32 %v16163_v1, %v3162_v13  ;;  %v14221_v13 = vld [vmem:[%s15936_s5 + $0x30] sm:$0xff] }
 0x2fc   : > { %v3180_v15 = vadd.f32 %v3179_v32, %v3163_v17  ;;  %v3185_v41 = vrot.slane %v3164_v60, 4  ;;  %v3191_v6 = vrot.slane %v3165_v54, 4  ;;  %v3197_v5 = vrot.slane %v3166_v4, 4 }
 0x2fd   : > { %v3203_v34 = vrot.slane %v3167_v50, 4  ;;  %v3209_v8 = vrot.slane %v3168_v51, 4  ;;  %v3215_v12 = vrot.slane %v3169_v33, 4  ;;  %v3221_v23 = vrot.slane %v3170_v26, 4 }
 0x2fe   : > { %v3186_v2 = vadd.f32 %v3185_v41, %v3164_v60  ;;  %v3192_v38 = vadd.f32 %v3191_v6, %v3165_v54  ;;  %v3198_v40 = vadd.f32 %v3197_v5, %v3166_v4  ;;  %v3181_v4 = vrot.slane %v3180_v15, 2 }
 0x2ff   : > { %v3204_v17 = vadd.f32 %v3203_v34, %v3167_v50  ;;  %v3210_v32 = vadd.f32 %v3209_v8, %v3168_v51  ;;  %v3216_v1 = vadd.f32 %v3215_v12, %v3169_v33  ;;  %v3222_v18 = vadd.f32 %v3221_v23, %v3170_v26 }
 0x300   : > { %v3187_v47 = vrot.slane %v3186_v2, 2  ;;  %v3193_v50 = vrot.slane %v3192_v38, 2  ;;  %v3199_v51 = vrot.slane %v3198_v40, 2  ;;  %v3227_v23 = vrot.slane %v3171_v48, 4 }
 0x301   : > { %v3205_v33 = vrot.slane %v3204_v17, 2  ;;  %v3211_v26 = vrot.slane %v3210_v32, 2  ;;  %v3217_v34 = vrot.slane %v3216_v1, 2  ;;  %v3223_v8 = vrot.slane %v3222_v18, 2 }
 0x302   : > { %v14233_v12 = vsub.f32 %v14146_v39, %v3561_v36  ;;  %v3188_v54 = vadd.f32 %v3187_v47, %v3186_v2  ;;  %v3233_v60 = vrot.slane %v3172_v7, 4  ;;  %v3239_v31 = vrot.slane %v3173_v35, 4 }
 0x303   : > { %v14238_v6 = vsub.f32 %v14155_v44, %v3564_v61  ;;  %v3245_v5 = vrot.slane %v14204_v27, 4  ;;  %v3251_v41 = vrot.slane %v3175_v37, 4  ;;  %v3257_v46 = vrot.slane %v3176_v53, 4 }
 0x304   : > { %v3182_v21 = vadd.f32 %v3181_v4, %v3180_v15  ;;  %v3194_v14 = vadd.f32 %v3193_v50, %v3192_v38  ;;  %v3200_v43 = vadd.f32 %v3199_v51, %v3198_v40  ;;  %v3206_v28 = vadd.f32 %v3205_v33, %v3204_v17 }
 0x305   : > { %v14241_v30 = vadd.f32 %v3227_v23, %v3171_v48  ;;  %v3212_v39 = vadd.f32 %v3211_v26, %v3210_v32  ;;  %v3218_v36 = vadd.f32 %v3217_v34, %v3216_v1  ;;  %v3224_v47 = vadd.f32 %v3223_v8, %v3222_v18 }
 0x306   : > { %v3183_v2 = vrot.slane %v3182_v21, 1  ;;  %v3234_v29 = vadd.f32 %v3233_v60, %v3172_v7  ;;  %v14243_v20 = vadd.f32 %v3239_v31, %v3173_v35  ;;  %v3263_v44 = vrot.slane %v14210_v3, 4 }
 0x307   : > { %v3269_v61 = vrot.slane %v14213_v55, 4  ;;  %v14248_v24 = vadd.f32 %v3245_v5, %v14204_v27  ;;  %v14250_v15 = vadd.f32 %v3251_v41, %v3175_v37  ;;  %v14252_v38 = vadd.f32 %v3257_v46, %v3176_v53 }
 0x308   : > { %v3184_v48 = vadd.f32 %v3183_v2, %v3182_v21  ;;  %v3189_v40 = vrot.slane %v3188_v54, 1  ;;  %v3195_v17 = vrot.slane %v3194_v14, 1  ;;  %v3201_v32 = vrot.slane %v3200_v43, 1 }
 0x309   : > { %v3207_v1 = vrot.slane %v3206_v28, 1  ;;  %v3213_v18 = vrot.slane %v3212_v39, 1  ;;  %v3219_v7 = vrot.slane %v3218_v36, 1  ;;  %v3225_v31 = vrot.slane %v3224_v47, 1 }
 0x30a   : > { %v3315_v35 = vmul.f32 %v14110_v59, %v3184_v48  ;;  %v3190_v60 = vadd.f32 %v3189_v40, %v3188_v54  ;;  %v3196_v4 = vadd.f32 %v3195_v17, %v3194_v14  ;;  %v3202_v50 = vadd.f32 %v3201_v32, %v3200_v43 }
 0x30b   : > { %v3208_v51 = vadd.f32 %v3207_v1, %v3206_v28  ;;  %v3214_v27 = vadd.f32 %v3213_v18, %v3212_v39  ;;  %v3220_v5 = vadd.f32 %v3219_v7, %v3218_v36  ;;  %v3226_v37 = vadd.f32 %v3225_v31, %v3224_v47 }
 0x30c   : > { %v14256_v46 = vadd.f32 %v14118_v10, %v3315_v35  ;;  %v3316_v21 = vmul.f32 %v3285_v49, %v3190_v60  ;;  %v3317_v53 = vmul.f32 %v3286_v22, %v3196_v4  ;;  %v3318_v41 = vmul.f32 %v3287_v16, %v3202_v50 }
 0x30d   : > { %v3319_v14 = vmul.f32 %v3288_v58, %v3208_v51  ;;  %v3264_v28 = vadd.f32 %v3263_v44, %v14210_v3  ;;  %v3320_v43 = vmul.f32 %v3289_v45, %v3214_v27  ;;  %v3321_v54 = vmul.f32 %v3290_v63, %v3220_v5 }
 0x30e   : > { %v3322_v49 = vmul.f32 %v3291_v19, %v3226_v37  ;;  %v16164_v33 = vrot.slane %v14118_v10, 1  ;;  %v16165_v16 = vrot.slane %v14118_v10, 2  ;;  %v16166_v58 = vrot.slane %v14118_v10, 3 }
 0x30f   : > { %v16167_v45 = vrot.slane %v14118_v10, 4  ;;  %v3235_v63 = vrot.slane %v3234_v29, 2  ;;  %v3270_v59 = vadd.f32 %v3269_v61, %v14213_v55  ;;  %v16168_v19 = vrot.slane %v14118_v10, 5 }
 0x310   : > { %v14275_v22 = vadd.f32 %v16164_v33, %v3316_v21  ;;  %v14279_v23 = vadd.f32 %v16165_v16, %v3317_v53  ;;  %v14283_v3 = vadd.f32 %v16166_v58, %v3318_v41  ;;  %v3399_v8 = vmin.f32 %v14256_v46, 0.0 }
 0x311   : > { %v14287_v26 = vadd.f32 %v16167_v45, %v3319_v14  ;;  %v14292_v34 = vadd.f32 %v16168_v19, %v3320_v43  ;;  %v3241_v39 = vrot.slane %v14243_v20, 2  ;;  %v3247_v36 = vrot.slane %v14248_v24, 2 }
 0x312   : > { %v3253_v47 = vrot.slane %v14250_v15, 2  ;;  %v16169_v2 = vrot.slane %v14118_v10, 6  ;;  %v3259_v48 = vrot.slane %v14252_v38, 2  ;;  %v16170_v55 = vrot.slane %v14118_v10, 7 }
 0x313   : > { %v3400_v40 = vmin.f32 %v14275_v22, 0.0  ;;  %v3401_v17 = vmin.f32 %v14279_v23, 0.0  ;;  %v3265_v32 = vrot.slane %v3264_v28, 2  ;;  %v3402_v1 = vmin.f32 %v14283_v3, 0.0 }
 0x314   : > { %v14300_v44 = vadd.f32 %v16169_v2, %v3321_v54  ;;  %v14305_v61 = vadd.f32 %v16170_v55, %v3322_v49  ;;  %v3403_v18 = vmin.f32 %v14287_v26, 0.0  ;;  %v3404_v7 = vmin.f32 %v14292_v34, 0.0 }
 0x315   : > { %v3271_v31 = vrot.slane %v3270_v59, 2  ;;  %v3415_v35 = vmul.f32 1.442695, %v3399_v8  ;;  %v3417_v60 = vmul.f32 1.442695, %v3400_v40  ;;  %v3229_v4 = vrot.slane %v14241_v30, 2 }
 0x316   : > { %v3405_v10 = vmin.f32 %v14300_v44, 0.0  ;;  %v3419_v50 = vmul.f32 1.442695, %v3401_v17  ;;  %v3421_v51 = vmul.f32 1.442695, %v3402_v1  ;;  %v3236_v27 = vadd.f32 %v3235_v63, %v3234_v29 }
 0x317   : > { %v3406_v5 = vmin.f32 %v14305_v61, 0.0  ;;  %12620 = vpow2.f32 %v3415_v35  ;;  %v3423_v37 = vmul.f32 1.442695, %v3403_v18  ;;  %v3425_v21 = vmul.f32 1.442695, %v3404_v7 }
 0x318   : > { %12622 = vpow2.f32 %v3417_v60  ;;  %v3230_v53 = vadd.f32 %v3229_v4, %v14241_v30  ;;  %v3237_v41 = vrot.slane %v3236_v27, 1  ;;  %v3242_v14 = vadd.f32 %v3241_v39, %v14243_v20 }
 0x319   : > { %12624 = vpow2.f32 %v3419_v50  ;;  %v3248_v43 = vadd.f32 %v3247_v36, %v14248_v24  ;;  %v3254_v54 = vadd.f32 %v3253_v47, %v14250_v15  ;;  %v3260_v49 = vadd.f32 %v3259_v48, %v14252_v38 }
 0x31a   : > { %12626 = vpow2.f32 %v3421_v51  ;;  %v3231_v29 = vrot.slane %v3230_v53, 1  ;;  %v3238_v33 = vadd.f32 %v3237_v41, %v3236_v27  ;;  %v3243_v16 = vrot.slane %v3242_v14, 1 }
 0x31b   : > { %12628 = vpow2.f32 %v3423_v37  ;;  %v3249_v58 = vrot.slane %v3248_v43, 1  ;;  %v3255_v45 = vrot.slane %v3254_v54, 1  ;;  %v3261_v63 = vrot.slane %v3260_v49, 1 }
 0x31c   : > { %12630 = vpow2.f32 %v3425_v21  ;;  %v3232_v30 = vadd.f32 %v3231_v29, %v3230_v53  ;;  %v3244_v19 = vadd.f32 %v3243_v16, %v3242_v14  ;;  %v3266_v8 = vadd.f32 %v3265_v32, %v3264_v28 }
 0x31d   : > { %vm3383_vm1 = vcmp.gt.f32.partialorder %v14256_v46, 0.0  ;;  %vm3384_vm2 = vcmp.gt.f32.partialorder %v14275_v22, 0.0  ;;  %v3250_v24 = vadd.f32 %v3249_v58, %v3248_v43  ;;  %v3256_v20 = vadd.f32 %v3255_v45, %v3254_v54 }
 0x31e   : > { %v3427_v15 = vmul.f32 1.442695, %v3405_v10  ;;  %v3262_v38 = vadd.f32 %v3261_v63, %v3260_v49  ;;  %v3267_v39 = vrot.slane %v3266_v8, 1  ;;  %v3272_v36 = vadd.f32 %v3271_v31, %v3270_v59 }
 0x31f   : > { %vm3385_vm3 = vcmp.gt.f32.partialorder %v14279_v23, 0.0  ;;  %vm3386_vm4 = vcmp.gt.f32.partialorder %v14283_v3, 0.0  ;;  %v3429_v47 = vmul.f32 1.442695, %v3406_v5  ;;  %v3323_v2 = vmul.f32 %v14106_v57, %v3232_v30 }
 0x320   : > { %v3268_v48 = vadd.f32 %v3267_v39, %v3266_v8  ;;  %v3273_v55 = vrot.slane %v3272_v36, 1  ;;  %v16171_v28 = vrot.slane %v14106_v57, 1  ;;  %v16172_v17 = vrot.slane %v14106_v57, 2 }
 0x321   : > { %v12621_v1 = vpop.eup %12620  ;;  %vm3387_vm5 = vcmp.gt.f32.partialorder %v14287_v26, 0.0  ;;  %vm3388_vm6 = vcmp.gt.f32.partialorder %v14292_v34, 0.0  ;;  %v16173_v59 = vrot.slane %v14106_v57, 3  ;;  %v16174_v7 = vrot.slane %v14106_v57, 4 }
 0x322   : > { %v3324_v40 = vmul.f32 %v16171_v28, %v3238_v33  ;;  %v3325_v32 = vmul.f32 %v16172_v17, %v3244_v19  ;;  %v12623_v35 = vpop.eup %12622  ;;  %12632 = vpow2.f32 %v3427_v15  ;;  %v9012_v60 = vadd.f32 -1.0, %v12621_v1 }
 0x323   : > { %v3326_v18 = vmul.f32 %v16173_v59, %v3250_v24  ;;  %v3327_v31 = vmul.f32 %v16174_v7, %v3256_v20  ;;  %v3274_v4 = vadd.f32 %v3273_v55, %v3272_v36  ;;  %v16175_v10 = vrot.slane %v14106_v57, 5  ;;  %v12625_v51 = vpop.eup %12624  ;;  %v3486_v7 = vld [vmem:[%s15936_s5 + $0x38] sm:$0xff] }
 0x324   : > { %12634 = vpow2.f32 %v3429_v47  ;;  %v9013_v27 = vadd.f32 -1.0, %v12623_v35  ;;  %v16176_v5 = vrot.slane %v14106_v57, 6  ;;  %v14340_v21 = vadd.f32 %v14159_v9, %v3323_v2  ;;  %v12627_v53 = vpop.eup %12626 }
 0x325   : > { %v3328_v50 = vmul.f32 %v16175_v10, %v3262_v38  ;;  %v9014_v41 = vadd.f32 -1.0, %v12625_v51  ;;  %v16177_v14 = vrot.slane %v14106_v57, 7  ;;  %v16178_v54 = vrot.slane %v14159_v9, 1  ;;  %v12629_v16 = vpop.eup %12628  ;;  %v3488_v10 = vld [vmem:[%s15936_s5 + $0x48] sm:$0xff]  ;;  %v3490_v51 = vld [vmem:[%s15936_s5 + $0x58] sm:$0xff] }
 0x326   : > { %v3329_v37 = vmul.f32 %v16176_v5, %v3268_v48  ;;  %v16179_v29 = vrot.slane %v14159_v9, 2  ;;  %v9015_v58 = vadd.f32 -1.0, %v12627_v53  ;;  %v3464_v45 = vsel %vm3384_vm2, %v14275_v22, %v9013_v27  ;;  %v12631_v8 = vpop.eup %12630 }
 0x327   : > { %v3330_v43 = vmul.f32 %v16177_v14, %v3274_v4  ;;  %v14346_v49 = vadd.f32 %v16178_v54, %v3324_v40  ;;  %v16180_v63 = vrot.slane %v14159_v9, 3  ;;  %v16181_v57 = vrot.slane %v14159_v9, 4 }
 0x328   : > { %v14350_v33 = vadd.f32 %v16179_v29, %v3325_v32  ;;  %v9016_v24 = vadd.f32 -1.0, %v12629_v16  ;;  %v3463_v20 = vsel %vm3383_vm1, %v14256_v46, %v9012_v60  ;;  %v3465_v15 = vsel %vm3385_vm3, %v14279_v23, %v9014_v41 }
 0x329   : > { %v14357_v30 = vadd.f32 %v16180_v63, %v3326_v18  ;;  %v14361_v19 = vadd.f32 %v16181_v57, %v3327_v31  ;;  %v16182_v22 = vrot.slane %v14159_v9, 5  ;;  %v9017_v39 = vadd.f32 -1.0, %v12631_v8 }
 0x32a   : > { %v14376_v36 = vsel %vm3386_vm4, %v14283_v3, %v9015_v58  ;;  %v16183_v47 = vrot.slane %v14159_v9, 6  ;;  %v16184_v46 = vrot.slane %v14159_v9, 7  ;;  %v14389_v23 = vsel %vm3387_vm5, %v14287_v26, %v9016_v24 }
 0x32b   : > { %v14371_v38 = vadd.f32 %v16182_v22, %v3328_v50  ;;  %v3511_v55 = vrot.slane %v3464_v45, 7  ;;  %v3514_v28 = vrot.slane %v3465_v15, 6  ;;  %v3517_v40 = vrot.slane %v14376_v36, 5  ;;  %v3489_v50 = vld [vmem:[%s15936_s5 + $0x50] sm:$0xff] }
 0x32c   : > { %v14380_v2 = vadd.f32 %v16183_v47, %v3329_v37  ;;  %v14384_v48 = vadd.f32 %v16184_v46, %v3330_v43  ;;  %v14395_v3 = vsel %vm3388_vm6, %v14292_v34, %v9017_v39  ;;  %v3520_v17 = vrot.slane %v14389_v23, 4  ;;  %v3487_v34 = vld [vmem:[%s15936_s5 + $0x40] sm:$0xff]  ;;  %v14422_v27 = vpop.eup %12632 }
 0x32d   : > { %v3407_v9 = vmin.f32 %v14340_v21, 0.0  ;;  %v3408_v32 = vmin.f32 %v14346_v49, 0.0  ;;  %v3523_v1 = vrot.slane %v14395_v3, 3  ;;  %v3409_v26 = vmin.f32 %v14350_v33, 0.0 }
 0x32e   : > { %v3410_v59 = vmin.f32 %v14357_v30, 0.0  ;;  %v3411_v18 = vmin.f32 %v14361_v19, 0.0  ;;  %v3412_v31 = vmin.f32 %v14371_v38, 0.0  ;;  %v3413_v35 = vmin.f32 %v14380_v2, 0.0  ;;  %v14425_v14 = vpop.eup %12634 }
 0x32f   : > { %v3414_v60 = vmin.f32 %v14384_v48, 0.0  ;;  %v3431_v4 = vmul.f32 1.442695, %v3407_v9  ;;  %v3433_v5 = vmul.f32 1.442695, %v3408_v32  ;;  %v3513_v41 = vsel %vm3512_vm7, %v3511_v55, %v3463_v20  ;;  %v3492_v9 = vld [vmem:[%s15936_s5 + $0x68] sm:$0xff] }
 0x330   : > { %v3435_v37 = vmul.f32 1.442695, %v3409_v26  ;;  %v3437_v53 = vmul.f32 1.442695, %v3410_v59  ;;  %v3439_v43 = vmul.f32 1.442695, %v3411_v18  ;;  %v14428_v58 = vsel %vm3515_vm8, %v3514_v28, %v3513_v41 }
 0x331   : > { %12636 = vpow2.f32 %v3431_v4  ;;  %v3441_v54 = vmul.f32 1.442695, %v3412_v31  ;;  %v3443_v29 = vmul.f32 1.442695, %v3413_v35  ;;  %v3445_v16 = vmul.f32 1.442695, %v3414_v60 }
 0x332   : > { %12638 = vpow2.f32 %v3433_v5  ;;  %v11415_v45 = vpack.c.bf16 %v14238_v6, %v14233_v12  ;;  %vm3389_vm10 = vcmp.gt.f32.partialorder %v14300_v44, 0.0  ;;  %v3570_v63 = vand.u32 4294901760, %v3486_v7  ;;  %v3491_v28 = vld [vmem:[%s15936_s5 + $0x60] sm:$0xff]  ;;  %v3493_v59 = vld [vmem:[%s15936_s5 + $0x70] sm:$0xff]  ;;  %v3494_v18 = vld [vmem:[%s15936_s5 + $0x78] sm:$0xff] }
 0x333   : > { %12640 = vpow2.f32 %v3435_v37  ;;  %v16185_v57 = vand.u32 4294901760, %v14221_v13  ;;  %v3573_v24 = vand.u32 4294901760, %v3487_v34  ;;  %v3576_v20 = vand.u32 4294901760, %v3488_v10 }
 0x334   : > { %12642 = vpow2.f32 %v3437_v53  ;;  %11416 = vmatprep.subr.bf16.mxu1 %v11415_v45  ;;  %v3579_v15 = vand.u32 4294901760, %v3489_v50  ;;  %v3582_v22 = vand.u32 4294901760, %v3490_v51  ;;  %vm3391_vm11 = vcmp.gt.f32.partialorder %v14340_v21, 0.0 }
 0x335   : > { %v14436_v8 = vsub.f32 %v14221_v13, %v16185_v57  ;;  %12644 = vpow2.f32 %v3439_v43  ;;  %11418 = vmatpush3.bf16.msra.mxu1 %v11415_v45  ;;  %v16186_v39 = vmov %v16185_v57  ;;  %v14443_v46 = vsub.f32 %v3486_v7, %v3570_v63 }
 0x336   : > { %v14441_v47 = vpack.c.bf16 %v3570_v63, %v16186_v39  ;;  %v14445_v55 = vsub.f32 %v3487_v34, %v3573_v24  ;;  %vm3392_vm12 = vcmp.gt.f32.partialorder %v14346_v49, 0.0  ;;  %12646 = vpow2.f32 %v3441_v54 }
 0x337   : > { %v14454_v32 = vpack.c.bf16 %v3576_v20, %v3573_v24  ;;  %v14456_v13 = vsub.f32 %v3488_v10, %v3576_v20  ;;  %v14458_v26 = vpack.c.bf16 %v3582_v22, %v3579_v15  ;;  %vm3393_vm13 = vcmp.gt.f32.partialorder %v14350_v33, 0.0 }
 0x338   : > { %12648 = vpow2.f32 %v3443_v29  ;;  %v11419_v7 = vpack.c.bf16 %v14443_v46, %v14436_v8  ;;  %11356 = vmatprep.subr.bf16.mxu0 %v14441_v47  ;;  %v14470_v34 = vsub.f32 %v3489_v50, %v3579_v15  ;;  %v14472_v31 = vsub.f32 %v3490_v51, %v3582_v22 }
 0x339   : > { %vm3394_vm14 = vcmp.gt.f32.partialorder %v14357_v30, 0.0  ;;  %12650 = vpow2.f32 %v3445_v16  ;;  %v11423_v35 = vpack.c.bf16 %v14456_v13, %v14445_v55  ;;  %11358 = vmatpush3.bf16.msra.mxu0 %v14441_v47  ;;  %v3585_v60 = vand.u32 4294901760, %v3491_v28 }
 0x33a   : > { %v3588_v4 = vand.u32 4294901760, %v3492_v9  ;;  %vm3395_vm15 = vcmp.gt.f32.partialorder %v14361_v19, 0.0  ;;  %11420 = vmatprep.subr.bf16.mxu1 %v11419_v7  ;;  %v11427_v10 = vpack.c.bf16 %v14472_v31, %v14470_v34  ;;  %11360 = vmatprep.subr.bf16.mxu0 %v14454_v32  ;;  %v3591_v50 = vand.u32 4294901760, %v3493_v59 }
 0x33b   : > { %v3594_v51 = vand.u32 4294901760, %v3494_v18  ;;  %vm3390_vm0 = vcmp.gt.f32.partialorder %v14305_v61, 0.0  ;;  %vm3396_vm1 = vcmp.gt.f32.partialorder %v14371_v38, 0.0  ;;  %11422 = vmatpush3.bf16.msra.mxu1 %v11419_v7  ;;  %v14486_v37 = vsub.f32 %v3491_v28, %v3585_v60  ;;  %v12637_v43 = vpop.eup %12636 }
 0x33c   : > { %v14484_v5 = vpack.c.bf16 %v3588_v4, %v3585_v60  ;;  %v14488_v53 = vsub.f32 %v3492_v9, %v3588_v4  ;;  %v9018_v41 = vadd.f32 -1.0, %v14422_v27  ;;  %vm3397_vm2 = vcmp.gt.f32.partialorder %v14380_v2, 0.0  ;;  %11424 = vmatprep.subr.bf16.mxu1 %v11423_v35  ;;  %v12639_v63 = vpop.eup %12638 }
 0x33d   : > { %v14492_v54 = vpack.c.bf16 %v3594_v51, %v3591_v50  ;;  %v14494_v29 = vsub.f32 %v3493_v59, %v3591_v50  ;;  %v14496_v16 = vsub.f32 %v3494_v18, %v3594_v51  ;;  %v9019_v45 = vadd.f32 -1.0, %v14425_v14  ;;  %11362 = vmatpush3.bf16.msra.mxu0 %v14454_v32  ;;  %v12641_v15 = vpop.eup %12640 }
 0x33e   : > { %vm3398_vm3 = vcmp.gt.f32.partialorder %v14384_v48, 0.0  ;;  %v9020_v57 = vadd.f32 -1.0, %v12637_v43  ;;  %v11431_v27 = vpack.c.bf16 %v14488_v53, %v14486_v37  ;;  %v3469_v24 = vsel %vm3389_vm10, %v14300_v44, %v9018_v41  ;;  %11364 = vmatprep.subr.bf16.mxu0 %v14458_v26  ;;  %v12643_v28 = vpop.eup %12642 }
 0x33f   : > { %v3519_v20 = vsel %vm3518_vm9, %v3517_v40, %v14428_v58  ;;  %v9021_v14 = vadd.f32 -1.0, %v12639_v63  ;;  %v14513_v22 = vpack.c.bf16 %v14496_v16, %v14494_v29  ;;  %v3470_v39 = vsel %vm3390_vm0, %v14305_v61, %v9019_v45  ;;  %11426 = vmatpush3.bf16.msra.mxu1 %v11423_v35  ;;  %v12645_v58 = vpop.eup %12644 }
 0x340   : > { %vm3521_vm4 = vcmask 1044484   ;;  %v9022_v44 = vadd.f32 -1.0, %v12641_v15  ;;  %v3471_v36 = vsel %vm3391_vm11, %v14340_v21, %v9020_v57  ;;  %vm3524_vm5 = vcmask 1045509   ;;  %11428 = vmatprep.subr.bf16.mxu1 %v11427_v10  ;;  %v12647_v7 = vpop.eup %12646 }
 0x341   : > { %v3522_v40 = vsel %vm3521_vm4, %v3520_v17, %v3519_v20  ;;  %v9023_v9 = vadd.f32 -1.0, %v12643_v28  ;;  %v3472_v59 = vsel %vm3392_vm12, %v14346_v49, %v9021_v14  ;;  %v3526_v18 = vrot.slane %v3469_v24, 2  ;;  %11366 = vmatpush3.bf16.msra.mxu0 %v14458_v26 }
 0x342   : > { %v3525_v61 = vsel %vm3524_vm5, %v3523_v1, %v3522_v40  ;;  %v9024_v21 = vadd.f32 -1.0, %v12645_v58  ;;  %v3473_v23 = vsel %vm3393_vm13, %v14350_v33, %v9022_v44  ;;  %v3532_v17 = vrot.slane %v3472_v59, 7  ;;  %v12649_v35 = vpop.eup %12648  ;;  %11368 = vmatprep.subr.bf16.mxu0 %v14484_v5 }
 0x343   : > { %vm3527_vm6 = vcmask 1046534   ;;  %v9025_v60 = vadd.f32 -1.0, %v12647_v7  ;;  %v3474_v49 = vsel %vm3394_vm14, %v14357_v30, %v9023_v9  ;;  %v3534_v3 = vrot.slane %v3473_v23, 6  ;;  %v12651_v4 = vpop.eup %12650  ;;  %11430 = vmatpush3.bf16.msra.mxu1 %v11427_v10 }
 0x344   : > { %v3528_v1 = vsel %vm3527_vm6, %v3526_v18, %v3525_v61  ;;  %v9026_v50 = vadd.f32 -1.0, %v12649_v35  ;;  %v3475_v33 = vsel %vm3395_vm15, %v14361_v19, %v9024_v21  ;;  %v3533_v51 = vsel %vm3512_vm7, %v3532_v17, %v3471_v36  ;;  %11432 = vmatprep.subr.bf16.mxu1 %v11431_v27 }
 0x345   : > { %v3536_v41 = vrot.slane %v3474_v49, 5  ;;  %v9027_v43 = vadd.f32 -1.0, %v12651_v4  ;;  %v3476_v30 = vsel %vm3396_vm1, %v14371_v38, %v9025_v60  ;;  %v3535_v45 = vsel %vm3515_vm8, %v3534_v3, %v3533_v51  ;;  %11370 = vmatpush3.bf16.msra.mxu0 %v14484_v5 }
 0x346   : > { %v3538_v63 = vrot.slane %v3475_v33, 4  ;;  %v3477_v57 = vsel %vm3397_vm2, %v14380_v2, %v9026_v50  ;;  %v3540_v19 = vrot.slane %v3476_v30, 3  ;;  %v3529_v20 = vrot.slane %v3470_v39, 1  ;;  %11372 = vmatprep.subr.bf16.mxu0 %v14492_v54 }
 0x347   : > { %v3537_v24 = vsel %vm3518_vm9, %v3536_v41, %v3535_v45  ;;  %v3478_v10 = vsel %vm3398_vm3, %v14384_v48, %v9027_v43  ;;  %v3542_v15 = vrot.slane %v3477_v57, 2  ;;  %vm3530_vm7 = vcmask 1047559   ;;  %11434 = vmatpush3.bf16.msra.mxu1 %v11431_v27 }
 0x348   : > { %v3539_v38 = vsel %vm3521_vm4, %v3538_v63, %v3537_v24  ;;  %v3544_v14 = vrot.slane %v3478_v10, 1  ;;  %v3531_v28 = vsel %vm3530_vm7, %v3529_v20, %v3528_v1  ;;  %v3652_v44 = vand.u32 4294901760, %v14165_v56  ;;  %11436 = vmatprep.subr.bf16.mxu1 %v14513_v22 }
 0x349   : > { %v3541_v2 = vsel %vm3524_vm5, %v3540_v19, %v3539_v38  ;;  %v14560_v39 = vand.u32 4294901760, %v3531_v28  ;;  %v3659_v48 = vand.u32 4294901760, %v14167_v52  ;;  %v3666_v40 = vand.u32 4294901760, %v14170_v11  ;;  %11374 = vmatpush3.bf16.msra.mxu0 %v14492_v54 }
 0x34a   : > { %v3543_v36 = vsel %vm3527_vm6, %v3542_v15, %v3541_v2  ;;  %v3653_v27 = vsub.f32 %v14165_v56, %v3652_v44  ;;  %v3673_v9 = vand.u32 4294901760, %v14172_v42  ;;  %v3680_v59 = vand.u32 4294901760, %v14233_v12 }
 0x34b   : > { %v3545_v58 = vsel %vm3530_vm7, %v3544_v14, %v3543_v36  ;;  %v14572_v61 = vsub.f32 %v3531_v28, %v14560_v39  ;;  %v3660_v7 = vsub.f32 %v14167_v52, %v3659_v48  ;;  %v3667_v21 = vsub.f32 %v14170_v11, %v3666_v40  ;;  %11438 = vmatpush3.bf16.msra.mxu1 %v14513_v22 }
 0x34c   : > { %v14574_v18 = vand.u32 4294901760, %v3545_v58  ;;  %v3654_v23 = vand.u32 4294901760, %v3653_v27  ;;  %v3674_v17 = vsub.f32 %v14172_v42, %v3673_v9  ;;  %v3687_v35 = vand.u32 4294901760, %v14238_v6  ;;  %11440 = vmatprep.subr.bf16.mxu1 %v14163_v0 }
 0x34d   : > { %10275 = vmatprep.mubr.f32.mxu1 %v14572_v61  ;;  %v14593_v49 = vand.u32 4294901760, %v14572_v61  ;;  %v3661_v3 = vand.u32 4294901760, %v3660_v7  ;;  %v3681_v22 = vsub.f32 %v14233_v12, %v3680_v59  ;;  %v3668_v1 = vand.u32 4294901760, %v3667_v21 }
 0x34e   : > { %v14590_v60 = vsub.f32 %v3545_v58, %v14574_v18  ;;  %v3675_v4 = vand.u32 4294901760, %v3674_v17  ;;  %v3688_v50 = vsub.f32 %v14238_v6, %v3687_v35  ;;  %v3694_v33 = vand.u32 4294901760, %v14436_v8 }
 0x34f   : > { %16188 = vst [vmem:[#allocation2_spill] sm:$0xff] %v14593_v49  ;;  %v3632_v51 = vsub.f32 %v14572_v61, %v14593_v49  ;;  %v11375_v41 = vpack.c.bf16 %v3661_v3, %v3654_v23  ;;  %v3701_v30 = vand.u32 4294901760, %v14443_v46  ;;  %v3682_v24 = vand.u32 4294901760, %v3681_v22 }
 0x350   : > { %16187 = vst [vmem:[#allocation18_spill] sm:$0xff] %v14590_v60  ;;  %10276 = vmatmul.mubr.f32.vlgmr.msra.gmra.mrb[0].mxu1 %v14590_v60  ;;  %v14606_v43 = vand.u32 4294901760, %v14590_v60  ;;  %v11379_v57 = vpack.c.bf16 %v3675_v4, %v3668_v1  ;;  %v3689_v19 = vand.u32 4294901760, %v3688_v50  ;;  %v3695_v20 = vsub.f32 %v14436_v8, %v3694_v33 }
 0x351   : > { %11442 = vmatpush3.bf16.msra.mxu1 %v14163_v0  ;;  %10310 = vmatprep.mubr.f32.mxu1 %v14593_v49  ;;  %v14611_v45 = vand.u32 4294901760, %v3632_v51  ;;  %v3702_v15 = vsub.f32 %v14443_v46, %v3701_v30  ;;  %v3708_v38 = vand.u32 4294901760, %v14445_v55  ;;  %v3715_v14 = vand.u32 4294901760, %v14456_v13 }
 0x352   : > { %16189 = vst [vmem:[#allocation3_spill] sm:$0xff] %v14606_v43  ;;  %11444 = vmatprep.subr.bf16.mxu1 %v14180_v62  ;;  %11376 = vmatprep.subr.bf16.mxu0 %v11375_v41  ;;  %v3642_v63 = vsub.f32 %v14590_v60, %v14606_v43  ;;  %v11383_v28 = vpack.c.bf16 %v3689_v19, %v3682_v24  ;;  %v3696_v2 = vand.u32 4294901760, %v3695_v20  ;;  %v3722_v36 = vand.u32 4294901760, %v14470_v34 }
 0x353   : > { %16190 = vst [vmem:[#allocation5_spill] sm:$0xff] %v14611_v45  ;;  %10205 = vmatprep.mubr.f32.mxu0 %v14611_v45  ;;  %v3703_v58 = vand.u32 4294901760, %v3702_v15  ;;  %v3709_v27 = vsub.f32 %v14445_v55, %v3708_v38  ;;  %v3716_v7 = vsub.f32 %v14456_v13, %v3715_v14  ;;  %v3729_v21 = vand.u32 4294901760, %v14472_v31 }
 0x354   : > { %v14620_v10 = vand.u32 4294901760, %v3642_v63  ;;  %v3723_v23 = vsub.f32 %v14470_v34, %v3722_v36  ;;  %v3736_v17 = vand.u32 4294901760, %v14486_v37  ;;  %v3743_v3 = vand.u32 4294901760, %v14488_v53 }
 0x355   : > { %11446 = vmatpush3.bf16.msra.mxu1 %v14180_v62  ;;  %v11387_v22 = vpack.c.bf16 %v3703_v58, %v3696_v2  ;;  %v3710_v1 = vand.u32 4294901760, %v3709_v27  ;;  %v3717_v4 = vand.u32 4294901760, %v3716_v7  ;;  %v3730_v50 = vsub.f32 %v14472_v31, %v3729_v21 }
 0x356   : > { %10206 = vmatmul.mubr.f32.vlgmr.msra.gmra.mrb[24].mxu0 %v14620_v10  ;;  %11448 = vmatprep.subr.bf16.mxu1 %v14189_v25  ;;  %v3724_v51 = vand.u32 4294901760, %v3723_v23  ;;  %v3744_v63 = vsub.f32 %v14488_v53, %v3743_v3  ;;  %v3750_v19 = vand.u32 4294901760, %v14494_v29  ;;  %v3757_v20 = vand.u32 4294901760, %v14496_v16 }
 0x357   : > { %11378 = vmatpush3.bf16.msra.mxu0 %v11375_v41  ;;  %10240 = vmatprep.mubr.f32.mxu0 %v14560_v39  ;;  %v3737_v41 = vsub.f32 %v14486_v37, %v3736_v17  ;;  %v3731_v24 = vand.u32 4294901760, %v3730_v50  ;;  %v11479_v56 = vpack.c.bf16 %v3687_v35, %v3680_v59  ;;  %v11483_v52 = vpack.c.bf16 %v3701_v30, %v3694_v33  ;;  %v14749_v50 = vld [vmem:[%s15936_s5 + $0x80] sm:$0xff] }
 0x358   : > { %11380 = vmatprep.subr.bf16.mxu0 %v11379_v57  ;;  %v3745_v2 = vand.u32 4294901760, %v3744_v63  ;;  %v3751_v58 = vsub.f32 %v14494_v29, %v3750_v19  ;;  %v3758_v53 = vsub.f32 %v14496_v16, %v3757_v20  ;;  %v11471_v29 = vpack.c.bf16 %v3659_v48, %v3652_v44  ;;  %v12656_v48 = vld [vmem:[%s15934_s3] sm:$0xff] }
 0x359   : > { %11450 = vmatpush3.bf16.msra.mxu1 %v14189_v25  ;;  %v3738_v15 = vand.u32 4294901760, %v3737_v41  ;;  %v11487_v11 = vpack.c.bf16 %v3715_v14, %v3708_v38  ;;  %v11491_v42 = vpack.c.bf16 %v3729_v21, %v3722_v36  ;;  %v11495_v6 = vpack.c.bf16 %v3743_v3, %v3736_v17  ;;  %v12657_v38 = vld [vmem:[%s15934_s3 + $0x8] sm:$0xff] }
 0x35a   : > { %11452 = vmatprep.subr.bf16.mxu1 %v14441_v47  ;;  %v3752_v7 = vand.u32 4294901760, %v3751_v58  ;;  %v3759_v23 = vand.u32 4294901760, %v3758_v53  ;;  %v11499_v12 = vpack.c.bf16 %v3757_v20, %v3750_v19  ;;  %vm4234_vm8 = vcmask 130048   ;;  %v14769_v58 = vld [vmem:[%s15936_s5 + $0x90] sm:$0xff]  ;;  %v14774_v53 = vld [vmem:[%s15936_s5 + $0x98] sm:$0xff] }
 0x35b   : > { %11382 = vmatpush3.bf16.msra.mxu0 %v11379_v57  ;;  %v11391_v57 = vpack.c.bf16 %v3717_v4, %v3710_v1  ;;  %v11399_v27 = vpack.c.bf16 %v3745_v2, %v3738_v15  ;;  %v12669_v37 = vmov 2   ;;  %v4771_v19 = vand.u32 4294901760, %v14749_v50 }
 0x35c   : > { %11384 = vmatprep.subr.bf16.mxu0 %v11383_v28  ;;  %v11403_v16 = vpack.c.bf16 %v3759_v23, %v3752_v7  ;;  %12490 = vset.pattern.permute.xlu1 %v12669_v37  ;;  %v4780_v7 = vand.u32 4294901760, %v14774_v53  ;;  %v14784_v23 = vld [vmem:[%s15936_s5 + $0xa0] sm:$0xff]  ;;  %vm8411_vm9 = vcmask 261120  }
 0x35d   : > { %11454 = vmatpush3.bf16.msra.mxu1 %v14441_v47  ;;  %12491 = vset.pattern.permute.xlu0 %v12669_v37  ;;  %v14867_v37 = vld [vmem:[%s15936_s5 + $0xd8] sm:$0xff] }
 0x35e   : > { %11456 = vmatprep.subr.bf16.mxu1 %v14454_v32  ;;  %4744 = vperm.xlu1 %12490, %v12656_v48  }
 0x35f   : > { %11386 = vmatpush3.bf16.msra.mxu0 %v11383_v28  ;;  %v11395_v28 = vpack.c.bf16 %v3731_v24, %v3724_v51  ;;  %v14754_v51 = vld [vmem:[%s15936_s5 + $0x88] sm:$0xff] }
 0x360   : > { %11388 = vmatprep.subr.bf16.mxu0 %v11387_v22  ;;  %v4774_v20 = vand.u32 4294901760, %v14754_v51 }
 0x361   : > { %11458 = vmatpush3.bf16.msra.mxu1 %v14454_v32 }
 0x362   : > { %11460 = vmatprep.subr.bf16.mxu1 %v14458_v26  ;;  %4748 = vperm.xlu1 %12490, %v12657_v38   ;;  %v14764_v2 = vpack.c.bf16 %v4774_v20, %v4771_v19  ;;  %v14905_v38 = vsub.f32 %v14754_v51, %v4774_v20  ;;  %v14947_v51 = vld [vmem:[%s15936_s5 + $0x138] sm:$0xff]  ;;  %v14981_v20 = vsub.f32 %v14774_v53, %v4780_v7 }
 0x363   : > { %11390 = vmatpush3.bf16.msra.mxu0 %v11387_v22  ;;  %v11475_v22 = vpack.c.bf16 %v3673_v9, %v3666_v40 }
 0x364   : > { %11392 = vmatprep.subr.bf16.mxu0 %v11391_v57 }
 0x365   : > { %11462 = vmatpush3.bf16.msra.mxu1 %v14458_v26 }
 0x366   : > { %11464 = vmatprep.subr.bf16.mxu1 %v14484_v5 }
 0x367   : > { %11394 = vmatpush3.bf16.msra.mxu0 %v11391_v57 }
 0x368   : > { %11396 = vmatprep.subr.bf16.mxu0 %v11395_v28 }
 0x369   : > { %11466 = vmatpush3.bf16.msra.mxu1 %v14484_v5 }
 0x36a   : > { %11468 = vmatprep.subr.bf16.mxu1 %v14492_v54 }
 0x36b   : > { %11398 = vmatpush3.bf16.msra.mxu0 %v11395_v28 }
 0x36c   : > { %11400 = vmatprep.subr.bf16.mxu0 %v11399_v27 }
 0x36d   : > { %11470 = vmatpush3.bf16.msra.mxu1 %v14492_v54 }
 0x36e   : > { %11472 = vmatprep.subr.bf16.mxu1 %v11471_v29 }
 0x36f   : > { %11402 = vmatpush3.bf16.msra.mxu0 %v11399_v27  ;;  %v4777_v27 = vand.u32 4294901760, %v14769_v58 }
 0x370   : > { %10311 = vmatmul.mubr.f32.vlgmr.msra.gmra.mrb[0].mxu1 %v14606_v43  ;;  %11404 = vmatprep.subr.bf16.mxu0 %v11403_v16 }
 0x371   : > { %11474 = vmatpush3.bf16.msra.mxu1 %v11471_v29  ;;  %10345 = vmatprep.mubr.f32.mxu1 %v14560_v39  ;;  %v14789_v29 = vld [vmem:[%s15936_s5 + $0xa8] sm:$0xff] }
 0x372   : > { %11476 = vmatprep.subr.bf16.mxu1 %v11475_v22 }
 0x373   : > { %11406 = vmatpush3.bf16.msra.mxu0 %v11403_v16  ;;  %v14795_v16 = vld [vmem:[%s15936_s5 + $0x100] sm:$0xff] }
 0x375   : > { %11478 = vmatpush3.bf16.msra.mxu1 %v11475_v22  ;;  %v14800_v22 = vld [vmem:[%s15936_s5 + $0x108] sm:$0xff] }
 0x376   : > { %10241 = vmatmul.mubr.f32.vlgmr.msra.gmra.mrb[24].mxu0 %v14574_v18  ;;  %11480 = vmatprep.subr.bf16.mxu1 %v11479_v56 }
 0x379   : > { %11482 = vmatpush3.bf16.msra.mxu1 %v11479_v56  ;;  %v14808_v56 = vpack.c.bf16 %v4780_v7, %v4777_v27 }
 0x37a   : > { %11484 = vmatprep.subr.bf16.mxu1 %v11483_v52 }
 0x37b   : > { %16191 = vst [vmem:[#allocation4_spill] sm:$0xff] %v14808_v56 }
 0x37d   : > { %11486 = vmatpush3.bf16.msra.mxu1 %v11483_v52  ;;  %v4783_v52 = vand.u32 4294901760, %v14784_v23 }
 0x37e   : > { %11488 = vmatprep.subr.bf16.mxu1 %v11487_v11 }
 0x381   : > { %11490 = vmatpush3.bf16.msra.mxu1 %v11487_v11  ;;  %v4786_v11 = vand.u32 4294901760, %v14789_v29 }
 0x382   : > { %11492 = vmatprep.subr.bf16.mxu1 %v11491_v42 }
 0x385   : > { %11494 = vmatpush3.bf16.msra.mxu1 %v11491_v42  ;;  %v14815_v42 = vld [vmem:[%s15936_s5 + $0xb0] sm:$0xff] }
 0x386   : > { %11496 = vmatprep.subr.bf16.mxu1 %v11495_v6 }
 0x389   : > { %11498 = vmatpush3.bf16.msra.mxu1 %v11495_v6  ;;  %v14820_v6 = vld [vmem:[%s15936_s5 + $0xb8] sm:$0xff] }
 0x38a   : > { %11500 = vmatprep.subr.bf16.mxu1 %v11499_v12 }
 0x38d   : > { %11502 = vmatpush3.bf16.msra.mxu1 %v11499_v12  ;;  %v16004_v12 = vand.u32 4294901760, %v14795_v16 }
 0x38e   : > { %11504 = vmatprep.subr.bf16.mxu1 %v14163_v0 }
 0x390   : > { %10346 = vmatmul.mubr.f32.vlgmr.msra.gmra.mrb[0].mxu1 %v14574_v18 }
 0x391   : > { %11506 = vmatpush3.bf16.msra.mxu1 %v14163_v0  ;;  %10380 = vmatprep.mubr.f32.mxu1 %v14560_v39  ;;  %v4232_v0 = vld [vmem:[%s15935_s4] sm:$0xff] }
 0x392   : > { %11508 = vmatprep.subr.bf16.mxu1 %v14180_v62 }
 0x395   : > { %11510 = vmatpush3.bf16.msra.mxu1 %v14180_v62  ;;  %v4236_v62 = vsel %vm4234_vm8, %v4232_v0, 0  ;;  %v16001_v0 = vand.u32 4294901760, %v14800_v22 }
 0x396   : > { %11512 = vmatprep.subr.bf16.mxu1 %v14189_v25 }
 0x399   : > { %11514 = vmatpush3.bf16.msra.mxu1 %v14189_v25  ;;  %v4308_v25 = vand.u32 4294901760, %v4236_v62 }
 0x39a   : > { %11516 = vmatprep.subr.bf16.mxu1 %v14441_v47 }
 0x39b   : > { %v14718_v8 = vsub.f32 %v4236_v62, %v4308_v25  ;;  %v14828_v62 = vpack.c.bf16 %v4786_v11, %v4783_v52 }
 0x39d   : > { %11518 = vmatpush3.bf16.msra.mxu1 %v14441_v47  ;;  %v4310_v47 = vand.u32 4294901760, %v14718_v8  ;;  %16192 = vst [vmem:[#allocation7_spill] sm:$0xff] %v14828_v62 }
 0x39e   : > { %11520 = vmatprep.subr.bf16.mxu1 %v14454_v32 }
 0x39f   : > { %v4311_v46 = vsub.f32 %v14718_v8, %v4310_v47 }
 0x3a1   : > { %11522 = vmatpush3.bf16.msra.mxu1 %v14454_v32  ;;  %v4312_v55 = vand.u32 4294901760, %v4311_v46  ;;  %v4792_v46 = vand.u32 4294901760, %v14820_v6 }
 0x3a2   : > { %11524 = vmatprep.subr.bf16.mxu1 %v14458_v26 }
 0x3a3   : > { %10387 = vmatprep.mubr.f32.mxu0 %v4312_v55  ;;  %v14836_v55 = vpack.c.bf16 %v16001_v0, %v16004_v12 }
 0x3a5   : > { %11526 = vmatpush3.bf16.msra.mxu1 %v14458_v26  ;;  %v4233_v26 = vld [vmem:[%s15935_s4 + $0x8] sm:$0xff]  ;;  %16193 = vst [vmem:[#allocation6_spill] sm:$0xff] %v14836_v55 }
 0x3a6   : > { %11528 = vmatprep.subr.bf16.mxu1 %v14484_v5  ;;  %v4239_v34 = vsel %vm4234_vm8, %v4233_v26, 0  ;;  %v14851_v26 = vld [vmem:[%s15936_s5 + $0x110] sm:$0xff] }
 0x3a7   : > { %v14728_v31 = vand.u32 4294901760, %v4239_v34 }
 0x3a9   : > { %11530 = vmatpush3.bf16.msra.mxu1 %v14484_v5  ;;  %v14731_v5 = vsub.f32 %v4239_v34, %v14728_v31  ;;  %v14857_v34 = vld [vmem:[%s15936_s5 + $0x118] sm:$0xff] }
 0x3aa   : > { %11532 = vmatprep.subr.bf16.mxu1 %v14492_v54 }
 0x3ab   : > { %v4320_v44 = vand.u32 4294901760, %v14731_v5 }
 0x3ad   : > { %11534 = vmatpush3.bf16.msra.mxu1 %v14492_v54  ;;  %v4321_v30 = vsub.f32 %v14731_v5, %v4320_v44 }
 0x3af   : > { %v4322_v3 = vand.u32 4294901760, %v4321_v30  ;;  %v14900_v30 = vsub.f32 %v14749_v50, %v4771_v19  ;;  %v14942_v50 = vld [vmem:[%s15936_s5 + $0x130] sm:$0xff] }
 0x3b0   : > { %10381 = vmatmul.mubr.f32.vlgmr.msra.gmra.mrb[0].mxu1 %v14574_v18  ;;  %v16008_v7 = vand.u32 4294901760, %v14942_v50 }
 0x3b1   : > { %10415 = vmatprep.mubr.f32.mxu1 %v4308_v25  ;;  %v16002_v19 = vand.u32 4294901760, %v14900_v30 }
 0x449   : > { %v10242_v32 = vpop.f32.mrb[24].mxu0 }
 0x44a   : > { %v3796_v13 = vpop.f32.mrb[25].mxu0 }
 0x483   : > { %v10382_v54 = vpop.f32.mrb[0].mxu1 }
 0x484   : > { %v12255_v40 = vadd.f32 %v10382_v54, %v10242_v32  ;;  %v4222_v9 = vpop.f32.mrb[1].mxu1  ;;  %v14841_v32 = vld [vmem:[%s15936_s5 + $0xc0] sm:$0xff] }
 0x485   : > { %v12256_v59 = vadd.f32 %v4222_v9, %v3796_v13  ;;  %v14846_v13 = vld [vmem:[%s15936_s5 + $0xc8] sm:$0xff]  ;;  %v16000_v48 = vand.u32 4294901760, %v14841_v32  ;;  %v14885_v9 = vld [vmem:[%s15936_s5 + $0x120] sm:$0xff] }
 0x486   : > { %v4245_v35 = vand.u32 4294901760, %v12255_v40 }
 0x487   : > { %v4242_v33 = vand.u32 4294901760, %v12256_v59 }
 0x488   : > { %v4337_v14 = vsub.f32 %v12255_v40, %v4245_v35  ;;  %v15999_v40 = vand.u32 4294901760, %v14846_v13 }
 0x489   : > { %v14743_v36 = vpack.c.bf16 %v4245_v35, %v4242_v33  ;;  %v4330_v21 = vsub.f32 %v12256_v59, %v4242_v33  ;;  %v15997_v59 = vand.u32 4294901760, %v14857_v34  ;;  %v15993_v33 = vand.u32 4294901760, %v14867_v37 }
 0x48a   : > { %v4338_v17 = vand.u32 4294901760, %v4337_v14 }
 0x48b   : > { %11536 = vmatprep.subr.bf16.mxu0 %v14743_v36  ;;  %v4331_v1 = vand.u32 4294901760, %v4330_v21  ;;  %v11543_v4 = vpack.c.bf16 %v4337_v14, %v4330_v21 }
 0x48c   : > { %11538 = vmatpush3.bf16.msra.mxu0 %v14743_v36  ;;  %v4339_v41 = vsub.f32 %v4337_v14, %v4338_v17  ;;  %v15995_v14 = vand.u32 4294901760, %v14885_v9 }
 0x48d   : > { %v11551_v63 = vpack.c.bf16 %v4338_v17, %v4331_v1  ;;  %v4332_v57 = vsub.f32 %v4330_v21, %v4331_v1  ;;  %v14915_v21 = vpack.c.bf16 %v15999_v40, %v16000_v48  ;;  %v14920_v17 = vld [vmem:[%s15936_s5 + $0xe0] sm:$0xff]  ;;  %v16011_v40 = vand.u32 4294901760, %v14981_v20 }
 0x48e   : > { %v4340_v24 = vand.u32 4294901760, %v4339_v41  ;;  %v14952_v41 = vld [vmem:[%s15936_s5 + $0xf0] sm:$0xff]  ;;  %v16006_v53 = vand.u32 4294901760, %v14920_v17 }
 0x48f   : > { %10388 = vmatmul.mubr.f32.vlgmr.msra.gmra.mrb[26].mxu0 %v4322_v3  ;;  %11552 = vmatprep.subr.bf16.mxu1 %v11551_v63  ;;  %v4333_v15 = vand.u32 4294901760, %v4332_v57  ;;  %16195 = vst [vmem:[#allocation8_spill] sm:$0xff] %v14915_v21  ;;  %v14925_v3 = vld [vmem:[%s15936_s5 + $0xe8] sm:$0xff]  ;;  %v14964_v57 = vld [vmem:[%s15936_s5 + $0x140] sm:$0xff] }
 0x490   : > { %11554 = vmatpush3.bf16.msra.mxu1 %v11551_v63  ;;  %10394 = vmatprep.mubr.f32.mxu0 %v4308_v25  ;;  %v14959_v63 = vld [vmem:[%s15936_s5 + $0xf8] sm:$0xff] }
 0x491   : > { %11556 = vmatprep.subr.bf16.mxu1 %v14743_v36  ;;  %v11539_v28 = vpack.c.bf16 %v4340_v24, %v4333_v15  ;;  %v14969_v24 = vld [vmem:[%s15936_s5 + $0x148] sm:$0xff] }
 0x493   : > { %11540 = vmatprep.subr.bf16.mxu0 %v11539_v28  ;;  %10416 = vmatmul.mubr.f32.vlgmr.msra.gmra.mrb[2].mxu1 %v14728_v31 }
 0x494   : > { %11542 = vmatpush3.bf16.msra.mxu0 %v11539_v28  ;;  %11558 = vmatpush3.bf16.msra.mxu1 %v14743_v36  ;;  %v14992_v28 = vsub.f32 %v14784_v23, %v4783_v52  ;;  %v16014_v23 = vand.u32 4294901760, %v14952_v41  ;;  %v16009_v52 = vand.u32 4294901760, %v14959_v63 }
 0x495   : > { %11544 = vmatprep.subr.bf16.mxu0 %v11543_v4  ;;  %10422 = vmatprep.mubr.f32.mxu1 %v4308_v25  ;;  %v4789_v25 = vand.u32 4294901760, %v14815_v42 }
 0x496   : > { %11560 = vmatprep.subr.bf16.mxu1 %v14764_v2  ;;  %v16015_v48 = vand.u32 4294901760, %v14992_v28 }
 0x497   : > { %10395 = vmatmul.mubr.f32.vlgmr.msra.gmra.mrb[26].mxu0 %v14728_v31  ;;  %v14878_v54 = vpack.c.bf16 %v4792_v46, %v4789_v25 }
 0x498   : > { %11546 = vmatpush3.bf16.msra.mxu0 %v11543_v4  ;;  %10401 = vmatprep.mubr.f32.mxu0 %v14718_v8  ;;  %v14890_v8 = vld [vmem:[%s15936_s5 + $0x128] sm:$0xff] }
 0x499   : > { %11548 = vmatprep.subr.bf16.mxu0 %v14743_v36  ;;  %16194 = vst [vmem:[#allocation9_spill] sm:$0xff] %v14878_v54 }
 0x49b   : > { %10423 = vmatmul.mubr.f32.vlgmr.msra.gmra.mrb[2].mxu1 %v14728_v31  ;;  %v14862_v31 = vld [vmem:[%s15936_s5 + $0xd0] sm:$0xff] }
 0x49c   : > { %11562 = vmatpush3.bf16.msra.mxu1 %v14764_v2  ;;  %10457 = vmatprep.mubr.f32.mxu1 %v14611_v45  ;;  %v15996_v35 = vand.u32 4294901760, %v14862_v31 }
 0x49d   : > { %11564 = vmatprep.subr.bf16.mxu1 %v14808_v56 }
 0x49e   : > { %v14937_v4 = vpack.c.bf16 %v15993_v33, %v15996_v35  ;;  %v16007_v33 = vand.u32 4294901760, %v14947_v51  ;;  %v4875_v35 = vsub.f32 %v14900_v30, %v16002_v19  ;;  %v15033_v19 = vsub.f32 %v14815_v42, %v4789_v25 }
 0x49f   : > { %10402 = vmatmul.mubr.f32.vlgmr.msra.gmra.mrb[26].mxu0 %v14731_v5  ;;  %v16003_v5 = vand.u32 4294901760, %v14905_v38 }
 0x4a0   : > { %11550 = vmatpush3.bf16.msra.mxu0 %v14743_v36  ;;  %11566 = vmatpush3.bf16.msra.mxu1 %v14808_v56  ;;  %v15994_v36 = vand.u32 4294901760, %v14890_v8  ;;  %16197 = vst [vmem:[#allocation10_spill] sm:$0xff] %v14937_v4  ;;  %v15052_v42 = vpack.c.bf16 %v16007_v33, %v16008_v7  ;;  %v4896_v7 = vsub.f32 %v14981_v20, %v16011_v40 }
 0x4a1   : > { %11568 = vmatprep.subr.bf16.mxu1 %v14828_v62  ;;  %10408 = vmatprep.mubr.f32.mxu0 %v4310_v47  ;;  %v15998_v47 = vand.u32 4294901760, %v14851_v26 }
 0x4a2   : > { %11776 = vmatprep.subr.bf16.mxu0 %v14836_v55  ;;  %v14989_v15 = vpack.c.bf16 %v15994_v36, %v15995_v14  ;;  %v15011_v36 = vld [vmem:[%s15936_s5 + $0x150] sm:$0xff]  ;;  %v15016_v14 = vld [vmem:[%s15936_s5 + $0x158] sm:$0xff]  ;;  %16200 = vst [vmem:[#allocation16_spill] sm:$0xff] %v15052_v42 }
 0x4a3   : > { %v14931_v1 = vpack.c.bf16 %v15997_v59, %v15998_v47  ;;  %v4882_v59 = vsub.f32 %v14905_v38, %v16003_v5  ;;  %v15038_v5 = vsub.f32 %v14820_v6, %v4792_v46  ;;  %v16027_v25 = vand.u32 4294901760, %v15011_v36 }
 0x4a4   : > { %11570 = vmatpush3.bf16.msra.mxu1 %v14828_v62  ;;  %16198 = vst [vmem:[#allocation13_spill] sm:$0xff] %v14989_v15  ;;  %v15060_v46 = vpack.c.bf16 %v16009_v52, %v16014_v23  ;;  %v15077_v52 = vld [vmem:[%s15936_s5 + $0x160] sm:$0xff] }
 0x4a5   : > { %11572 = vmatprep.subr.bf16.mxu1 %v14878_v54  ;;  %16196 = vst [vmem:[#allocation11_spill] sm:$0xff] %v14931_v1  ;;  %v4883_v0 = vand.u32 4294901760, %v4882_v59  ;;  %v15087_v59 = vld [vmem:[%s15936_s5 + $0x170] sm:$0xff]  ;;  %v16210_v6 = vand.u32 4294901760, %v15038_v5 }
 0x4a6   : > { %16201 = vst [vmem:[#allocation14_spill] sm:$0xff] %v15060_v46 }
 0x4a7   : > { %10409 = vmatmul.mubr.f32.vlgmr.msra.gmra.mrb[26].mxu0 %v4320_v44  ;;  %v14976_v44 = vsub.f32 %v14769_v58, %v4777_v27  ;;  %v14995_v58 = vsub.f32 %v14789_v29, %v4786_v11  ;;  %v16005_v27 = vand.u32 4294901760, %v14925_v3  ;;  %v16013_v29 = vand.u32 4294901760, %v14964_v57 }
 0x4a8   : > { %11574 = vmatpush3.bf16.msra.mxu1 %v14878_v54  ;;  %11778 = vmatpush3.bf16.msra.mxu0 %v14836_v55  ;;  %v16010_v11 = vand.u32 4294901760, %v14969_v24 }
 0x4a9   : > { %10709 = vmatprep.mubr.f32.mxu0 %v14611_v45  ;;  %11576 = vmatprep.subr.bf16.mxu1 %v14915_v21  ;;  %v16012_v47 = vand.u32 4294901760, %v14976_v44  ;;  %v15046_v12 = vpack.c.bf16 %v16005_v27, %v16006_v53  ;;  %v4876_v53 = vand.u32 4294901760, %v4875_v35  ;;  %v4903_v35 = vsub.f32 %v14992_v28, %v16015_v48 }
 0x4aa   : > { %11780 = vmatprep.subr.bf16.mxu0 %v14931_v1  ;;  %v15066_v27 = vpack.c.bf16 %v16010_v11, %v16013_v29  ;;  %v15082_v11 = vld [vmem:[%s15936_s5 + $0x168] sm:$0xff]  ;;  %v16203_v40 = vand.u32 4294901760, %v14995_v58  ;;  %v15100_v29 = vld [vmem:[%s15936_s5 + $0x178] sm:$0xff]  ;;  %v16204_v48 = vand.u32 4294901760, %v15016_v14 }
 0x4ab   : > { %16199 = vst [vmem:[#allocation12_spill] sm:$0xff] %v15046_v12  ;;  %v4889_v33 = vsub.f32 %v14976_v44, %v16012_v47 }
 0x4ac   : > { %11578 = vmatpush3.bf16.msra.mxu1 %v14915_v21  ;;  %11782 = vmatpush3.bf16.msra.mxu0 %v14931_v1  ;;  %16202 = vst [vmem:[#allocation17_spill] sm:$0xff] %v15066_v27  ;;  %v4910_v47 = vsub.f32 %v14995_v58, %v16203_v40  ;;  %v15110_v45 = vpack.c.bf16 %v16204_v48, %v16027_v25  ;;  %v16206_v40 = vand.u32 4294901760, %v14795_v16  ;;  %v16208_v21 = vand.u32 4294901760, %v14841_v32 }
 0x4ad   : > { %11580 = vmatprep.subr.bf16.mxu1 %v14937_v4  ;;  %11784 = vmatprep.subr.bf16.mxu0 %v14989_v15  ;;  %v11591_v25 = vpack.c.bf16 %v4883_v0, %v4876_v53  ;;  %v4890_v55 = vand.u32 4294901760, %v4889_v33  ;;  %v16212_v53 = vand.u32 4294901760, %v14851_v26  ;;  %v16214_v0 = vand.u32 4294901760, %v15077_v52 }
 0x4ae   : > { %16205 = vst [vmem:[#allocation15_spill] sm:$0xff] %v15110_v45  ;;  %v15115_v43 = vsub.f32 %v14795_v16, %v16206_v40  ;;  %v15128_v48 = vsub.f32 %v14841_v32, %v16208_v21  ;;  %v4897_v16 = vand.u32 4294901760, %v4896_v7  ;;  %v4924_v32 = vsub.f32 %v15038_v5, %v16210_v6 }
 0x4af   : > { %v16211_v21 = vand.u32 4294901760, %v14846_v13  ;;  %v16213_v6 = vand.u32 4294901760, %v14857_v34  ;;  %v16215_v33 = vand.u32 4294901760, %v15082_v11 }
 0x4b0   : > { %11582 = vmatpush3.bf16.msra.mxu1 %v14937_v4  ;;  %11786 = vmatpush3.bf16.msra.mxu0 %v14989_v15  ;;  %v16207_v15 = vand.u32 4294901760, %v14800_v22  ;;  %v16209_v4 = vand.u32 4294901760, %v15033_v19 }
 0x4b1   : > { %11584 = vmatprep.subr.bf16.mxu1 %v15046_v12  ;;  %11788 = vmatprep.subr.bf16.mxu0 %v15052_v42  ;;  %v15163_v40 = vpack.c.bf16 %v16215_v33, %v16214_v0  ;;  %v11595_v0 = vpack.c.bf16 %v4897_v16, %v4890_v55  ;;  %v16224_v55 = vand.u32 4294901760, %v15128_v48 }
 0x4b2   : > { %v15120_v23 = vsub.f32 %v14800_v22, %v16207_v15  ;;  %v4904_v22 = vand.u32 4294901760, %v4903_v35  ;;  %v4911_v15 = vand.u32 4294901760, %v4910_v47  ;;  %v4917_v1 = vsub.f32 %v15033_v19, %v16209_v4 }
 0x4b3   : > { %v15146_v47 = vsub.f32 %v14846_v13, %v16211_v21  ;;  %v15151_v4 = vsub.f32 %v14851_v26, %v16212_v53  ;;  %v15157_v35 = vsub.f32 %v14857_v34, %v16213_v6  ;;  %16216 = vst [vmem:[#allocation19_spill] sm:$0xff] %v15163_v40  ;;  %v16217_v13 = vand.u32 4294901760, %v15087_v59 }
 0x4b4   : > { %11586 = vmatpush3.bf16.msra.mxu1 %v15046_v12  ;;  %11790 = vmatpush3.bf16.msra.mxu0 %v15052_v42  ;;  %v16218_v21 = vand.u32 4294901760, %v15100_v29  ;;  %v16220_v26 = vand.u32 4294901760, %v14862_v31  ;;  %v16221_v34 = vand.u32 4294901760, %v14867_v37  ;;  %v11599_v33 = vpack.c.bf16 %v4911_v15, %v4904_v22 }
 0x4b5   : > { %11588 = vmatprep.subr.bf16.mxu1 %v15060_v46  ;;  %11792 = vmatprep.subr.bf16.mxu0 %v15066_v27  ;;  %v4918_v7 = vand.u32 4294901760, %v4917_v1  ;;  %v4925_v12 = vand.u32 4294901760, %v4924_v32  ;;  %v4931_v1 = vsub.f32 %v15128_v48, %v16224_v55  ;;  %v16225_v22 = vand.u32 4294901760, %v14885_v9 }
 0x4b6   : > { %v15169_v42 = vpack.c.bf16 %v16218_v21, %v16217_v13  ;;  %v15174_v53 = vsub.f32 %v14862_v31, %v16220_v26  ;;  %v15179_v6 = vsub.f32 %v14867_v37, %v16221_v34  ;;  %v16222_v13 = vand.u32 4294901760, %v15115_v43 }
 0x4b7   : > { %v16223_v21 = vand.u32 4294901760, %v15120_v23  ;;  %v15199_v15 = vsub.f32 %v14885_v9, %v16225_v22  ;;  %v16226_v32 = vand.u32 4294901760, %v14890_v8  ;;  %v16227_v55 = vand.u32 4294901760, %v14920_v17 }
 0x4b8   : > { %16219 = vst [vmem:[#allocation20_spill] sm:$0xff] %v15169_v42  ;;  %11590 = vmatpush3.bf16.msra.mxu1 %v15060_v46  ;;  %11794 = vmatpush3.bf16.msra.mxu0 %v15066_v27  ;;  %v6089_v31 = vsub.f32 %v15115_v43, %v16222_v13  ;;  %v16228_v26 = vand.u32 4294901760, %v14925_v3  ;;  %v16229_v22 = vand.u32 4294901760, %v14942_v50  ;;  %v16230_v34 = vand.u32 4294901760, %v14947_v51 }
 0x4b9   : > { %11592 = vmatprep.subr.bf16.mxu1 %v11591_v25  ;;  %11796 = vmatprep.subr.bf16.mxu0 %v15110_v45  ;;  %v6096_v37 = vsub.f32 %v15120_v23, %v16223_v21  ;;  %v15204_v13 = vsub.f32 %v14890_v8, %v16226_v32  ;;  %v15212_v16 = vsub.f32 %v14920_v17, %v16227_v55  ;;  %v16233_v55 = vand.u32 4294901760, %v15157_v35 }
 0x4ba   : > { %v15217_v9 = vsub.f32 %v14925_v3, %v16228_v26  ;;  %v11603_v8 = vpack.c.bf16 %v4925_v12, %v4918_v7  ;;  %v15223_v32 = vsub.f32 %v14942_v50, %v16229_v22  ;;  %v15228_v21 = vsub.f32 %v14947_v51, %v16230_v34 }
 0x4bb   : > { %10458 = vmatmul.mubr.f32.vlgmr.msra.gmra.mrb[4].mxu1 %v14620_v10  ;;  %v6090_v17 = vand.u32 4294901760, %v6089_v31  ;;  %v6097_v3 = vand.u32 4294901760, %v6096_v37  ;;  %v16232_v12 = vand.u32 4294901760, %v15151_v4  ;;  %v4932_v50 = vand.u32 4294901760, %v4931_v1 }
 0x4bc   : > { %11594 = vmatpush3.bf16.msra.mxu1 %v11591_v25  ;;  %10492 = vmatprep.mubr.f32.mxu1 %v14560_v39  ;;  %v16231_v25 = vand.u32 4294901760, %v15146_v47  ;;  %v6110_v51 = vsub.f32 %v15157_v35, %v16233_v55  ;;  %v16234_v37 = vand.u32 4294901760, %v15174_v53  ;;  %v16236_v34 = vand.u32 4294901760, %v14952_v41 }
 0x4bd   : > { %11798 = vmatpush3.bf16.msra.mxu0 %v15110_v45  ;;  %11596 = vmatprep.subr.bf16.mxu1 %v11595_v0  ;;  %v6103_v7 = vsub.f32 %v15151_v4, %v16232_v12  ;;  %v16239_v55 = vand.u32 4294901760, %v14969_v24 }
 0x4be   : > { %v4938_v26 = vsub.f32 %v15146_v47, %v16231_v25  ;;  %11800 = vmatprep.subr.bf16.mxu0 %v15163_v40  ;;  %v4945_v22 = vsub.f32 %v15174_v53, %v16234_v37  ;;  %v16235_v25 = vand.u32 4294901760, %v15179_v6  ;;  %v15256_v31 = vsub.f32 %v14952_v41, %v16236_v34 }
 0x4bf   : > { %v16237_v37 = vand.u32 4294901760, %v14959_v63  ;;  %v15272_v41 = vsub.f32 %v14969_v24, %v16239_v55  ;;  %v6104_v34 = vand.u32 4294901760, %v6103_v7  ;;  %v16243_v24 = vand.u32 4294901760, %v15217_v9 }
 0x4c0   : > { %v4952_v45 = vsub.f32 %v15179_v6, %v16235_v25  ;;  %11598 = vmatpush3.bf16.msra.mxu1 %v11595_v0  ;;  %v11807_v25 = vpack.c.bf16 %v6097_v3, %v6090_v17  ;;  %v4939_v1 = vand.u32 4294901760, %v4938_v26  ;;  %v16238_v0 = vand.u32 4294901760, %v14964_v57 }
 0x4c1   : > { %v15261_v46 = vsub.f32 %v14959_v63, %v16237_v37  ;;  %11802 = vmatpush3.bf16.msra.mxu0 %v15163_v40  ;;  %11600 = vmatprep.subr.bf16.mxu1 %v11599_v33  ;;  %v6111_v63 = vand.u32 4294901760, %v6110_v51  ;;  %v16240_v37 = vand.u32 4294901760, %v15199_v15  ;;  %v16241_v17 = vand.u32 4294901760, %v15204_v13 }
 0x4c2   : > { %v15267_v27 = vsub.f32 %v14964_v57, %v16238_v0  ;;  %11804 = vmatprep.subr.bf16.mxu0 %v15169_v42  ;;  %v4946_v26 = vand.u32 4294901760, %v4945_v22  ;;  %v4953_v57 = vand.u32 4294901760, %v4952_v45  ;;  %v16242_v0 = vand.u32 4294901760, %v15212_v16 }
 0x4c3   : > { %v6117_v12 = vsub.f32 %v15199_v15, %v16240_v37  ;;  %v6124_v3 = vsub.f32 %v15204_v13, %v16241_v17  ;;  %v4966_v55 = vsub.f32 %v15217_v9, %v16243_v24  ;;  %v16244_v7 = vand.u32 4294901760, %v15223_v32 }
 0x4c4   : > { %v4959_v40 = vsub.f32 %v15212_v16, %v16242_v0  ;;  %11602 = vmatpush3.bf16.msra.mxu1 %v11599_v33  ;;  %v16245_v37 = vand.u32 4294901760, %v15228_v21  ;;  %v16246_v33 = vand.u32 4294901760, %v15011_v36  ;;  %v11607_v22 = vpack.c.bf16 %v4939_v1, %v4932_v50 }
 0x4c5   : > { %v6131_v51 = vsub.f32 %v15223_v32, %v16244_v7  ;;  %11806 = vmatpush3.bf16.msra.mxu0 %v15169_v42  ;;  %11604 = vmatprep.subr.bf16.mxu1 %v11603_v8  ;;  %v16247_v7 = vand.u32 4294901760, %v15016_v14  ;;  %v11811_v45 = vpack.c.bf16 %v6111_v63, %v6104_v34  ;;  %v6118_v62 = vand.u32 4294901760, %v6117_v12 }
 0x4c6   : > { %v6138_v54 = vsub.f32 %v15228_v21, %v16245_v37  ;;  %v15301_v24 = vsub.f32 %v15011_v36, %v16246_v33  ;;  %11808 = vmatprep.subr.bf16.mxu0 %v11807_v25  ;;  %v6125_v42 = vand.u32 4294901760, %v6124_v3  ;;  %v11611_v56 = vpack.c.bf16 %v4953_v57, %v4946_v26 }
 0x4c7   : > { %v15306_v37 = vsub.f32 %v15016_v14, %v16247_v7  ;;  %v4960_v49 = vand.u32 4294901760, %v4959_v40  ;;  %v4967_v17 = vand.u32 4294901760, %v4966_v55  ;;  %v6132_v0 = vand.u32 4294901760, %v6131_v51 }
 0x4c8   : > { %10710 = vmatmul.mubr.f32.vlgmr.msra.gmra.mrb[28].mxu0 %v14620_v10  ;;  %11606 = vmatpush3.bf16.msra.mxu1 %v11603_v8  ;;  %v6139_v60 = vand.u32 4294901760, %v6138_v54  ;;  %v16248_v36 = vand.u32 4294901760, %v15256_v31  ;;  %v16249_v14 = vand.u32 4294901760, %v15261_v46  ;;  %v16250_v50 = vand.u32 4294901760, %v15267_v27 }
 0x4c9   : > { %11810 = vmatpush3.bf16.msra.mxu0 %v11807_v25  ;;  %10744 = vmatprep.mubr.f32.mxu0 %v14560_v39  ;;  %v16251_v12 = vand.u32 4294901760, %v15272_v41  ;;  %v6158_v54 = vand.u32 4294901760, %v15301_v24  ;;  %v6165_v1 = vand.u32 4294901760, %v15306_v37  ;;  %v11815_v34 = vpack.c.bf16 %v6125_v42, %v6118_v62 }
 0x4ca   : > { %v4973_v33 = vsub.f32 %v15256_v31, %v16248_v36  ;;  %v4980_v7 = vsub.f32 %v15261_v46, %v16249_v14  ;;  %v6145_v40 = vsub.f32 %v15267_v27, %v16250_v50  ;;  %11608 = vmatprep.subr.bf16.mxu1 %v11607_v22  ;;  %11812 = vmatprep.subr.bf16.mxu0 %v11811_v45  ;;  %v16252_v63 = vand.u32 4294901760, %v15077_v52 }
 0x4cb   : > { %v6152_v8 = vsub.f32 %v15272_v41, %v16251_v12  ;;  %v16253_v3 = vand.u32 4294901760, %v15082_v11  ;;  %v11615_v57 = vpack.c.bf16 %v4967_v17, %v4960_v49  ;;  %v11819_v55 = vpack.c.bf16 %v6139_v60, %v6132_v0 }
 0x4cc   : > { %v15327_v25 = vsub.f32 %v15077_v52, %v16252_v63  ;;  %11610 = vmatpush3.bf16.msra.mxu1 %v11607_v22  ;;  %v4974_v51 = vand.u32 4294901760, %v4973_v33  ;;  %v4981_v36 = vand.u32 4294901760, %v4980_v7  ;;  %v6146_v14 = vand.u32 4294901760, %v6145_v40 }
 0x4cd   : > { %v15332_v26 = vsub.f32 %v15082_v11, %v16253_v3  ;;  %11814 = vmatpush3.bf16.msra.mxu0 %v11811_v45  ;;  %11612 = vmatprep.subr.bf16.mxu1 %v11611_v56  ;;  %v6153_v50 = vand.u32 4294901760, %v6152_v8  ;;  %v6159_v62 = vsub.f32 %v15301_v24, %v6158_v54  ;;  %v6166_v52 = vsub.f32 %v15306_v37, %v6165_v1 }
 0x4ce   : > { %11816 = vmatprep.subr.bf16.mxu0 %v11815_v34  ;;  %v6172_v11 = vand.u32 4294901760, %v15327_v25  ;;  %v16254_v60 = vand.u32 4294901760, %v15087_v59  ;;  %v16255_v22 = vand.u32 4294901760, %v15100_v29  ;;  %v11619_v17 = vpack.c.bf16 %v4981_v36, %v4974_v51 }
 0x4cf   : > { %v6179_v49 = vand.u32 4294901760, %v15332_v26  ;;  %v11823_v0 = vpack.c.bf16 %v6153_v50, %v6146_v14  ;;  %v6160_v33 = vand.u32 4294901760, %v6159_v62  ;;  %v6167_v7 = vand.u32 4294901760, %v6166_v52 }
 0x4d0   : > { %v15345_v42 = vsub.f32 %v15087_v59, %v16254_v60  ;;  %v15350_v45 = vsub.f32 %v15100_v29, %v16255_v22  ;;  %11614 = vmatpush3.bf16.msra.mxu1 %v11611_v56  ;;  %v6173_v40 = vsub.f32 %v15327_v25, %v6172_v11  ;;  %v11623_v56 = vpack.c.bf16 %v14905_v38, %v14900_v30 }
 0x4d1   : > { %11818 = vmatpush3.bf16.msra.mxu0 %v11815_v34  ;;  %11616 = vmatprep.subr.bf16.mxu1 %v11615_v57  ;;  %v6180_v59 = vsub.f32 %v15332_v26, %v6179_v49  ;;  %v11827_v8 = vpack.c.bf16 %v6167_v7, %v6160_v33  ;;  %v11631_v50 = vpack.c.bf16 %v14995_v58, %v14992_v28 }
 0x4d2   : > { %11820 = vmatprep.subr.bf16.mxu0 %v11819_v55  ;;  %v16055_v12 = vand.u32 4294901760, %v15345_v42  ;;  %v16054_v29 = vand.u32 4294901760, %v15350_v45  ;;  %v6174_v34 = vand.u32 4294901760, %v6173_v40  ;;  %v11635_v52 = vpack.c.bf16 %v15038_v5, %v15033_v19 }
 0x4d3   : > { %v6181_v63 = vand.u32 4294901760, %v6180_v59  ;;  %v11839_v60 = vpack.c.bf16 %v15120_v23, %v15115_v43  ;;  %v11639_v22 = vpack.c.bf16 %v15146_v47, %v15128_v48  ;;  %v11847_v33 = vpack.c.bf16 %v15204_v13, %v15199_v15 }
 0x4d4   : > { %11618 = vmatpush3.bf16.msra.mxu1 %v11615_v57  ;;  %v6187_v3 = vsub.f32 %v15345_v42, %v16055_v12  ;;  %v6194_v51 = vsub.f32 %v15350_v45, %v16054_v29  ;;  %v11627_v57 = vpack.c.bf16 %v14981_v20, %v14976_v44  ;;  %v11647_v7 = vpack.c.bf16 %v15217_v9, %v15212_v16  ;;  %v16275_v29 = vld [vmem:[#allocation3_spill] sm:$0xff] }
 0x4d5   : > { %11822 = vmatpush3.bf16.msra.mxu0 %v11819_v55  ;;  %11620 = vmatprep.subr.bf16.mxu1 %v11619_v17  ;;  %v11831_v55 = vpack.c.bf16 %v6181_v63, %v6174_v34  ;;  %v11851_v40 = vpack.c.bf16 %v15228_v21, %v15223_v32  ;;  %v11651_v59 = vpack.c.bf16 %v15261_v46, %v15256_v31  ;;  %v16256_v63 = vld [vmem:[#allocation18_spill] sm:$0xff] }
 0x4d6   : > { %11824 = vmatprep.subr.bf16.mxu0 %v11823_v0  ;;  %v6188_v36 = vand.u32 4294901760, %v6187_v3  ;;  %v6195_v14 = vand.u32 4294901760, %v6194_v51  ;;  %v11863_v34 = vpack.c.bf16 %v15332_v26, %v15327_v25  ;;  %v16257_v3 = vld [vmem:[#allocation2_spill] sm:$0xff]  ;;  %v16258_v51 = vld [vmem:[#allocation4_spill] sm:$0xff] }
 0x4d8   : > { %11622 = vmatpush3.bf16.msra.mxu1 %v11619_v17  ;;  %v11835_v62 = vpack.c.bf16 %v6195_v14, %v6188_v36  ;;  %v11843_v17 = vpack.c.bf16 %v15157_v35, %v15151_v4  ;;  %v16260_v36 = vld [vmem:[#allocation9_spill] sm:$0xff]  ;;  %v16261_v14 = vld [vmem:[#allocation6_spill] sm:$0xff] }
 0x4d9   : > { %11826 = vmatpush3.bf16.msra.mxu0 %v11823_v0  ;;  %11624 = vmatprep.subr.bf16.mxu1 %v11623_v56  ;;  %v11643_v0 = vpack.c.bf16 %v15179_v6, %v15174_v53 }
 0x4da   : > { %11828 = vmatprep.subr.bf16.mxu0 %v11827_v8 }
 0x4db   : > { %10493 = vmatmul.mubr.f32.vlgmr.msra.gmra.mrb[4].mxu1 %v14574_v18 }
 0x4dc   : > { %11626 = vmatpush3.bf16.msra.mxu1 %v11623_v56  ;;  %10527 = vmatprep.mubr.f32.mxu1 %v14572_v61  ;;  %v11855_v56 = vpack.c.bf16 %v15272_v41, %v15267_v27 }
 0x4dd   : > { %11830 = vmatpush3.bf16.msra.mxu0 %v11827_v8  ;;  %11628 = vmatprep.subr.bf16.mxu1 %v11627_v57  ;;  %v11859_v8 = vpack.c.bf16 %v15306_v37, %v15301_v24  ;;  %v9044_v24 = vld [vmem:[%s15935_s4 + $0x10] sm:$0xff] }
 0x4de   : > { %11832 = vmatprep.subr.bf16.mxu0 %v11831_v55  ;;  %v5458_v37 = vsel %vm4234_vm8, %v9044_v24, 0 }
 0x4e0   : > { %11630 = vmatpush3.bf16.msra.mxu1 %v11627_v57  ;;  %v11867_v57 = vpack.c.bf16 %v15350_v45, %v15345_v42 }
 0x4e1   : > { %11834 = vmatpush3.bf16.msra.mxu0 %v11831_v55  ;;  %11632 = vmatprep.subr.bf16.mxu1 %v11631_v50  ;;  %v16259_v55 = vld [vmem:[#allocation7_spill] sm:$0xff] }
 0x4e2   : > { %11836 = vmatprep.subr.bf16.mxu0 %v11835_v62 }
 0x4e4   : > { %11634 = vmatpush3.bf16.msra.mxu1 %v11631_v50  ;;  %v16262_v50 = vld [vmem:[#allocation8_spill] sm:$0xff] }
 0x4e5   : > { %11838 = vmatpush3.bf16.msra.mxu0 %v11835_v62  ;;  %11636 = vmatprep.subr.bf16.mxu1 %v11635_v52  ;;  %v16263_v62 = vld [vmem:[#allocation11_spill] sm:$0xff] }
 0x4e6   : > { %11840 = vmatprep.subr.bf16.mxu0 %v11839_v60 }
 0x4e8   : > { %10745 = vmatmul.mubr.f32.vlgmr.msra.gmra.mrb[28].mxu0 %v14574_v18  ;;  %11638 = vmatpush3.bf16.msra.mxu1 %v11635_v52  ;;  %v16264_v52 = vld [vmem:[#allocation10_spill] sm:$0xff] }
 0x4e9   : > { %11842 = vmatpush3.bf16.msra.mxu0 %v11839_v60  ;;  %10779 = vmatprep.mubr.f32.mxu0 %v14572_v61  ;;  %v16265_v60 = vld [vmem:[#allocation13_spill] sm:$0xff] }
 0x4ea   : > { %11640 = vmatprep.subr.bf16.mxu1 %v11639_v22  ;;  %11844 = vmatprep.subr.bf16.mxu0 %v11843_v17 }
 0x4ec   : > { %11642 = vmatpush3.bf16.msra.mxu1 %v11639_v22  ;;  %v16266_v22 = vld [vmem:[#allocation12_spill] sm:$0xff] }
 0x4ed   : > { %11846 = vmatpush3.bf16.msra.mxu0 %v11843_v17  ;;  %11644 = vmatprep.subr.bf16.mxu1 %v11643_v0  ;;  %v16267_v17 = vld [vmem:[#allocation16_spill] sm:$0xff] }
 0x4ee   : > { %11848 = vmatprep.subr.bf16.mxu0 %v11847_v33 }
 0x4f0   : > { %11646 = vmatpush3.bf16.msra.mxu1 %v11643_v0  ;;  %v16268_v0 = vld [vmem:[#allocation14_spill] sm:$0xff] }
 0x4f1   : > { %11850 = vmatpush3.bf16.msra.mxu0 %v11847_v33  ;;  %11648 = vmatprep.subr.bf16.mxu1 %v11647_v7  ;;  %v16269_v33 = vand.u32 4294901760, %v14900_v30  ;;  %v16276_v30 = vand.u32 4294901760, %v14992_v28  ;;  %v16283_v28 = vand.u32 4294901760, %v15120_v23  ;;  %v16289_v23 = vand.u32 4294901760, %v15179_v6 }
 0x4f2   : > { %11852 = vmatprep.subr.bf16.mxu0 %v11851_v40  ;;  %v16295_v6 = vand.u32 4294901760, %v15228_v21  ;;  %v11923_v21 = vpack.c.bf16 %v6165_v1, %v6158_v54  ;;  %v15552_v54 = vand.u32 4294901760, %v5458_v37 }
 0x4f4   : > { %11650 = vmatpush3.bf16.msra.mxu1 %v11647_v7  ;;  %v16270_v7 = vand.u32 4294901760, %v14905_v38  ;;  %v16277_v38 = vand.u32 4294901760, %v14995_v58  ;;  %v16284_v58 = vand.u32 4294901760, %v15128_v48  ;;  %v16290_v48 = vand.u32 4294901760, %v15199_v15 }
 0x4f5   : > { %11854 = vmatpush3.bf16.msra.mxu0 %v11851_v40  ;;  %11652 = vmatprep.subr.bf16.mxu1 %v11651_v59  ;;  %v16296_v15 = vand.u32 4294901760, %v15256_v31  ;;  %v5531_v1 = vsub.f32 %v5458_v37, %v15552_v54 }
 0x4f6   : > { %11856 = vmatprep.subr.bf16.mxu0 %v11855_v56  ;;  %v11687_v40 = vpack.c.bf16 %v16270_v7, %v16269_v33  ;;  %v11695_v33 = vpack.c.bf16 %v16277_v38, %v16276_v30  ;;  %v16278_v7 = vld [vmem:[#allocation19_spill] sm:$0xff]  ;;  %v16287_v30 = vand.u32 4294901760, %v15157_v35  ;;  %v16292_v35 = vand.u32 4294901760, %v15212_v16 }
 0x4f7   : > { %v16298_v16 = vand.u32 4294901760, %v15267_v27  ;;  %v11927_v27 = vpack.c.bf16 %v6179_v49, %v6172_v11  ;;  %v5532_v25 = vand.u32 4294901760, %v5531_v1  ;;  %v9045_v49 = vld [vmem:[%s15935_s4 + $0x18] sm:$0xff] }
 0x4f8   : > { %11654 = vmatpush3.bf16.msra.mxu1 %v11651_v59  ;;  %v16271_v59 = vld [vmem:[#allocation17_spill] sm:$0xff] }
 0x4f9   : > { %11858 = vmatpush3.bf16.msra.mxu0 %v11855_v56  ;;  %11656 = vmatprep.subr.bf16.mxu1 %v14764_v2  ;;  %v16272_v56 = vand.u32 4294901760, %v14976_v44  ;;  %v16279_v44 = vand.u32 4294901760, %v15033_v19  ;;  %v5533_v26 = vsub.f32 %v5531_v1, %v5532_v25 }
 0x4fa   : > { %11860 = vmatprep.subr.bf16.mxu0 %v11859_v8 }
 0x4fb   : > { %10528 = vmatmul.mubr.f32.vlgmr.msra.gmra.mrb[4].mxu1 %v16256_v63  ;;  %v5534_v11 = vand.u32 4294901760, %v5533_v26 }
 0x4fc   : > { %11658 = vmatpush3.bf16.msra.mxu1 %v14764_v2  ;;  %10562 = vmatprep.mubr.f32.mxu1 %v16257_v3 }
 0x4fd   : > { %11862 = vmatpush3.bf16.msra.mxu0 %v11859_v8  ;;  %11660 = vmatprep.subr.bf16.mxu1 %v16258_v51  ;;  %v16273_v8 = vand.u32 4294901760, %v14981_v20  ;;  %v16280_v20 = vand.u32 4294901760, %v15038_v5  ;;  %v16286_v5 = vand.u32 4294901760, %v15151_v4 }
 0x4fe   : > { %11864 = vmatprep.subr.bf16.mxu0 %v11863_v34 }
 0x4ff   : > { %v11907_v38 = vpack.c.bf16 %v16287_v30, %v16286_v5 }
 0x500   : > { %11662 = vmatpush3.bf16.msra.mxu1 %v16258_v51 }
 0x501   : > { %11866 = vmatpush3.bf16.msra.mxu0 %v11863_v34  ;;  %11664 = vmatprep.subr.bf16.mxu1 %v16259_v55  ;;  %v11691_v34 = vpack.c.bf16 %v16273_v8, %v16272_v56  ;;  %v16281_v56 = vld [vmem:[#allocation20_spill] sm:$0xff]  ;;  %v16282_v8 = vand.u32 4294901760, %v15115_v43  ;;  %v16288_v43 = vand.u32 4294901760, %v15174_v53  ;;  %v16294_v53 = vand.u32 4294901760, %v15223_v32 }
 0x502   : > { %11868 = vmatprep.subr.bf16.mxu0 %v11867_v57  ;;  %v16301_v32 = vand.u32 4294901760, %v15350_v45 }
 0x503   : > { %v11903_v12 = vpack.c.bf16 %v16283_v28, %v16282_v8 }
 0x504   : > { %11666 = vmatpush3.bf16.msra.mxu1 %v16259_v55 }
 0x505   : > { %11870 = vmatpush3.bf16.msra.mxu0 %v11867_v57  ;;  %11668 = vmatprep.subr.bf16.mxu1 %v16260_v36  ;;  %v16274_v57 = vld [vmem:[#allocation15_spill] sm:$0xff] }
 0x506   : > { %11872 = vmatprep.subr.bf16.mxu0 %v16261_v14 }
 0x508   : > { %10780 = vmatmul.mubr.f32.vlgmr.msra.gmra.mrb[28].mxu0 %v16256_v63  ;;  %11670 = vmatpush3.bf16.msra.mxu1 %v16260_v36 }
 0x509   : > { %11874 = vmatpush3.bf16.msra.mxu0 %v16261_v14  ;;  %10814 = vmatprep.mubr.f32.mxu0 %v16257_v3 }
 0x50a   : > { %11672 = vmatprep.subr.bf16.mxu1 %v16262_v50  ;;  %11876 = vmatprep.subr.bf16.mxu0 %v16263_v62 }
 0x50c   : > { %11674 = vmatpush3.bf16.msra.mxu1 %v16262_v50 }
 0x50d   : > { %11878 = vmatpush3.bf16.msra.mxu0 %v16263_v62  ;;  %11676 = vmatprep.subr.bf16.mxu1 %v16264_v52 }
 0x50e   : > { %11880 = vmatprep.subr.bf16.mxu0 %v16265_v60 }
 0x510   : > { %11678 = vmatpush3.bf16.msra.mxu1 %v16264_v52 }
 0x511   : > { %11882 = vmatpush3.bf16.msra.mxu0 %v16265_v60  ;;  %11680 = vmatprep.subr.bf16.mxu1 %v16266_v22 }
 0x512   : > { %11884 = vmatprep.subr.bf16.mxu0 %v16267_v17 }
 0x514   : > { %11682 = vmatpush3.bf16.msra.mxu1 %v16266_v22 }
 0x515   : > { %11886 = vmatpush3.bf16.msra.mxu0 %v16267_v17  ;;  %11684 = vmatprep.subr.bf16.mxu1 %v16268_v0 }
 0x516   : > { %11888 = vmatprep.subr.bf16.mxu0 %v16271_v59 }
 0x518   : > { %11686 = vmatpush3.bf16.msra.mxu1 %v16268_v0 }
 0x519   : > { %11890 = vmatpush3.bf16.msra.mxu0 %v16271_v59  ;;  %11688 = vmatprep.subr.bf16.mxu1 %v11687_v40 }
 0x51a   : > { %11892 = vmatprep.subr.bf16.mxu0 %v16274_v57 }
 0x51b   : > { %10563 = vmatmul.mubr.f32.vlgmr.msra.gmra.mrb[4].mxu1 %v16275_v29 }
 0x51c   : > { %11690 = vmatpush3.bf16.msra.mxu1 %v11687_v40  ;;  %10597 = vmatprep.mubr.f32.mxu1 %v14560_v39  ;;  %v11699_v40 = vpack.c.bf16 %v16280_v20, %v16279_v44  ;;  %v11915_v20 = vpack.c.bf16 %v16295_v6, %v16294_v53 }
 0x51d   : > { %11894 = vmatpush3.bf16.msra.mxu0 %v16274_v57  ;;  %11692 = vmatprep.subr.bf16.mxu1 %v11691_v34 }
 0x51e   : > { %11896 = vmatprep.subr.bf16.mxu0 %v16278_v7 }
 0x520   : > { %11694 = vmatpush3.bf16.msra.mxu1 %v11691_v34  ;;  %v16285_v34 = vand.u32 4294901760, %v15146_v47  ;;  %v16291_v47 = vand.u32 4294901760, %v15204_v13  ;;  %v16297_v13 = vand.u32 4294901760, %v15261_v46  ;;  %v16300_v46 = vand.u32 4294901760, %v15345_v42 }
 0x521   : > { %11898 = vmatpush3.bf16.msra.mxu0 %v16278_v7  ;;  %11696 = vmatprep.subr.bf16.mxu1 %v11695_v33  ;;  %v5461_v42 = vsel %vm4234_vm8, %v9045_v49, 0 }
 0x522   : > { %11900 = vmatprep.subr.bf16.mxu0 %v16281_v56  ;;  %v11703_v19 = vpack.c.bf16 %v16285_v34, %v16284_v58  ;;  %v11911_v4 = vpack.c.bf16 %v16291_v47, %v16290_v48  ;;  %v11931_v31 = vpack.c.bf16 %v16301_v32, %v16300_v46  ;;  %v15559_v45 = vand.u32 4294901760, %v5461_v42 }
 0x524   : > { %11698 = vmatpush3.bf16.msra.mxu1 %v11695_v33  ;;  %v11707_v33 = vpack.c.bf16 %v16289_v23, %v16288_v43 }
 0x525   : > { %11902 = vmatpush3.bf16.msra.mxu0 %v16281_v56  ;;  %11700 = vmatprep.subr.bf16.mxu1 %v11699_v40 }
 0x526   : > { %11904 = vmatprep.subr.bf16.mxu0 %v11903_v12 }
 0x528   : > { %10815 = vmatmul.mubr.f32.vlgmr.msra.gmra.mrb[28].mxu0 %v16275_v29  ;;  %11702 = vmatpush3.bf16.msra.mxu1 %v11699_v40  ;;  %v11715_v40 = vpack.c.bf16 %v16297_v13, %v16296_v15 }
 0x529   : > { %11906 = vmatpush3.bf16.msra.mxu0 %v11903_v12  ;;  %10849 = vmatprep.mubr.f32.mxu0 %v14560_v39  ;;  %v16293_v12 = vand.u32 4294901760, %v15217_v9  ;;  %v16299_v9 = vand.u32 4294901760, %v15272_v41 }
 0x52a   : > { %11704 = vmatprep.subr.bf16.mxu1 %v11703_v19  ;;  %11908 = vmatprep.subr.bf16.mxu0 %v11907_v38 }
 0x52b   : > { %v11711_v44 = vpack.c.bf16 %v16293_v12, %v16292_v35  ;;  %v11919_v8 = vpack.c.bf16 %v16299_v9, %v16298_v16 }
 0x52c   : > { %11706 = vmatpush3.bf16.msra.mxu1 %v11703_v19 }
 0x52d   : > { %11910 = vmatpush3.bf16.msra.mxu0 %v11907_v38  ;;  %11708 = vmatprep.subr.bf16.mxu1 %v11707_v33 }
 0x52e   : > { %11912 = vmatprep.subr.bf16.mxu0 %v11911_v4 }
 0x530   : > { %11710 = vmatpush3.bf16.msra.mxu1 %v11707_v33 }
 0x531   : > { %11914 = vmatpush3.bf16.msra.mxu0 %v11911_v4  ;;  %11712 = vmatprep.subr.bf16.mxu1 %v11711_v44 }
 0x532   : > { %11916 = vmatprep.subr.bf16.mxu0 %v11915_v20 }
 0x534   : > { %11714 = vmatpush3.bf16.msra.mxu1 %v11711_v44 }
 0x535   : > { %11918 = vmatpush3.bf16.msra.mxu0 %v11915_v20  ;;  %11716 = vmatprep.subr.bf16.mxu1 %v11715_v40 }
 0x536   : > { %11920 = vmatprep.subr.bf16.mxu0 %v11919_v8 }
 0x538   : > { %11718 = vmatpush3.bf16.msra.mxu1 %v11715_v40  ;;  %v9062_v40 = vld [vmem:[%s15935_s4 + $0x20] sm:$0xff] }
 0x539   : > { %11922 = vmatpush3.bf16.msra.mxu0 %v11919_v8  ;;  %11720 = vmatprep.subr.bf16.mxu1 %v14764_v2  ;;  %v6672_v16 = vsel %vm4234_vm8, %v9062_v40, 0  ;;  %v9063_v8 = vld [vmem:[%s15935_s4 + $0x28] sm:$0xff] }
 0x53a   : > { %11924 = vmatprep.subr.bf16.mxu0 %v11923_v21  ;;  %v6744_v9 = vand.u32 4294901760, %v6672_v16 }
 0x53b   : > { %10598 = vmatmul.mubr.f32.vlgmr.msra.gmra.mrb[4].mxu1 %v14574_v18 }
 0x53c   : > { %11722 = vmatpush3.bf16.msra.mxu1 %v14764_v2  ;;  %10632 = vmatprep.mubr.f32.mxu1 %v14560_v39 }
 0x53d   : > { %11926 = vmatpush3.bf16.msra.mxu0 %v11923_v21  ;;  %11724 = vmatprep.subr.bf16.mxu1 %v16258_v51  ;;  %v6745_v21 = vsub.f32 %v6672_v16, %v6744_v9 }
 0x53e   : > { %11928 = vmatprep.subr.bf16.mxu0 %v11927_v27 }
 0x53f   : > { %v6746_v32 = vand.u32 4294901760, %v6745_v21 }
 0x540   : > { %11726 = vmatpush3.bf16.msra.mxu1 %v16258_v51  ;;  %v5541_v51 = vsub.f32 %v5461_v42, %v15559_v45 }
 0x541   : > { %11930 = vmatpush3.bf16.msra.mxu0 %v11927_v27  ;;  %11728 = vmatprep.subr.bf16.mxu1 %v16259_v55  ;;  %v6675_v27 = vsel %vm4234_vm8, %v9063_v8, 0  ;;  %v6747_v24 = vsub.f32 %v6745_v21, %v6746_v32 }
 0x542   : > { %11932 = vmatprep.subr.bf16.mxu0 %v11931_v31  ;;  %v6754_v46 = vand.u32 4294901760, %v6675_v27 }
 0x544   : > { %11730 = vmatpush3.bf16.msra.mxu1 %v16259_v55  ;;  %v5542_v55 = vand.u32 4294901760, %v5541_v51 }
 0x545   : > { %11934 = vmatpush3.bf16.msra.mxu0 %v11931_v31  ;;  %11732 = vmatprep.subr.bf16.mxu1 %v16260_v36  ;;  %v6755_v31 = vsub.f32 %v6675_v27, %v6754_v46 }
 0x546   : > { %11936 = vmatprep.subr.bf16.mxu0 %v16261_v14 }
 0x547   : > { %v6756_v37 = vand.u32 4294901760, %v6755_v31 }
 0x548   : > { %10850 = vmatmul.mubr.f32.vlgmr.msra.gmra.mrb[28].mxu0 %v14574_v18  ;;  %11734 = vmatpush3.bf16.msra.mxu1 %v16260_v36 }
 0x549   : > { %11938 = vmatpush3.bf16.msra.mxu0 %v16261_v14  ;;  %10884 = vmatprep.mubr.f32.mxu0 %v14560_v39 }
 0x54a   : > { %11736 = vmatprep.subr.bf16.mxu1 %v16262_v50  ;;  %11940 = vmatprep.subr.bf16.mxu0 %v16263_v62 }
 0x54c   : > { %11738 = vmatpush3.bf16.msra.mxu1 %v16262_v50 }
 0x54d   : > { %11942 = vmatpush3.bf16.msra.mxu0 %v16263_v62  ;;  %11740 = vmatprep.subr.bf16.mxu1 %v16264_v52 }
 0x54e   : > { %11944 = vmatprep.subr.bf16.mxu0 %v16265_v60 }
 0x550   : > { %11742 = vmatpush3.bf16.msra.mxu1 %v16264_v52  ;;  %v5543_v52 = vsub.f32 %v5541_v51, %v5542_v55 }
 0x551   : > { %11946 = vmatpush3.bf16.msra.mxu0 %v16265_v60  ;;  %11744 = vmatprep.subr.bf16.mxu1 %v16266_v22 }
 0x552   : > { %11948 = vmatprep.subr.bf16.mxu0 %v16267_v17 }
 0x554   : > { %11746 = vmatpush3.bf16.msra.mxu1 %v16266_v22 }
 0x555   : > { %11950 = vmatpush3.bf16.msra.mxu0 %v16267_v17  ;;  %11748 = vmatprep.subr.bf16.mxu1 %v16268_v0 }
 0x556   : > { %11952 = vmatprep.subr.bf16.mxu0 %v16271_v59 }
 0x558   : > { %11750 = vmatpush3.bf16.msra.mxu1 %v16268_v0 }
 0x559   : > { %11954 = vmatpush3.bf16.msra.mxu0 %v16271_v59 }
 0x55a   : > { %11956 = vmatprep.subr.bf16.mxu0 %v16274_v57 }
 0x55b   : > { %10633 = vmatmul.mubr.f32.vlgmr.msra.gmra.mrb[4].mxu1 %v14574_v18 }
 0x55c   : > { %10639 = vmatprep.mubr.f32.mxu1 %v5534_v11  ;;  %v9065_v11 = vld [vmem:[%s15936_s5 + $0x188] sm:$0xff] }
 0x55d   : > { %11958 = vmatpush3.bf16.msra.mxu0 %v16274_v57  ;;  %v5544_v57 = vand.u32 4294901760, %v5543_v52  ;;  %v7202_v42 = vand.u32 4294901760, %v9065_v11 }
 0x55e   : > { %11960 = vmatprep.subr.bf16.mxu0 %v16278_v7 }
 0x561   : > { %11962 = vmatpush3.bf16.msra.mxu0 %v16278_v7 }
 0x562   : > { %11964 = vmatprep.subr.bf16.mxu0 %v16281_v56 }
 0x565   : > { %11966 = vmatpush3.bf16.msra.mxu0 %v16281_v56 }
 0x568   : > { %10885 = vmatmul.mubr.f32.vlgmr.msra.gmra.mrb[28].mxu0 %v14574_v18 }
 0x57a   : > { %v15544_v2 = vpop.f32.mrb[26].mxu0 }
 0x57b   : > { %v15546_v41 = vpop.f32.mrb[27].mxu0 }
 0x62e   : > { %v10634_v36 = vpop.f32.mrb[4].mxu1 }
 0x62f   : > { %v5467_v14 = vand.u32 4294901760, %v10634_v36  ;;  %v5444_v50 = vpop.f32.mrb[5].mxu1 }
 0x630   : > { %v5464_v62 = vand.u32 4294901760, %v5444_v50 }
 0x631   : > { %v5559_v60 = vsub.f32 %v10634_v36, %v5467_v14 }
 0x632   : > { %v11751_v22 = vpack.c.bf16 %v5467_v14, %v5464_v62  ;;  %v5552_v17 = vsub.f32 %v5444_v50, %v5464_v62  ;;  %v9068_v50 = vld [vmem:[%s15936_s5 + $0x1a0] sm:$0xff]  ;;  %v9069_v62 = vld [vmem:[%s15936_s5 + $0x1a8] sm:$0xff] }
 0x633   : > { %v5560_v0 = vand.u32 4294901760, %v5559_v60 }
 0x634   : > { %v5553_v59 = vand.u32 4294901760, %v5552_v17  ;;  %11752 = vmatprep.subr.bf16.mxu1 %v11751_v22  ;;  %v11759_v7 = vpack.c.bf16 %v5559_v60, %v5552_v17 }
 0x635   : > { %v5561_v56 = vsub.f32 %v5559_v60, %v5560_v0  ;;  %11754 = vmatpush3.bf16.msra.mxu1 %v11751_v22  ;;  %v7211_v60 = vand.u32 4294901760, %v9068_v50 }
 0x636   : > { %v5554_v28 = vsub.f32 %v5552_v17, %v5553_v59  ;;  %v11767_v58 = vpack.c.bf16 %v5560_v0, %v5553_v59  ;;  %v9070_v17 = vld [vmem:[%s15936_s5 + $0x1b0] sm:$0xff]  ;;  %v9071_v0 = vld [vmem:[%s15936_s5 + $0x1b8] sm:$0xff] }
 0x637   : > { %v5562_v34 = vand.u32 4294901760, %v5561_v56  ;;  %v16302_v59 = vld [vmem:[#allocation5_spill] sm:$0xff]  ;;  %v7220_v56 = vand.u32 4294901760, %v9071_v0 }
 0x638   : > { %10640 = vmatmul.mubr.f32.vlgmr.msra.gmra.mrb[2].mxu1 %v5544_v57  ;;  %v5555_v19 = vand.u32 4294901760, %v5554_v28  ;;  %v9072_v28 = vld [vmem:[%s15936_s5 + $0x1c0] sm:$0xff] }
 0x639   : > { %10646 = vmatprep.mubr.f32.mxu1 %v15552_v54 }
 0x63a   : > { %v11755_v5 = vpack.c.bf16 %v5562_v34, %v5555_v19  ;;  %v7223_v34 = vand.u32 4294901760, %v9072_v28 }
 0x63b   : > { %v10886_v30 = vpop.f32.mrb[28].mxu0 }
 0x63c   : > { %v6681_v38 = vand.u32 4294901760, %v10886_v30  ;;  %v6658_v43 = vpop.f32.mrb[29].mxu0  ;;  %11756 = vmatprep.subr.bf16.mxu1 %v11755_v5 }
 0x63d   : > { %v6678_v23 = vand.u32 4294901760, %v6658_v43  ;;  %11758 = vmatpush3.bf16.msra.mxu1 %v11755_v5 }
 0x63e   : > { %v6773_v33 = vsub.f32 %v10886_v30, %v6681_v38  ;;  %11760 = vmatprep.subr.bf16.mxu1 %v11759_v7  ;;  %v9074_v30 = vld [vmem:[%s15936_s5 + $0x1d0] sm:$0xff] }
 0x63f   : > { %v15563_v48 = vpack.c.bf16 %v6681_v38, %v6678_v23  ;;  %v6766_v47 = vsub.f32 %v6658_v43, %v6678_v23  ;;  %v9075_v38 = vld [vmem:[%s15936_s5 + $0x1d8] sm:$0xff]  ;;  %v15640_v23 = vld [vmem:[%s15936_s5 + $0x1e0] sm:$0xff] }
 0x640   : > { %v6774_v4 = vand.u32 4294901760, %v6773_v33  ;;  %10647 = vmatmul.mubr.f32.vlgmr.msra.gmra.mrb[2].mxu1 %v15559_v45 }
 0x641   : > { %v6767_v35 = vand.u32 4294901760, %v6766_v47  ;;  %11762 = vmatpush3.bf16.msra.mxu1 %v11759_v7  ;;  %10653 = vmatprep.mubr.f32.mxu1 %v5531_v1  ;;  %v11975_v12 = vpack.c.bf16 %v6773_v33, %v6766_v47  ;;  %v6748_v1 = vand.u32 4294901760, %v6747_v24  ;;  %v7217_v7 = vand.u32 4294901760, %v9070_v17 }
 0x642   : > { %v6775_v44 = vsub.f32 %v6773_v33, %v6774_v4  ;;  %11764 = vmatprep.subr.bf16.mxu1 %v11751_v22  ;;  %v15645_v33 = vld [vmem:[%s15936_s5 + $0x1e8] sm:$0xff]  ;;  %v15692_v24 = vsub.f32 %v9068_v50, %v7211_v60 }
 0x643   : > { %v6768_v53 = vsub.f32 %v6766_v47, %v6767_v35  ;;  %v11983_v6 = vpack.c.bf16 %v6774_v4, %v6767_v35  ;;  %v15626_v5 = vpack.c.bf16 %v7220_v56, %v7217_v7  ;;  %v7232_v47 = vand.u32 4294901760, %v9075_v38 }
 0x644   : > { %v6776_v20 = vand.u32 4294901760, %v6775_v44  ;;  %v15650_v35 = vsub.f32 %v9065_v11, %v7202_v42  ;;  %v7238_v44 = vand.u32 4294901760, %v15645_v33 }
 0x645   : > { %v6769_v15 = vand.u32 4294901760, %v6768_v53 }
 0x646   : > { %v7309_v16 = vand.u32 4294901760, %v15650_v35 }
 0x647   : > { %v11971_v13 = vpack.c.bf16 %v6776_v20, %v6769_v15  ;;  %v15665_v15 = vld [vmem:[%s15936_s5 + $0x1f0] sm:$0xff] }
 0x648   : > { %10654 = vmatmul.mubr.f32.vlgmr.msra.gmra.mrb[2].mxu1 %v5541_v51  ;;  %v9066_v51 = vld [vmem:[%s15936_s5 + $0x190] sm:$0xff]  ;;  %v7241_v8 = vand.u32 4294901760, %v15665_v15 }
 0x649   : > { %11766 = vmatpush3.bf16.msra.mxu1 %v11751_v22  ;;  %10660 = vmatprep.mubr.f32.mxu1 %v5532_v25  ;;  %v6757_v25 = vsub.f32 %v6755_v31, %v6756_v37  ;;  %v7205_v36 = vand.u32 4294901760, %v9066_v51 }
 0x64a   : > { %11768 = vmatprep.subr.bf16.mxu1 %v11767_v58 }
 0x64b   : > { %v6758_v26 = vand.u32 4294901760, %v6757_v25  ;;  %v15655_v53 = vsub.f32 %v9066_v51, %v7205_v36  ;;  %v15698_v25 = vsub.f32 %v9071_v0, %v7220_v56  ;;  %v7330_v51 = vand.u32 4294901760, %v15692_v24 }
 0x64d   : > { %v7316_v27 = vand.u32 4294901760, %v15655_v53  ;;  %v7331_v0 = vsub.f32 %v15692_v24, %v7330_v51 }
 0x650   : > { %10661 = vmatmul.mubr.f32.vlgmr.msra.gmra.mrb[2].mxu1 %v5542_v55  ;;  %v9067_v55 = vld [vmem:[%s15936_s5 + $0x198] sm:$0xff] }
 0x651   : > { %11770 = vmatpush3.bf16.msra.mxu1 %v11767_v58  ;;  %10667 = vmatprep.mubr.f32.mxu1 %v15552_v54  ;;  %v7208_v14 = vand.u32 4294901760, %v9067_v55  ;;  %v9073_v58 = vld [vmem:[%s15936_s5 + $0x1c8] sm:$0xff] }
 0x652   : > { %11772 = vmatprep.subr.bf16.mxu1 %v11751_v22  ;;  %v7226_v19 = vand.u32 4294901760, %v9073_v58 }
 0x653   : > { %v15605_v52 = vpack.c.bf16 %v7208_v14, %v7205_v36 }
 0x654   : > { %v15635_v43 = vpack.c.bf16 %v7226_v19, %v7223_v34 }
 0x658   : > { %10668 = vmatmul.mubr.f32.vlgmr.msra.gmra.mrb[2].mxu1 %v15559_v45 }
 0x659   : > { %11774 = vmatpush3.bf16.msra.mxu1 %v11751_v22  ;;  %10674 = vmatprep.mubr.f32.mxu1 %v15552_v54  ;;  %v9064_v54 = vld [vmem:[%s15936_s5 + $0x180] sm:$0xff]  ;;  %v7214_v22 = vand.u32 4294901760, %v9069_v62 }
 0x65a   : > { %11968 = vmatprep.subr.bf16.mxu1 %v15563_v48  ;;  %v7199_v49 = vand.u32 4294901760, %v9064_v54 }
 0x65b   : > { %v15616_v57 = vpack.c.bf16 %v7214_v22, %v7211_v60  ;;  %v15721_v60 = vsub.f32 %v9073_v58, %v7226_v19  ;;  %v15741_v19 = vsub.f32 %v9075_v38, %v7232_v47 }
 0x65c   : > { %v15648_v4 = vsub.f32 %v9064_v54, %v7199_v49  ;;  %v7317_v54 = vsub.f32 %v15655_v53, %v7316_v27 }
 0x65d   : > { %v7365_v58 = vand.u32 4294901760, %v15721_v60 }
 0x65e   : > { %v7302_v40 = vand.u32 4294901760, %v15648_v4  ;;  %v7318_v50 = vand.u32 4294901760, %v7317_v54 }
 0x660   : > { %10675 = vmatmul.mubr.f32.vlgmr.msra.gmra.mrb[2].mxu1 %v15559_v45  ;;  %v15589_v45 = vpack.c.bf16 %v7202_v42, %v7199_v49 }
 0x661   : > { %11970 = vmatpush3.bf16.msra.mxu1 %v15563_v48  ;;  %10891 = vmatprep.mubr.f32.mxu1 %v6748_v1  ;;  %v15696_v1 = vsub.f32 %v9070_v17, %v7217_v7 }
 0x662   : > { %11972 = vmatprep.subr.bf16.mxu1 %v11971_v13 }
 0x663   : > { %v7344_v36 = vand.u32 4294901760, %v15696_v1 }
 0x665   : > { %v7345_v7 = vsub.f32 %v15696_v1, %v7344_v36 }
 0x668   : > { %10892 = vmatmul.mubr.f32.vlgmr.msra.gmra.mrb[2].mxu1 %v6758_v26 }
 0x669   : > { %11974 = vmatpush3.bf16.msra.mxu1 %v11971_v13  ;;  %10898 = vmatprep.mubr.f32.mxu1 %v6744_v9  ;;  %v15670_v13 = vld [vmem:[%s15936_s5 + $0x1f8] sm:$0xff] }
 0x66a   : > { %11976 = vmatprep.subr.bf16.mxu1 %v11975_v12 }
 0x670   : > { %10899 = vmatmul.mubr.f32.vlgmr.msra.gmra.mrb[2].mxu1 %v6754_v46 }
 0x671   : > { %11978 = vmatpush3.bf16.msra.mxu1 %v11975_v12  ;;  %10905 = vmatprep.mubr.f32.mxu1 %v6745_v21  ;;  %v7235_v12 = vand.u32 4294901760, %v15640_v23  ;;  %v7244_v21 = vand.u32 4294901760, %v15670_v13 }
 0x672   : > { %11980 = vmatprep.subr.bf16.mxu1 %v15563_v48 }
 0x673   : > { %v15705_v26 = vpack.c.bf16 %v7244_v21, %v7241_v8 }
 0x678   : > { %10906 = vmatmul.mubr.f32.vlgmr.msra.gmra.mrb[2].mxu1 %v6755_v31  ;;  %v7310_v31 = vsub.f32 %v15650_v35, %v7309_v16 }
 0x679   : > { %11982 = vmatpush3.bf16.msra.mxu1 %v15563_v48  ;;  %10912 = vmatprep.mubr.f32.mxu1 %v6746_v32  ;;  %v7303_v32 = vsub.f32 %v15648_v4, %v7302_v40 }
 0x67a   : > { %11984 = vmatprep.subr.bf16.mxu1 %v11983_v6  ;;  %v7311_v42 = vand.u32 4294901760, %v7310_v31  ;;  %v7332_v31 = vand.u32 4294901760, %v7331_v0 }
 0x67b   : > { %v7304_v49 = vand.u32 4294901760, %v7303_v32 }
 0x680   : > { %10913 = vmatmul.mubr.f32.vlgmr.msra.gmra.mrb[2].mxu1 %v6756_v37  ;;  %v15694_v37 = vsub.f32 %v9069_v62, %v7214_v22  ;;  %v15719_v62 = vsub.f32 %v9072_v28, %v7223_v34  ;;  %v12023_v22 = vpack.c.bf16 %v7311_v42, %v7304_v49 }
 0x681   : > { %11986 = vmatpush3.bf16.msra.mxu1 %v11983_v6  ;;  %10919 = vmatprep.mubr.f32.mxu1 %v6744_v9  ;;  %v15657_v6 = vsub.f32 %v9067_v55, %v7208_v14  ;;  %v7351_v14 = vand.u32 4294901760, %v15698_v25 }
 0x682   : > { %11988 = vmatprep.subr.bf16.mxu1 %v15563_v48  ;;  %v7337_v55 = vand.u32 4294901760, %v15694_v37  ;;  %v7358_v28 = vand.u32 4294901760, %v15719_v62 }
 0x683   : > { %v7352_v56 = vsub.f32 %v15698_v25, %v7351_v14 }
 0x684   : > { %v7359_v42 = vsub.f32 %v15719_v62, %v7358_v28 }
 0x685   : > { %v7353_v49 = vand.u32 4294901760, %v7352_v56 }
 0x688   : > { %10920 = vmatmul.mubr.f32.vlgmr.msra.gmra.mrb[2].mxu1 %v6754_v46 }
 0x689   : > { %11990 = vmatpush3.bf16.msra.mxu1 %v15563_v48  ;;  %10926 = vmatprep.mubr.f32.mxu1 %v6744_v9  ;;  %v7229_v48 = vand.u32 4294901760, %v9074_v30  ;;  %v15678_v9 = vpack.c.bf16 %v7238_v44, %v7235_v12 }
 0x68a   : > { %11992 = vmatprep.subr.bf16.mxu1 %v15589_v45 }
 0x68b   : > { %v15660_v20 = vpack.c.bf16 %v7232_v47, %v7229_v48  ;;  %v15739_v34 = vsub.f32 %v9074_v30, %v7229_v48  ;;  %v7366_v30 = vsub.f32 %v15721_v60, %v7365_v58  ;;  %v7379_v48 = vand.u32 4294901760, %v15741_v19 }
 0x68d   : > { %v7372_v38 = vand.u32 4294901760, %v15739_v34  ;;  %v7367_v0 = vand.u32 4294901760, %v7366_v30 }
 0x690   : > { %10927 = vmatmul.mubr.f32.vlgmr.msra.gmra.mrb[2].mxu1 %v6754_v46  ;;  %v7323_v46 = vand.u32 4294901760, %v15657_v6 }
 0x691   : > { %11994 = vmatpush3.bf16.msra.mxu1 %v15589_v45  ;;  %10961 = vmatprep.mubr.f32.mxu1 %v16302_v59  ;;  %v7338_v59 = vsub.f32 %v15694_v37, %v7337_v55 }
 0x692   : > { %11996 = vmatprep.subr.bf16.mxu1 %v15605_v52  ;;  %v7324_v11 = vsub.f32 %v15657_v6, %v7323_v46 }
 0x693   : > { %v7339_v54 = vand.u32 4294901760, %v7338_v59  ;;  %v7373_v59 = vsub.f32 %v15739_v34, %v7372_v38 }
 0x694   : > { %v7325_v17 = vand.u32 4294901760, %v7324_v11  ;;  %v7346_v11 = vand.u32 4294901760, %v7345_v7  ;;  %v7380_v7 = vsub.f32 %v15741_v19, %v7379_v48 }
 0x695   : > { %11998 = vmatpush3.bf16.msra.mxu1 %v15605_v52  ;;  %v12031_v47 = vpack.c.bf16 %v7339_v54, %v7332_v31 }
 0x696   : > { %12000 = vmatprep.subr.bf16.mxu1 %v15616_v57  ;;  %v12027_v32 = vpack.c.bf16 %v7325_v17, %v7318_v50  ;;  %v15761_v50 = vsub.f32 %v15645_v33, %v7238_v44  ;;  %v7360_v17 = vand.u32 4294901760, %v7359_v42  ;;  %v15774_v33 = vsub.f32 %v15665_v15, %v7241_v8 }
 0x697   : > { %v15779_v44 = vsub.f32 %v15670_v13, %v7244_v21  ;;  %v7381_v31 = vand.u32 4294901760, %v7380_v7  ;;  %v12059_v7 = vpack.c.bf16 %v15657_v6, %v15655_v53  ;;  %v12139_v53 = vpack.c.bf16 %v7379_v48, %v7372_v38 }
 0x698   : > { %v12039_v56 = vpack.c.bf16 %v7367_v0, %v7360_v17  ;;  %v7400_v15 = vand.u32 4294901760, %v15774_v33 }
 0x699   : > { %12002 = vmatpush3.bf16.msra.mxu1 %v15616_v57  ;;  %v7407_v8 = vand.u32 4294901760, %v15779_v44 }
 0x69a   : > { %12004 = vmatprep.subr.bf16.mxu1 %v15626_v5  ;;  %v7401_v42 = vsub.f32 %v15774_v33, %v7400_v15 }
 0x69b   : > { %v7408_v30 = vsub.f32 %v15779_v44, %v7407_v8 }
 0x69c   : > { %v7402_v17 = vand.u32 4294901760, %v7401_v42 }
 0x69d   : > { %12006 = vmatpush3.bf16.msra.mxu1 %v15626_v5  ;;  %v7409_v0 = vand.u32 4294901760, %v7408_v30 }
 0x69e   : > { %12008 = vmatprep.subr.bf16.mxu1 %v15635_v43 }
 0x6a1   : > { %12010 = vmatpush3.bf16.msra.mxu1 %v15635_v43 }
 0x6a2   : > { %12012 = vmatprep.subr.bf16.mxu1 %v15660_v20 }
 0x6a5   : > { %12014 = vmatpush3.bf16.msra.mxu1 %v15660_v20 }
 0x6a6   : > { %12016 = vmatprep.subr.bf16.mxu1 %v15678_v9 }
 0x6a9   : > { %12018 = vmatpush3.bf16.msra.mxu1 %v15678_v9 }
 0x6aa   : > { %12020 = vmatprep.subr.bf16.mxu1 %v15705_v26 }
 0x6ad   : > { %12022 = vmatpush3.bf16.msra.mxu1 %v15705_v26 }
 0x6ae   : > { %12024 = vmatprep.subr.bf16.mxu1 %v12023_v22 }
 0x6b0   : > { %10962 = vmatmul.mubr.f32.vlgmr.msra.gmra.mrb[6].mxu1 %v14620_v10  ;;  %v15756_v10 = vsub.f32 %v15640_v23, %v7235_v12  ;;  %v7393_v12 = vand.u32 4294901760, %v15761_v50 }
 0x6b1   : > { %12026 = vmatpush3.bf16.msra.mxu1 %v12023_v22  ;;  %10996 = vmatprep.mubr.f32.mxu1 %v14560_v39  ;;  %v12035_v22 = vpack.c.bf16 %v7353_v49, %v7346_v11 }
 0x6b2   : > { %12028 = vmatprep.subr.bf16.mxu1 %v12027_v32  ;;  %v7386_v23 = vand.u32 4294901760, %v15756_v10  ;;  %v7394_v11 = vsub.f32 %v15761_v50, %v7393_v12 }
 0x6b4   : > { %v7387_v54 = vsub.f32 %v15756_v10, %v7386_v23  ;;  %v7395_v49 = vand.u32 4294901760, %v7394_v11  ;;  %v12083_v11 = vpack.c.bf16 %v15779_v44, %v15774_v33  ;;  %v12143_v6 = vpack.c.bf16 %v7393_v12, %v7386_v23  ;;  %v8408_v23 = vld [vmem:[%s15937_s6 + $0x8] sm:$0xff]  ;;  %v8409_v12 = vld [vmem:[%s15937_s6 + $0x10] sm:$0xff] }
 0x6b5   : > { %12030 = vmatpush3.bf16.msra.mxu1 %v12027_v32  ;;  %v7374_v32 = vand.u32 4294901760, %v7373_v59  ;;  %v12055_v59 = vpack.c.bf16 %v15650_v35, %v15648_v4  ;;  %v12127_v4 = vpack.c.bf16 %v7337_v55, %v7330_v51  ;;  %v12131_v35 = vpack.c.bf16 %v7351_v14, %v7344_v36 }
 0x6b6   : > { %12032 = vmatprep.subr.bf16.mxu1 %v12031_v47  ;;  %v7388_v21 = vand.u32 4294901760, %v7387_v54  ;;  %v12075_v54 = vpack.c.bf16 %v15741_v19, %v15739_v34  ;;  %v8422_v44 = vand.u32 4294901760, %v8408_v23 }
 0x6b7   : > { %v12043_v13 = vpack.c.bf16 %v7381_v31, %v7374_v32  ;;  %v12067_v32 = vpack.c.bf16 %v15698_v25, %v15696_v1  ;;  %v12071_v31 = vpack.c.bf16 %v15721_v60, %v15719_v62 }
 0x6b8   : > { %v8516_v30 = vsub.f32 %v8408_v23, %v8422_v44 }
 0x6b9   : > { %12034 = vmatpush3.bf16.msra.mxu1 %v12031_v47  ;;  %v12047_v47 = vpack.c.bf16 %v7395_v49, %v7388_v21 }
 0x6ba   : > { %12036 = vmatprep.subr.bf16.mxu1 %v12035_v22 }
 0x6bd   : > { %12038 = vmatpush3.bf16.msra.mxu1 %v12035_v22  ;;  %v12051_v22 = vpack.c.bf16 %v7409_v0, %v7402_v17 }
 0x6be   : > { %12040 = vmatprep.subr.bf16.mxu1 %v12039_v56 }
 0x6c1   : > { %12042 = vmatpush3.bf16.msra.mxu1 %v12039_v56  ;;  %v12063_v56 = vpack.c.bf16 %v15694_v37, %v15692_v24 }
 0x6c2   : > { %12044 = vmatprep.subr.bf16.mxu1 %v12043_v13 }
 0x6c5   : > { %12046 = vmatpush3.bf16.msra.mxu1 %v12043_v13 }
 0x6c6   : > { %12048 = vmatprep.subr.bf16.mxu1 %v12047_v47 }
 0x6c9   : > { %12050 = vmatpush3.bf16.msra.mxu1 %v12047_v47 }
 0x6ca   : > { %12052 = vmatprep.subr.bf16.mxu1 %v12051_v22 }
 0x6cd   : > { %12054 = vmatpush3.bf16.msra.mxu1 %v12051_v22  ;;  %v8517_v22 = vand.u32 4294901760, %v8516_v30 }
 0x6ce   : > { %12056 = vmatprep.subr.bf16.mxu1 %v12055_v59 }
 0x6d0   : > { %10997 = vmatmul.mubr.f32.vlgmr.msra.gmra.mrb[6].mxu1 %v14574_v18 }
 0x6d1   : > { %12058 = vmatpush3.bf16.msra.mxu1 %v12055_v59  ;;  %11031 = vmatprep.mubr.f32.mxu1 %v14572_v61  ;;  %v12079_v61 = vpack.c.bf16 %v15761_v50, %v15756_v10  ;;  %v8407_v50 = vld [vmem:[%s15937_s6] sm:$0xff] }
 0x6d2   : > { %12060 = vmatprep.subr.bf16.mxu1 %v12059_v7  ;;  %v8419_v33 = vand.u32 4294901760, %v8407_v50 }
 0x6d4   : > { %v15904_v21 = vpack.c.bf16 %v8422_v44, %v8419_v33  ;;  %v8509_v42 = vsub.f32 %v8407_v50, %v8419_v33 }
 0x6d5   : > { %12062 = vmatpush3.bf16.msra.mxu1 %v12059_v7 }
 0x6d6   : > { %12064 = vmatprep.subr.bf16.mxu1 %v12063_v56  ;;  %12208 = vmatprep.subr.bf16.mxu0 %v15904_v21  ;;  %v8510_v0 = vand.u32 4294901760, %v8509_v42 }
 0x6d7   : > { %12210 = vmatpush3.bf16.msra.mxu0 %v15904_v21 }
 0x6d9   : > { %12066 = vmatpush3.bf16.msra.mxu1 %v12063_v56  ;;  %v8511_v56 = vsub.f32 %v8509_v42, %v8510_v0 }
 0x6da   : > { %12068 = vmatprep.subr.bf16.mxu1 %v12067_v32 }
 0x6dd   : > { %12070 = vmatpush3.bf16.msra.mxu1 %v12067_v32  ;;  %v8518_v32 = vsub.f32 %v8516_v30, %v8517_v22 }
 0x6de   : > { %12072 = vmatprep.subr.bf16.mxu1 %v12071_v31 }
 0x6e1   : > { %12074 = vmatpush3.bf16.msra.mxu1 %v12071_v31 }
 0x6e2   : > { %12076 = vmatprep.subr.bf16.mxu1 %v12075_v54 }
 0x6e5   : > { %12078 = vmatpush3.bf16.msra.mxu1 %v12075_v54 }
 0x6e6   : > { %12080 = vmatprep.subr.bf16.mxu1 %v12079_v61 }
 0x6e9   : > { %12082 = vmatpush3.bf16.msra.mxu1 %v12079_v61  ;;  %v8512_v61 = vand.u32 4294901760, %v8511_v56 }
 0x6ea   : > { %12084 = vmatprep.subr.bf16.mxu1 %v12083_v11 }
 0x6ed   : > { %12086 = vmatpush3.bf16.msra.mxu1 %v12083_v11  ;;  %v8519_v11 = vand.u32 4294901760, %v8518_v32 }
 0x6ee   : > { %12088 = vmatprep.subr.bf16.mxu1 %v15589_v45 }
 0x6f0   : > { %11032 = vmatmul.mubr.f32.vlgmr.msra.gmra.mrb[6].mxu1 %v16256_v63  ;;  %v12119_v63 = vpack.c.bf16 %v7309_v16, %v7302_v40  ;;  %v12147_v40 = vpack.c.bf16 %v7407_v8, %v7400_v15  ;;  %v9081_v16 = vld [vmem:[%s15935_s4 + $0x38] sm:$0xff]  ;;  %v8425_v8 = vand.u32 4294901760, %v8409_v12 }
 0x6f1   : > { %12090 = vmatpush3.bf16.msra.mxu1 %v15589_v45  ;;  %11066 = vmatprep.mubr.f32.mxu1 %v16257_v3  ;;  %v12123_v3 = vpack.c.bf16 %v7323_v46, %v7316_v27  ;;  %v8410_v15 = vld [vmem:[%s15937_s6 + $0x18] sm:$0xff] }
 0x6f2   : > { %12092 = vmatprep.subr.bf16.mxu1 %v15605_v52  ;;  %v8428_v13 = vand.u32 4294901760, %v8410_v15  ;;  %v8523_v47 = vsub.f32 %v8409_v12, %v8425_v8 }
 0x6f4   : > { %v15906_v49 = vpack.c.bf16 %v8428_v13, %v8425_v8  ;;  %v8530_v17 = vsub.f32 %v8410_v15, %v8428_v13  ;;  %v8524_v59 = vand.u32 4294901760, %v8523_v47 }
 0x6f5   : > { %12094 = vmatpush3.bf16.msra.mxu1 %v15605_v52 }
 0x6f6   : > { %12096 = vmatprep.subr.bf16.mxu1 %v15616_v57  ;;  %12212 = vmatprep.subr.bf16.mxu0 %v15906_v49  ;;  %v8531_v7 = vand.u32 4294901760, %v8530_v17  ;;  %v8525_v31 = vsub.f32 %v8523_v47, %v8524_v59 }
 0x6f7   : > { %12214 = vmatpush3.bf16.msra.mxu0 %v15906_v49 }
 0x6f8   : > { %v8532_v54 = vsub.f32 %v8530_v17, %v8531_v7 }
 0x6f9   : > { %12098 = vmatpush3.bf16.msra.mxu1 %v15616_v57 }
 0x6fa   : > { %12100 = vmatprep.subr.bf16.mxu1 %v15626_v5 }
 0x6fd   : > { %12102 = vmatpush3.bf16.msra.mxu1 %v15626_v5 }
 0x6fe   : > { %12104 = vmatprep.subr.bf16.mxu1 %v15635_v43 }
 0x701   : > { %12106 = vmatpush3.bf16.msra.mxu1 %v15635_v43 }
 0x702   : > { %12108 = vmatprep.subr.bf16.mxu1 %v15660_v20 }
 0x705   : > { %12110 = vmatpush3.bf16.msra.mxu1 %v15660_v20 }
 0x706   : > { %12112 = vmatprep.subr.bf16.mxu1 %v15678_v9 }
 0x709   : > { %12114 = vmatpush3.bf16.msra.mxu1 %v15678_v9 }
 0x70a   : > { %12116 = vmatprep.subr.bf16.mxu1 %v15705_v26 }
 0x70d   : > { %12118 = vmatpush3.bf16.msra.mxu1 %v15705_v26 }
 0x70e   : > { %12120 = vmatprep.subr.bf16.mxu1 %v12119_v63 }
 0x710   : > { %11067 = vmatmul.mubr.f32.vlgmr.msra.gmra.mrb[6].mxu1 %v16275_v29  ;;  %v12135_v29 = vpack.c.bf16 %v7365_v58, %v7358_v28 }
 0x711   : > { %12122 = vmatpush3.bf16.msra.mxu1 %v12119_v63  ;;  %11101 = vmatprep.mubr.f32.mxu1 %v14560_v39  ;;  %v8526_v63 = vand.u32 4294901760, %v8525_v31 }
 0x712   : > { %12124 = vmatprep.subr.bf16.mxu1 %v12123_v3 }
 0x715   : > { %12126 = vmatpush3.bf16.msra.mxu1 %v12123_v3  ;;  %v8533_v3 = vand.u32 4294901760, %v8532_v54 }
 0x716   : > { %12128 = vmatprep.subr.bf16.mxu1 %v12127_v4 }
 0x719   : > { %12130 = vmatpush3.bf16.msra.mxu1 %v12127_v4  ;;  %v12215_v4 = vpack.c.bf16 %v8519_v11, %v8512_v61 }
 0x71a   : > { %12132 = vmatprep.subr.bf16.mxu1 %v12131_v35 }
 0x71b   : > { %12216 = vmatprep.subr.bf16.mxu0 %v12215_v4 }
 0x71d   : > { %12134 = vmatpush3.bf16.msra.mxu1 %v12131_v35  ;;  %v12223_v35 = vpack.c.bf16 %v8516_v30, %v8509_v42 }
 0x71e   : > { %12136 = vmatprep.subr.bf16.mxu1 %v12135_v29 }
 0x721   : > { %12138 = vmatpush3.bf16.msra.mxu1 %v12135_v29  ;;  %v12219_v29 = vpack.c.bf16 %v8533_v3, %v8526_v63 }
 0x722   : > { %12140 = vmatprep.subr.bf16.mxu1 %v12139_v53 }
 0x725   : > { %12142 = vmatpush3.bf16.msra.mxu1 %v12139_v53  ;;  %v12227_v53 = vpack.c.bf16 %v8530_v17, %v8523_v47 }
 0x726   : > { %12144 = vmatprep.subr.bf16.mxu1 %v12143_v6 }
 0x729   : > { %12146 = vmatpush3.bf16.msra.mxu1 %v12143_v6  ;;  %v12239_v6 = vpack.c.bf16 %v8517_v22, %v8510_v0 }
 0x72a   : > { %12148 = vmatprep.subr.bf16.mxu1 %v12147_v40 }
 0x72d   : > { %12150 = vmatpush3.bf16.msra.mxu1 %v12147_v40  ;;  %v12243_v40 = vpack.c.bf16 %v8531_v7, %v8524_v59 }
 0x72e   : > { %12152 = vmatprep.subr.bf16.mxu1 %v15589_v45 }
 0x730   : > { %11102 = vmatmul.mubr.f32.vlgmr.msra.gmra.mrb[6].mxu1 %v14574_v18 }
 0x731   : > { %12154 = vmatpush3.bf16.msra.mxu1 %v15589_v45  ;;  %11136 = vmatprep.mubr.f32.mxu1 %v14560_v39  ;;  %v9080_v39 = vld [vmem:[%s15935_s4 + $0x30] sm:$0xff] }
 0x732   : > { %12156 = vmatprep.subr.bf16.mxu1 %v15605_v52  ;;  %v7886_v45 = vsel %vm4234_vm8, %v9080_v39, 0  ;;  %v4745_v39 = vpop.permute.xlu1 %4744 }
 0x735   : > { %12158 = vmatpush3.bf16.msra.mxu1 %v15605_v52  ;;  %v7958_v52 = vand.u32 4294901760, %v7886_v45 }
 0x736   : > { %12160 = vmatprep.subr.bf16.mxu1 %v15616_v57 }
 0x739   : > { %12162 = vmatpush3.bf16.msra.mxu1 %v15616_v57  ;;  %v7959_v57 = vsub.f32 %v7886_v45, %v7958_v52  ;;  %v4749_v45 = vpop.permute.xlu1 %4748 }
 0x73a   : > { %12164 = vmatprep.subr.bf16.mxu1 %v15626_v5 }
 0x73d   : > { %12166 = vmatpush3.bf16.msra.mxu1 %v15626_v5  ;;  %v7960_v5 = vand.u32 4294901760, %v7959_v57 }
 0x73e   : > { %12168 = vmatprep.subr.bf16.mxu1 %v15635_v43 }
 0x741   : > { %12170 = vmatpush3.bf16.msra.mxu1 %v15635_v43  ;;  %v7961_v43 = vsub.f32 %v7959_v57, %v7960_v5 }
 0x742   : > { %12172 = vmatprep.subr.bf16.mxu1 %v15660_v20 }
 0x745   : > { %12174 = vmatpush3.bf16.msra.mxu1 %v15660_v20  ;;  %v7962_v20 = vand.u32 4294901760, %v7961_v43 }
 0x746   : > { %12176 = vmatprep.subr.bf16.mxu1 %v15678_v9 }
 0x749   : > { %12178 = vmatpush3.bf16.msra.mxu1 %v15678_v9  ;;  %v7889_v9 = vsel %vm4234_vm8, %v9081_v16, 0 }
 0x74a   : > { %12180 = vmatprep.subr.bf16.mxu1 %v15705_v26  ;;  %v7968_v27 = vand.u32 4294901760, %v7889_v9 }
 0x74d   : > { %12182 = vmatpush3.bf16.msra.mxu1 %v15705_v26 }
 0x750   : > { %11137 = vmatmul.mubr.f32.vlgmr.msra.gmra.mrb[6].mxu1 %v14574_v18  ;;  %v7969_v18 = vsub.f32 %v7889_v9, %v7968_v27 }
 0x751   : > { %11143 = vmatprep.mubr.f32.mxu1 %v7962_v20 }
 0x752   : > { %v7970_v46 = vand.u32 4294901760, %v7969_v18 }
 0x754   : > { %v7971_v26 = vsub.f32 %v7969_v18, %v7970_v46 }
 0x756   : > { %v7972_v60 = vand.u32 4294901760, %v7971_v26 }
 0x823   : > { %v11138_v24 = vpop.f32.mrb[6].mxu1 }
 0x824   : > { %v7895_v37 = vand.u32 4294901760, %v11138_v24  ;;  %v7872_v1 = vpop.f32.mrb[7].mxu1 }
 0x825   : > { %v7892_v25 = vand.u32 4294901760, %v7872_v1 }
 0x826   : > { %v7987_v51 = vsub.f32 %v11138_v24, %v7895_v37 }
 0x827   : > { %v12183_v55 = vpack.c.bf16 %v7895_v37, %v7892_v25  ;;  %v7980_v36 = vsub.f32 %v7872_v1, %v7892_v25 }
 0x828   : > { %v7988_v14 = vand.u32 4294901760, %v7987_v51 }
 0x829   : > { %v7981_v62 = vand.u32 4294901760, %v7980_v36  ;;  %12184 = vmatprep.subr.bf16.mxu1 %v12183_v55  ;;  %v12191_v28 = vpack.c.bf16 %v7987_v51, %v7980_v36 }
 0x82a   : > { %v7989_v58 = vsub.f32 %v7987_v51, %v7988_v14  ;;  %12186 = vmatpush3.bf16.msra.mxu1 %v12183_v55 }
 0x82b   : > { %v7982_v34 = vsub.f32 %v7980_v36, %v7981_v62  ;;  %v12199_v19 = vpack.c.bf16 %v7988_v14, %v7981_v62 }
 0x82c   : > { %v7990_v38 = vand.u32 4294901760, %v7989_v58 }
 0x82d   : > { %11144 = vmatmul.mubr.f32.vlgmr.msra.gmra.mrb[2].mxu1 %v7972_v60  ;;  %v7983_v48 = vand.u32 4294901760, %v7982_v34 }
 0x82e   : > { %11150 = vmatprep.mubr.f32.mxu1 %v7958_v52 }
 0x82f   : > { %v12187_v10 = vpack.c.bf16 %v7990_v38, %v7983_v48 }
 0x831   : > { %12188 = vmatprep.subr.bf16.mxu1 %v12187_v10 }
 0x832   : > { %12190 = vmatpush3.bf16.msra.mxu1 %v12187_v10 }
 0x833   : > { %12192 = vmatprep.subr.bf16.mxu1 %v12191_v28 }
 0x835   : > { %11151 = vmatmul.mubr.f32.vlgmr.msra.gmra.mrb[2].mxu1 %v7968_v27 }
 0x836   : > { %12194 = vmatpush3.bf16.msra.mxu1 %v12191_v28  ;;  %11157 = vmatprep.mubr.f32.mxu1 %v7959_v57  ;;  %v12259_v57 = vadd.f32 %v4745_v39, %v15546_v41 }
 0x837   : > { %12196 = vmatprep.subr.bf16.mxu1 %v12183_v55 }
 0x83d   : > { %11158 = vmatmul.mubr.f32.vlgmr.msra.gmra.mrb[2].mxu1 %v7969_v18 }
 0x83e   : > { %12198 = vmatpush3.bf16.msra.mxu1 %v12183_v55  ;;  %11164 = vmatprep.mubr.f32.mxu1 %v7960_v5 }
 0x83f   : > { %12200 = vmatprep.subr.bf16.mxu1 %v12199_v19 }
 0x845   : > { %11165 = vmatmul.mubr.f32.vlgmr.msra.gmra.mrb[2].mxu1 %v7970_v46 }
 0x846   : > { %12202 = vmatpush3.bf16.msra.mxu1 %v12199_v19  ;;  %11171 = vmatprep.mubr.f32.mxu1 %v7958_v52 }
 0x847   : > { %12204 = vmatprep.subr.bf16.mxu1 %v12183_v55 }
 0x84d   : > { %11172 = vmatmul.mubr.f32.vlgmr.msra.gmra.mrb[2].mxu1 %v7968_v27 }
 0x84e   : > { %12206 = vmatpush3.bf16.msra.mxu1 %v12183_v55  ;;  %11178 = vmatprep.mubr.f32.mxu1 %v7958_v52  ;;  %v12257_v52 = vadd.f32 %v15544_v2, %v4749_v45 }
 0x855   : > { %11179 = vmatmul.mubr.f32.vlgmr.msra.gmra.mrb[2].mxu1 %v7968_v27 }
 0x928   : > { %v11180_v5 = vpop.f32.mrb[2].mxu1 }
 0x929   : > { %v12258_v43 = vadd.f32 %v12257_v52, %v11180_v5  ;;  %v8383_v20 = vpop.f32.mrb[3].mxu1 }
 0x92a   : > { %v12260_v16 = vadd.f32 %v12259_v57, %v8383_v20 }
 0x92b   : > { %v8398_v9 = vmin.f32 %v12258_v43, 0.0  ;;  %vm8396_vm10 = vcmp.gt.f32.partialorder %v12258_v43, 0.0 }
 0x92c   : > { %v8397_v27 = vmin.f32 %v12260_v16, 0.0  ;;  %vm8395_vm11 = vcmp.gt.f32.partialorder %v12260_v16, 0.0 }
 0x92d   : > { %v8401_v18 = vmul.f32 1.442695, %v8398_v9 }
 0x92e   : > { %v8399_v46 = vmul.f32 1.442695, %v8397_v27 }
 0x92f   : > { %12652 = vpow2.f32 %v8401_v18 }
 0x930   : > { %12654 = vpow2.f32 %v8399_v46 }
 0x939   : > { %v12653_v24 = vpop.eup %12652 }
 0x93a   : > { %v12655_v37 = vpop.eup %12654  ;;  %v9083_v1 = vadd.f32 -1.0, %v12653_v24 }
 0x93b   : > { %v9082_v25 = vadd.f32 -1.0, %v12655_v37 }
 0x93c   : > { %v8406_v26 = vsel %vm8396_vm10, %v12258_v43, %v9083_v1 }
 0x93d   : > { %v8416_v2 = vsel %vm8411_vm9, %v8406_v26, 0  ;;  %v8405_v41 = vsel %vm8395_vm11, %v12260_v16, %v9082_v25 }
 0x93e   : > { %v8497_v51 = vand.u32 4294901760, %v8416_v2  ;;  %v8413_v55 = vsel %vm8411_vm9, %v8405_v41, 0 }
 0x93f   : > { %v8487_v36 = vand.u32 4294901760, %v8413_v55 }
 0x940   : > { %v8498_v14 = vsub.f32 %v8416_v2, %v8497_v51 }
 0x941   : > { %v8488_v62 = vsub.f32 %v8413_v55, %v8487_v36 }
 0x942   : > { %v8499_v60 = vand.u32 4294901760, %v8498_v14 }
 0x943   : > { %v8489_v28 = vand.u32 4294901760, %v8488_v62 }
 0x944   : > { %v8500_v58 = vsub.f32 %v8498_v14, %v8499_v60 }
 0x945   : > { %v8490_v34 = vsub.f32 %v8488_v62, %v8489_v28 }
 0x946   : > { %v8501_v38 = vand.u32 4294901760, %v8500_v58 }
 0x947   : > { %v8491_v19 = vand.u32 4294901760, %v8490_v34 }
 0x949   : > { %11189 = vmatprep.mubr.f32.mxu0 %v8491_v19 }
 0x94a   : > { %11190 = vmatmul.mubr.f32.vlgmr.msra.gmra.mrb[30].mxu0 %v8501_v38 }
 0x94b   : > { %12218 = vmatpush3.bf16.msra.mxu0 %v12215_v4  ;;  %11200 = vmatprep.mubr.f32.mxu0 %v8487_v36 }
 0x94c   : > { %12220 = vmatprep.subr.bf16.mxu0 %v12219_v29 }
 0x94f   : > { %12222 = vmatpush3.bf16.msra.mxu0 %v12219_v29 }
 0x950   : > { %12224 = vmatprep.subr.bf16.mxu0 %v12223_v35 }
 0x952   : > { %11201 = vmatmul.mubr.f32.vlgmr.msra.gmra.mrb[30].mxu0 %v8497_v51 }
 0x953   : > { %12226 = vmatpush3.bf16.msra.mxu0 %v12223_v35  ;;  %11211 = vmatprep.mubr.f32.mxu0 %v8488_v62 }
 0x954   : > { %12228 = vmatprep.subr.bf16.mxu0 %v12227_v53 }
 0x957   : > { %12230 = vmatpush3.bf16.msra.mxu0 %v12227_v53 }
 0x958   : > { %12232 = vmatprep.subr.bf16.mxu0 %v15904_v21 }
 0x95a   : > { %11212 = vmatmul.mubr.f32.vlgmr.msra.gmra.mrb[30].mxu0 %v8498_v14 }
 0x95b   : > { %12234 = vmatpush3.bf16.msra.mxu0 %v15904_v21  ;;  %11222 = vmatprep.mubr.f32.mxu0 %v8489_v28 }
 0x95c   : > { %12236 = vmatprep.subr.bf16.mxu0 %v15906_v49 }
 0x95f   : > { %12238 = vmatpush3.bf16.msra.mxu0 %v15906_v49 }
 0x960   : > { %12240 = vmatprep.subr.bf16.mxu0 %v12239_v6 }
 0x962   : > { %11223 = vmatmul.mubr.f32.vlgmr.msra.gmra.mrb[30].mxu0 %v8499_v60 }
 0x963   : > { %12242 = vmatpush3.bf16.msra.mxu0 %v12239_v6  ;;  %11233 = vmatprep.mubr.f32.mxu0 %v8487_v36 }
 0x964   : > { %12244 = vmatprep.subr.bf16.mxu0 %v12243_v40 }
 0x967   : > { %12246 = vmatpush3.bf16.msra.mxu0 %v12243_v40 }
 0x968   : > { %12248 = vmatprep.subr.bf16.mxu0 %v15904_v21 }
 0x96a   : > { %11234 = vmatmul.mubr.f32.vlgmr.msra.gmra.mrb[30].mxu0 %v8497_v51 }
 0x96b   : > { %12250 = vmatpush3.bf16.msra.mxu0 %v15904_v21  ;;  %11244 = vmatprep.mubr.f32.mxu0 %v8487_v36 }
 0x96c   : > { %12252 = vmatprep.subr.bf16.mxu0 %v15906_v49 }
 0x96f   : > { %12254 = vmatpush3.bf16.msra.mxu0 %v15906_v49 }
 0x972   : > { %11245 = vmatmul.mubr.f32.vlgmr.msra.gmra.mrb[30].mxu0 %v8497_v51 }
 0xa45   : > { %v11246_v48 = vpop.f32.mrb[30].mxu0 }
 0xa46   : > { %8947 = vst.msk [vmem:[%s278_s12 + $0x8] sm:$0xff] %vm4234_vm8, %v11246_v48  ;;  %v8936_v10 = vpop.f32.mrb[31].mxu0 }
 0xa47   : > { %8946 = vst.msk [vmem:[%s278_s12] sm:$0xff] %vm4234_vm8, %v8936_v10 }
 0xa48 PF: > { %s17_s24 = sadd.s32 1, %s12664_s24  }
 0xa49   : > { %p14_p4 = scmp.ge.s32.totalorder %s17_s24, 4  }
 0xa4b   :  { %16 = sbr.rel (!%p14_p4) target bundleno = 1 (0x1), region = 85 }

</bundles_post_ra>
